<compile_context>
chip_gen: v6e
topology: v6e:2x2x1
jax: 0.10.0
libtpu: 0.0.40
codegen_flags: <defaults>
</compile_context>

<pallas_src>
import numpy as np
import jax
import jax.numpy as jnp
from jax.experimental import pallas as pl
from jax.experimental.pallas import tpu as pltpu

# ----------------------------- configuration ---------------------------------
B = 2                 # batch
L = 16                # opt.input_size (encoder sequence length)
C_IN = 3              # opt.enc_in
N_TIME = 2            # opt.num_time_features
D_MODEL = 32          # opt.d_model
D_INNER = 64          # opt.d_inner_hid
N_HEAD = 2            # opt.n_head
D_K = 16              # opt.d_k
D_V = 16              # opt.d_v
WINDOW = (2, 2)       # opt.window_size
INNER = 3             # opt.inner_size
D_BOTTLENECK = 16     # opt.d_bottleneck
N_LAYER = 2           # opt.n_layer
KCONV = 3             # TokenEmbedding Conv1d kernel size

L1 = L // WINDOW[0]               # pyramid level-1 length
L2 = L1 // WINDOW[1]              # pyramid level-2 length
S_TOTAL = L + L1 + L2             # sum(all_size)


# ----------------------- host-side (glue) constructions ----------------------
def get_mask(input_size, window_size, inner_size):
    """Pyraformer PAM mask. Returns float mask (1.0 = masked) and all_size."""
    all_size = [input_size]
    for w in window_size:
        all_size.append(all_size[-1] // w)
    seq_length = sum(all_size)
    mask = np.zeros((seq_length, seq_length), dtype=np.float32)
    inner_window = inner_size // 2
    for layer_idx in range(len(all_size)):
        start = sum(all_size[:layer_idx])
        for i in range(start, start + all_size[layer_idx]):
            left = max(i - inner_window, start)
            right = min(i + inner_window + 1, start + all_size[layer_idx])
            mask[i, left:right] = 1
    for layer_idx in range(1, len(all_size)):
        start = sum(all_size[:layer_idx])
        for i in range(start, start + all_size[layer_idx]):
            left = (start - all_size[layer_idx - 1]) + (i - start) * window_size[layer_idx - 1]
            if i == (start + all_size[layer_idx] - 1):
                right = start
            else:
                right = (start - all_size[layer_idx - 1]) + (i - start + 1) * window_size[layer_idx - 1]
            mask[i, left:right] = 1
            mask[left:right, i] = 1
    return (1.0 - mask).astype(np.float32), all_size


def positional_encoding(length, d_model):
    position = np.arange(length, dtype=np.float32)[:, None]
    div_term = np.exp(np.arange(0, d_model, 2, dtype=np.float32) * -(np.log(10000.0) / d_model))
    pe = np.zeros((length, d_model), dtype=np.float32)
    pe[:, 0::2] = np.sin(position * div_term)
    pe[:, 1::2] = np.cos(position * div_term)
    return pe


# ------------------------------- kernel helpers -------------------------------
def _layernorm(v, g, b, eps):
    mean = jnp.mean(v, axis=-1, keepdims=True)
    var = jnp.mean(jnp.square(v - mean), axis=-1, keepdims=True)
    return (v - mean) * jax.lax.rsqrt(var + eps) * g + b


def _mm(a, b):
    """bf16 MXU operands, f32 accumulation (weights are pre-cast to bf16 on host)."""
    return jnp.dot(a.astype(jnp.bfloat16), b.astype(jnp.bfloat16),
                   preferred_element_type=jnp.float32)


def _elu(x):
    return jnp.where(x > 0, x, jnp.exp(jnp.minimum(x, 0.0)) - 1.0)


# --------------------------------- fused kernel -----------------------------------
def encoder_kernel(xcol_ref, xmark_ref,
                   wconv_ref, wtime_ref, btime_ref, pe_ref,
                   wdown_ref, bdown_ref,
                   wc1_ref, bc1_ref, wc2_ref, bc2_ref,
                   wup_ref, bup_ref, clng_ref, clnb_ref,
                   madd_ref,
                   wqkv_ref, wo_ref, bo_ref,
                   ln1g_ref, ln1b_ref,
                   w1_ref, b1_ref, w2_ref, b2_ref,
                   ln2g_ref, ln2b_ref,
                   out_ref,
                   h_scr, h1_scr):
    # ---------------- DataEmbedding (TokenEmbedding conv as im2col + timeF + PE) ----
    v = _mm(xcol_ref[0], wconv_ref[...])                                  # (L, D)
    t = _mm(xmark_ref[0], wtime_ref[...]) + btime_ref[...]                # (L, D)
    seq = v + t + pe_ref[...]                                             # dropout: eval -> id

    # ---------------- Bottleneck_Construct (CSCM) -----------------------------------
    h = _mm(seq, wdown_ref[...]) + bdown_ref[...]                         # (L, DB)
    h_scr[...] = h
    # Conv1d(kernel=stride=2) as two strided-row matmuls (BatchNorm eval folded into W/b)
    c1 = (_mm(h_scr[pl.ds(0, L1, stride=WINDOW[0]), :], wc1_ref[0]) +
          _mm(h_scr[pl.ds(1, L1, stride=WINDOW[0]), :], wc1_ref[1]) +
          bc1_ref[...])                                                   # (L1, DB)
    h1 = _elu(c1)
    h1_scr[...] = h1
    c2 = (_mm(h1_scr[pl.ds(0, L2, stride=WINDOW[1]), :], wc2_ref[0]) +
          _mm(h1_scr[pl.ds(1, L2, stride=WINDOW[1]), :], wc2_ref[1]) +
          bc2_ref[...])                                                   # (L2, DB)
    h2 = _elu(c2)

    up1 = _mm(h1, wup_ref[...]) + bup_ref[...]                            # (L1, D)
    up2 = _mm(h2, wup_ref[...]) + bup_ref[...]                            # (L2, D)
    x = jnp.concatenate([seq, up1, up2], axis=0)                          # (S_TOTAL, D)
    x = _layernorm(x, clng_ref[...], clnb_ref[...], 1e-5)

    # ---------------- Encoder layers (post-norm, masked MHA + FFN) -------------------
    madd = madd_ref[...]                                                  # additive mask
    for li in range(N_LAYER):
        qkv = _mm(x, wqkv_ref[li])                                        # (S, 3*H*Dk)
        heads = []
        for hi in range(N_HEAD):
            q_h = qkv[:, hi * D_K:(hi + 1) * D_K]                         # 1/sqrt(dk) in Wq
            k_h = qkv[:, N_HEAD * D_K + hi * D_K: N_HEAD * D_K + (hi + 1) * D_K]
            v_h = qkv[:, 2 * N_HEAD * D_K + hi * D_V: 2 * N_HEAD * D_K + (hi + 1) * D_V]
            s = jax.lax.dot_general(q_h.astype(jnp.bfloat16), k_h.astype(jnp.bfloat16),
                                    (((1,), (1,)), ((), ())),
                                    preferred_element_type=jnp.float32)   # (S, S)
            s = s + madd
            s = s - jnp.max(s, axis=-1, keepdims=True)
            p = jnp.exp(s)
            p = p * pl.reciprocal(jnp.sum(p, axis=-1, keepdims=True), approx=True)
            heads.append(_mm(p, v_h))                                     # (S, Dv)
        attn = jnp.concatenate(heads, axis=-1)                            # (S, H*Dv)
        y = _mm(attn, wo_ref[li]) + bo_ref[li] + x                        # out-proj + residual
        y = _layernorm(y, ln1g_ref[li], ln1b_ref[li], 1e-6)

        hdn = _mm(y, w1_ref[li]) + b1_ref[li]
        # TODO(synk): torch F.gelu uses exact erf; tanh approximation used here (no erf lowering).
        hdn = 0.5 * hdn * (1.0 + jnp.tanh(0.7978845608028654 * (hdn + 0.044715 * hdn * hdn * hdn)))
        z = _mm(hdn, w2_ref[li]) + b2_ref[li] + y
        x = _layernorm(z, ln2g_ref[li], ln2b_ref[li], 1e-6)

    # decoder_type == 'attention' and truncate -> first all_size[0] rows only
    out_ref[0] = x[:L, :]


# ------------------------------ pallas_call wrapper ---------------------------
def _full_spec(a):
    nd = a.ndim
    return pl.BlockSpec(a.shape, lambda b, nd=nd: (0,) * nd)


def encoder_call(x_col, x_mark, p):
    weights = [
        p["w_conv"], p["w_time"], p["b_time"], p["pe"],
        p["w_down"], p["b_down"],
        p["wc1"], p["bc1"], p["wc2"], p["bc2"],
        p["w_up"], p["b_up"], p["cln_g"], p["cln_b"],
        p["mask_add"],
        p["wqkv"], p["wo"], p["bo"],
        p["ln1_g"], p["ln1_b"],
        p["w1"], p["b1"], p["w2"], p["b2"],
        p["ln2_g"], p["ln2_b"],
    ]
    in_specs = [
        pl.BlockSpec((1, L, KCONV * C_IN), lambda b: (b, 0, 0)),
        pl.BlockSpec((1, L, N_TIME), lambda b: (b, 0, 0)),
    ] + [_full_spec(w) for w in weights]

    return pl.pallas_call(
        encoder_kernel,
        grid=(B,),
        in_specs=in_specs,
        out_specs=pl.BlockSpec((1, L, D_MODEL), lambda b: (b, 0, 0)),
        out_shape=jax.ShapeDtypeStruct((B, L, D_MODEL), jnp.float32),
        scratch_shapes=[
            pltpu.VMEM((L, D_BOTTLENECK), jnp.float32),
            pltpu.VMEM((L1, D_BOTTLENECK), jnp.float32),
        ],
        compiler_params=pltpu.CompilerParams(dimension_semantics=("parallel",)),
    )(x_col, x_mark, *weights)


# ------------------------------- parameter init --------------------------------
def init_params():
    keys = iter(jax.random.split(jax.random.PRNGKey(42), 64))

    def rn(shape, scale=0.2):
        return scale * jax.random.normal(next(keys), shape, dtype=jnp.float32)

    def bf16(a):
        return a.astype(jnp.bfloat16)

    mask_np, all_size = get_mask(L, list(WINDOW), INNER)
    assert all_size == [L, L1, L2] and sum(all_size) == S_TOTAL

    # BatchNorm1d eval with default running stats (mean=0, var=1, gamma=1, beta=0)
    # -> pure per-channel scale; fold it into the conv weights/biases.
    bn_s = float(1.0 / np.sqrt(1.0 + 1e-5))

    # Per-layer attention / FFN params, stacked along a leading layer axis.
    attn_scale = 1.0 / float(np.sqrt(D_K))
    wqkv, wo, bo, ln1_g, ln1_b, w1, b1, w2, b2, ln2_g, ln2_b = ([] for _ in range(11))
    for _ in range(N_LAYER):
        wq = rn((D_MODEL, N_HEAD * D_K)) * attn_scale     # fold 1/sqrt(d_k) into Wq
        wk = rn((D_MODEL, N_HEAD * D_K))
        wv = rn((D_MODEL, N_HEAD * D_V))
        wqkv.append(jnp.concatenate([wq, wk, wv], axis=-1))   # (D, 3*H*Dk)
        wo.append(rn((N_HEAD * D_V, D_MODEL)))                # fc on concatenated heads
        bo.append(rn((1, D_MODEL), 0.02))
        ln1_g.append(jnp.ones((1, D_MODEL), jnp.float32))
        ln1_b.append(jnp.zeros((1, D_MODEL), jnp.float32))
        w1.append(rn((D_MODEL, D_INNER)))
        b1.append(rn((1, D_INNER), 0.02))
        w2.append(rn((D_INNER, D_MODEL)))
        b2.append(rn((1, D_MODEL), 0.02))
        ln2_g.append(jnp.ones((1, D_MODEL), jnp.float32))
        ln2_b.append(jnp.zeros((1, D_MODEL), jnp.float32))

    # Bottleneck ConvLayer weights (wc[k][c, d] == torch_weight[d, c, k]); BN folded.
    wc1 = rn((WINDOW[0], D_BOTTLENECK, D_BOTTLENECK)) * bn_s
    bc1 = rn((1, D_BOTTLENECK), 0.02) * bn_s
    wc2 = rn((WINDOW[1], D_BOTTLENECK, D_BOTTLENECK)) * bn_s
    bc2 = rn((1, D_BOTTLENECK), 0.02) * bn_s

    return dict(
        # DataEmbedding: w_conv is the im2col form of Conv1d(C_IN, D_MODEL, k=3, circular, bias=False)
        # w_conv[k*C_IN + c, d] == torch_weight[d, c, k]
        w_conv=bf16(rn((KCONV * C_IN, D_MODEL))),
        w_time=bf16(rn((N_TIME, D_MODEL))),          # TimeFeatureEmbedding linear
        b_time=rn((1, D_MODEL), 0.02),
        pe=jnp.asarray(positional_encoding(L, D_MODEL)),
        # Bottleneck_Construct
        w_down=bf16(rn((D_MODEL, D_BOTTLENECK))), b_down=rn((1, D_BOTTLENECK), 0.02),
        wc1=bf16(wc1), bc1=bc1, wc2=bf16(wc2), bc2=bc2,
        w_up=bf16(rn((D_BOTTLENECK, D_MODEL))), b_up=rn((1, D_MODEL), 0.02),
        cln_g=jnp.ones((1, D_MODEL), jnp.float32), cln_b=jnp.zeros((1, D_MODEL), jnp.float32),
        # Additive PAM attention mask: -1e9 where masked, 0 elsewhere
        mask_add=jnp.asarray(-1e9 * mask_np),
        # Encoder layers (stacked on leading layer axis)
        wqkv=bf16(jnp.stack(wqkv)), wo=bf16(jnp.stack(wo)), bo=jnp.stack(bo),
        ln1_g=jnp.stack(ln1_g), ln1_b=jnp.stack(ln1_b),
        w1=bf16(jnp.stack(w1)), b1=jnp.stack(b1),
        w2=bf16(jnp.stack(w2)), b2=jnp.stack(b2),
        ln2_g=jnp.stack(ln2_g), ln2_b=jnp.stack(ln2_b),
    )


# ------------------------------- encoder forward --------------------------------
@jax.jit
def encoder_forward(x_enc, x_mark_enc, params):
    # circular padding + im2col for TokenEmbedding's Conv1d (glue: slicing/concat only)
    x_pad = jnp.concatenate([x_enc[:, -1:, :], x_enc, x_enc[:, :1, :]], axis=1)       # (B, L+2, C)
    x_col = jnp.concatenate([x_pad[:, k:k + L, :] for k in range(KCONV)], axis=-1)    # (B, L, 3*C)
    # single fused kernel: embedding + CSCM + N_LAYER encoder layers + truncate
    return encoder_call(x_col, x_mark_enc, params)


# ------------------------------------ main ---------------------------------------
if __name__ == "__main__":
    params = init_params()
    kx, km = jax.random.split(jax.random.PRNGKey(0), 2)
    x_enc = jax.random.normal(kx, (B, L, C_IN), dtype=jnp.float32)
    x_mark_enc = jax.random.normal(km, (B, L, N_TIME), dtype=jnp.float32)

    out = encoder_forward(x_enc, x_mark_enc, params)
    out = jax.block_until_ready(out)

    assert out.shape == (B, L, D_MODEL), out.shape
    assert bool(jnp.all(jnp.isfinite(out)))
    print("KERNEL_OK")
</pallas_src>

<mosaic_0001>
module attributes {stable_mosaic.version = 11 : i64} {
  func.func @encoder_kernel(%arg0: i32, %arg1: memref<1x16x9xf32, #tpu.memory_space<vmem>>, %arg2: memref<1x16x2xf32, #tpu.memory_space<vmem>>, %arg3: memref<9x32xbf16, #tpu.memory_space<vmem>>, %arg4: memref<2x32xbf16, #tpu.memory_space<vmem>>, %arg5: memref<1x32xf32, #tpu.memory_space<vmem>>, %arg6: memref<16x32xf32, #tpu.memory_space<vmem>>, %arg7: memref<32x16xbf16, #tpu.memory_space<vmem>>, %arg8: memref<1x16xf32, #tpu.memory_space<vmem>>, %arg9: memref<2x16x16xbf16, #tpu.memory_space<vmem>>, %arg10: memref<1x16xf32, #tpu.memory_space<vmem>>, %arg11: memref<2x16x16xbf16, #tpu.memory_space<vmem>>, %arg12: memref<1x16xf32, #tpu.memory_space<vmem>>, %arg13: memref<16x32xbf16, #tpu.memory_space<vmem>>, %arg14: memref<1x32xf32, #tpu.memory_space<vmem>>, %arg15: memref<1x32xf32, #tpu.memory_space<vmem>>, %arg16: memref<1x32xf32, #tpu.memory_space<vmem>>, %arg17: memref<28x28xf32, #tpu.memory_space<vmem>>, %arg18: memref<2x32x96xbf16, #tpu.memory_space<vmem>>, %arg19: memref<2x32x32xbf16, #tpu.memory_space<vmem>>, %arg20: memref<2x1x32xf32, #tpu.memory_space<vmem>>, %arg21: memref<2x1x32xf32, #tpu.memory_space<vmem>>, %arg22: memref<2x1x32xf32, #tpu.memory_space<vmem>>, %arg23: memref<2x32x64xbf16, #tpu.memory_space<vmem>>, %arg24: memref<2x1x64xf32, #tpu.memory_space<vmem>>, %arg25: memref<2x64x32xbf16, #tpu.memory_space<vmem>>, %arg26: memref<2x1x32xf32, #tpu.memory_space<vmem>>, %arg27: memref<2x1x32xf32, #tpu.memory_space<vmem>>, %arg28: memref<2x1x32xf32, #tpu.memory_space<vmem>>, %arg29: memref<1x16x32xf32, #tpu.memory_space<vmem>>, %arg30: memref<16x16xf32, #tpu.memory_space<vmem>>, %arg31: memref<8x16xf32, #tpu.memory_space<vmem>>) attributes {dimension_semantics = [#tpu.dimension_semantics<parallel>], iteration_bounds = array<i64: 2>, scalar_prefetch = 0 : i64, scratch_operands = 2 : i64, tpu.core_type = #tpu.core_type<tc>, window_params = [{transform_indices = @transform_0, window_bounds = array<i64: 1, 16, 9>}, {transform_indices = @transform_1, window_bounds = array<i64: 1, 16, 2>}, {pipeline_mode = #tpu.pipeline_mode<synchronous>, transform_indices = @transform_2, window_bounds = array<i64: 9, 32>}, {pipeline_mode = #tpu.pipeline_mode<synchronous>, transform_indices = @transform_3, window_bounds = array<i64: 2, 32>}, {pipeline_mode = #tpu.pipeline_mode<synchronous>, transform_indices = @transform_4, window_bounds = array<i64: 1, 32>}, {pipeline_mode = #tpu.pipeline_mode<synchronous>, transform_indices = @transform_5, window_bounds = array<i64: 16, 32>}, {pipeline_mode = #tpu.pipeline_mode<synchronous>, transform_indices = @transform_6, window_bounds = array<i64: 32, 16>}, {pipeline_mode = #tpu.pipeline_mode<synchronous>, transform_indices = @transform_7, window_bounds = array<i64: 1, 16>}, {pipeline_mode = #tpu.pipeline_mode<synchronous>, transform_indices = @transform_8, window_bounds = array<i64: 2, 16, 16>}, {pipeline_mode = #tpu.pipeline_mode<synchronous>, transform_indices = @transform_9, window_bounds = array<i64: 1, 16>}, {pipeline_mode = #tpu.pipeline_mode<synchronous>, transform_indices = @transform_10, window_bounds = array<i64: 2, 16, 16>}, {pipeline_mode = #tpu.pipeline_mode<synchronous>, transform_indices = @transform_11, window_bounds = array<i64: 1, 16>}, {pipeline_mode = #tpu.pipeline_mode<synchronous>, transform_indices = @transform_12, window_bounds = array<i64: 16, 32>}, {pipeline_mode = #tpu.pipeline_mode<synchronous>, transform_indices = @transform_13, window_bounds = array<i64: 1, 32>}, {pipeline_mode = #tpu.pipeline_mode<synchronous>, transform_indices = @transform_14, window_bounds = array<i64: 1, 32>}, {pipeline_mode = #tpu.pipeline_mode<synchronous>, transform_indices = @transform_15, window_bounds = array<i64: 1, 32>}, {pipeline_mode = #tpu.pipeline_mode<synchronous>, transform_indices = @transform_16, window_bounds = array<i64: 28, 28>}, {pipeline_mode = #tpu.pipeline_mode<synchronous>, transform_indices = @transform_17, window_bounds = array<i64: 2, 32, 96>}, {pipeline_mode = #tpu.pipeline_mode<synchronous>, transform_indices = @transform_18, window_bounds = array<i64: 2, 32, 32>}, {pipeline_mode = #tpu.pipeline_mode<synchronous>, transform_indices = @transform_19, window_bounds = array<i64: 2, 1, 32>}, {pipeline_mode = #tpu.pipeline_mode<synchronous>, transform_indices = @transform_20, window_bounds = array<i64: 2, 1, 32>}, {pipeline_mode = #tpu.pipeline_mode<synchronous>, transform_indices = @transform_21, window_bounds = array<i64: 2, 1, 32>}, {pipeline_mode = #tpu.pipeline_mode<synchronous>, transform_indices = @transform_22, window_bounds = array<i64: 2, 32, 64>}, {pipeline_mode = #tpu.pipeline_mode<synchronous>, transform_indices = @transform_23, window_bounds = array<i64: 2, 1, 64>}, {pipeline_mode = #tpu.pipeline_mode<synchronous>, transform_indices = @transform_24, window_bounds = array<i64: 2, 64, 32>}, {pipeline_mode = #tpu.pipeline_mode<synchronous>, transform_indices = @transform_25, window_bounds = array<i64: 2, 1, 32>}, {pipeline_mode = #tpu.pipeline_mode<synchronous>, transform_indices = @transform_26, window_bounds = array<i64: 2, 1, 32>}, {pipeline_mode = #tpu.pipeline_mode<synchronous>, transform_indices = @transform_27, window_bounds = array<i64: 2, 1, 32>}, {transform_indices = @transform_28, window_bounds = array<i64: 1, 16, 32>}]} {
    %c0 = arith.constant 0 : index
    %c0_0 = arith.constant 0 : index
    %c0_1 = arith.constant 0 : index
    %0 = vector.load %arg1[%c0, %c0_0, %c0_1] : memref<1x16x9xf32, #tpu.memory_space<vmem>>, vector<1x16x9xf32>
    %1 = vector.shape_cast %0 : vector<1x16x9xf32> to vector<16x9xf32>
    %c0_2 = arith.constant 0 : index
    %c0_3 = arith.constant 0 : index
    %2 = vector.load %arg3[%c0_2, %c0_3] : memref<9x32xbf16, #tpu.memory_space<vmem>>, vector<9x32xbf16>
    %3 = arith.truncf %1 : vector<16x9xf32> to vector<16x9xbf16>
    %cst = arith.constant dense<0.000000e+00> : vector<16x32xf32>
    %4 = tpu.matmul %3, %2, %cst {dimension_numbers = #tpu.dot_dimension_numbers<[1], [0], [0], [1], [0, 0, 1, 1], [], []>} : vector<16x9xbf16>, vector<9x32xbf16>, vector<16x32xf32> -> vector<16x32xf32>
    %c0_4 = arith.constant 0 : index
    %c0_5 = arith.constant 0 : index
    %c0_6 = arith.constant 0 : index
    %5 = vector.load %arg2[%c0_4, %c0_5, %c0_6] : memref<1x16x2xf32, #tpu.memory_space<vmem>>, vector<1x16x2xf32>
    %6 = vector.shape_cast %5 : vector<1x16x2xf32> to vector<16x2xf32>
    %c0_7 = arith.constant 0 : index
    %c0_8 = arith.constant 0 : index
    %7 = vector.load %arg4[%c0_7, %c0_8] : memref<2x32xbf16, #tpu.memory_space<vmem>>, vector<2x32xbf16>
    %8 = arith.truncf %6 : vector<16x2xf32> to vector<16x2xbf16>
    %cst_9 = arith.constant dense<0.000000e+00> : vector<16x32xf32>
    %9 = tpu.matmul %8, %7, %cst_9 {dimension_numbers = #tpu.dot_dimension_numbers<[1], [0], [0], [1], [0, 0, 1, 1], [], []>} : vector<16x2xbf16>, vector<2x32xbf16>, vector<16x32xf32> -> vector<16x32xf32>
    %c0_10 = arith.constant 0 : index
    %c0_11 = arith.constant 0 : index
    %10 = vector.load %arg5[%c0_10, %c0_11] : memref<1x32xf32, #tpu.memory_space<vmem>>, vector<1x32xf32>
    %11 = vector.broadcast %10 : vector<1x32xf32> to vector<16x32xf32>
    %12 = arith.addf %9, %11 : vector<16x32xf32>
    %13 = arith.addf %4, %12 : vector<16x32xf32>
    %c0_12 = arith.constant 0 : index
    %c0_13 = arith.constant 0 : index
    %14 = vector.load %arg6[%c0_12, %c0_13] : memref<16x32xf32, #tpu.memory_space<vmem>>, vector<16x32xf32>
    %15 = arith.addf %13, %14 : vector<16x32xf32>
    %c0_14 = arith.constant 0 : index
    %c0_15 = arith.constant 0 : index
    %16 = vector.load %arg7[%c0_14, %c0_15] : memref<32x16xbf16, #tpu.memory_space<vmem>>, vector<32x16xbf16>
    %17 = arith.truncf %15 : vector<16x32xf32> to vector<16x32xbf16>
    %cst_16 = arith.constant dense<0.000000e+00> : vector<16x16xf32>
    %18 = tpu.matmul %17, %16, %cst_16 {dimension_numbers = #tpu.dot_dimension_numbers<[1], [0], [0], [1], [0, 0, 1, 1], [], []>} : vector<16x32xbf16>, vector<32x16xbf16>, vector<16x16xf32> -> vector<16x16xf32>
    %c0_17 = arith.constant 0 : index
    %c0_18 = arith.constant 0 : index
    %19 = vector.load %arg8[%c0_17, %c0_18] : memref<1x16xf32, #tpu.memory_space<vmem>>, vector<1x16xf32>
    %20 = vector.broadcast %19 : vector<1x16xf32> to vector<16x16xf32>
    %21 = arith.addf %18, %20 : vector<16x16xf32>
    %c0_19 = arith.constant 0 : index
    %c0_20 = arith.constant 0 : index
    %22 = vector.load %arg30[%c0_19, %c0_20] : memref<16x16xf32, #tpu.memory_space<vmem>>, vector<16x16xf32>
    tpu.vector_store %arg30[%c0_19, %c0_20], %21 {strides = array<i32>} : memref<16x16xf32, #tpu.memory_space<vmem>>, vector<16x16xf32>,
    %c0_21 = arith.constant 0 : index
    %c0_22 = arith.constant 0 : index
    %23 = tpu.strided_load %arg30[%c0_21, %c0_22] {strides = array<i32: 2, 1>} : memref<16x16xf32, #tpu.memory_space<vmem>>, vector<8x16xf32>
    %c0_23 = arith.constant 0 : index
    %c0_24 = arith.constant 0 : index
    %c0_25 = arith.constant 0 : index
    %24 = vector.load %arg9[%c0_23, %c0_24, %c0_25] : memref<2x16x16xbf16, #tpu.memory_space<vmem>>, vector<1x16x16xbf16>
    %25 = vector.shape_cast %24 : vector<1x16x16xbf16> to vector<16x16xbf16>
    %26 = arith.truncf %23 : vector<8x16xf32> to vector<8x16xbf16>
    %cst_26 = arith.constant dense<0.000000e+00> : vector<8x16xf32>
    %27 = tpu.matmul %26, %25, %cst_26 {dimension_numbers = #tpu.dot_dimension_numbers<[1], [0], [0], [1], [0, 0, 1, 1], [], []>} : vector<8x16xbf16>, vector<16x16xbf16>, vector<8x16xf32> -> vector<8x16xf32>
    %c1 = arith.constant 1 : index
    %c0_27 = arith.constant 0 : index
    %28 = tpu.strided_load %arg30[%c1, %c0_27] {strides = array<i32: 2, 1>} : memref<16x16xf32, #tpu.memory_space<vmem>>, vector<8x16xf32>
    %c1_28 = arith.constant 1 : index
    %c0_29 = arith.constant 0 : index
    %c0_30 = arith.constant 0 : index
    %29 = vector.load %arg9[%c1_28, %c0_29, %c0_30] : memref<2x16x16xbf16, #tpu.memory_space<vmem>>, vector<1x16x16xbf16>
    %30 = vector.shape_cast %29 : vector<1x16x16xbf16> to vector<16x16xbf16>
    %31 = arith.truncf %28 : vector<8x16xf32> to vector<8x16xbf16>
    %cst_31 = arith.constant dense<0.000000e+00> : vector<8x16xf32>
    %32 = tpu.matmul %31, %30, %cst_31 {dimension_numbers = #tpu.dot_dimension_numbers<[1], [0], [0], [1], [0, 0, 1, 1], [], []>} : vector<8x16xbf16>, vector<16x16xbf16>, vector<8x16xf32> -> vector<8x16xf32>
    %33 = arith.addf %27, %32 : vector<8x16xf32>
    %c0_32 = arith.constant 0 : index
    %c0_33 = arith.constant 0 : index
    %34 = vector.load %arg10[%c0_32, %c0_33] : memref<1x16xf32, #tpu.memory_space<vmem>>, vector<1x16xf32>
    %35 = vector.broadcast %34 : vector<1x16xf32> to vector<8x16xf32>
    %36 = arith.addf %33, %35 : vector<8x16xf32>
    %cst_34 = arith.constant 0.000000e+00 : f32
    %37 = vector.broadcast %cst_34 : f32 to vector<8x16xf32>
    %38 = arith.cmpf ogt, %36, %37 : vector<8x16xf32>
    %cst_35 = arith.constant 0.000000e+00 : f32
    %39 = vector.broadcast %cst_35 : f32 to vector<8x16xf32>
    %40 = arith.minimumf %36, %39 : vector<8x16xf32>
    %41 = math.exp %40 : vector<8x16xf32>
    %cst_36 = arith.constant 1.000000e+00 : f32
    %42 = vector.broadcast %cst_36 : f32 to vector<8x16xf32>
    %43 = arith.subf %41, %42 : vector<8x16xf32>
    %44 = arith.select %38, %36, %43 : vector<8x16xi1>, vector<8x16xf32>
    %c0_37 = arith.constant 0 : index
    %c0_38 = arith.constant 0 : index
    %45 = vector.load %arg31[%c0_37, %c0_38] : memref<8x16xf32, #tpu.memory_space<vmem>>, vector<8x16xf32>
    tpu.vector_store %arg31[%c0_37, %c0_38], %44 {strides = array<i32>} : memref<8x16xf32, #tpu.memory_space<vmem>>, vector<8x16xf32>,
    %c0_39 = arith.constant 0 : index
    %c0_40 = arith.constant 0 : index
    %46 = tpu.strided_load %arg31[%c0_39, %c0_40] {strides = array<i32: 2, 1>} : memref<8x16xf32, #tpu.memory_space<vmem>>, vector<4x16xf32>
    %c0_41 = arith.constant 0 : index
    %c0_42 = arith.constant 0 : index
    %c0_43 = arith.constant 0 : index
    %47 = vector.load %arg11[%c0_41, %c0_42, %c0_43] : memref<2x16x16xbf16, #tpu.memory_space<vmem>>, vector<1x16x16xbf16>
    %48 = vector.shape_cast %47 : vector<1x16x16xbf16> to vector<16x16xbf16>
    %49 = arith.truncf %46 : vector<4x16xf32> to vector<4x16xbf16>
    %cst_44 = arith.constant dense<0.000000e+00> : vector<4x16xf32>
    %50 = tpu.matmul %49, %48, %cst_44 {dimension_numbers = #tpu.dot_dimension_numbers<[1], [0], [0], [1], [0, 0, 1, 1], [], []>} : vector<4x16xbf16>, vector<16x16xbf16>, vector<4x16xf32> -> vector<4x16xf32>
    %c1_45 = arith.constant 1 : index
    %c0_46 = arith.constant 0 : index
    %51 = tpu.strided_load %arg31[%c1_45, %c0_46] {strides = array<i32: 2, 1>} : memref<8x16xf32, #tpu.memory_space<vmem>>, vector<4x16xf32>
    %c1_47 = arith.constant 1 : index
    %c0_48 = arith.constant 0 : index
    %c0_49 = arith.constant 0 : index
    %52 = vector.load %arg11[%c1_47, %c0_48, %c0_49] : memref<2x16x16xbf16, #tpu.memory_space<vmem>>, vector<1x16x16xbf16>
    %53 = vector.shape_cast %52 : vector<1x16x16xbf16> to vector<16x16xbf16>
    %54 = arith.truncf %51 : vector<4x16xf32> to vector<4x16xbf16>
    %cst_50 = arith.constant dense<0.000000e+00> : vector<4x16xf32>
    %55 = tpu.matmul %54, %53, %cst_50 {dimension_numbers = #tpu.dot_dimension_numbers<[1], [0], [0], [1], [0, 0, 1, 1], [], []>} : vector<4x16xbf16>, vector<16x16xbf16>, vector<4x16xf32> -> vector<4x16xf32>
    %56 = arith.addf %50, %55 : vector<4x16xf32>
    %c0_51 = arith.constant 0 : index
    %c0_52 = arith.constant 0 : index
    %57 = vector.load %arg12[%c0_51, %c0_52] : memref<1x16xf32, #tpu.memory_space<vmem>>, vector<1x16xf32>
    %58 = vector.broadcast %57 : vector<1x16xf32> to vector<4x16xf32>
    %59 = arith.addf %56, %58 : vector<4x16xf32>
    %cst_53 = arith.constant 0.000000e+00 : f32
    %60 = vector.broadcast %cst_53 : f32 to vector<4x16xf32>
    %61 = arith.cmpf ogt, %59, %60 : vector<4x16xf32>
    %cst_54 = arith.constant 0.000000e+00 : f32
    %62 = vector.broadcast %cst_54 : f32 to vector<4x16xf32>
    %63 = arith.minimumf %59, %62 : vector<4x16xf32>
    %64 = math.exp %63 : vector<4x16xf32>
    %cst_55 = arith.constant 1.000000e+00 : f32
    %65 = vector.broadcast %cst_55 : f32 to vector<4x16xf32>
    %66 = arith.subf %64, %65 : vector<4x16xf32>
    %67 = arith.select %61, %59, %66 : vector<4x16xi1>, vector<4x16xf32>
    %c0_56 = arith.constant 0 : index
    %c0_57 = arith.constant 0 : index
    %68 = vector.load %arg13[%c0_56, %c0_57] : memref<16x32xbf16, #tpu.memory_space<vmem>>, vector<16x32xbf16>
    %69 = arith.truncf %44 : vector<8x16xf32> to vector<8x16xbf16>
    %cst_58 = arith.constant dense<0.000000e+00> : vector<8x32xf32>
    %70 = tpu.matmul %69, %68, %cst_58 {dimension_numbers = #tpu.dot_dimension_numbers<[1], [0], [0], [1], [0, 0, 1, 1], [], []>} : vector<8x16xbf16>, vector<16x32xbf16>, vector<8x32xf32> -> vector<8x32xf32>
    %c0_59 = arith.constant 0 : index
    %c0_60 = arith.constant 0 : index
    %71 = vector.load %arg14[%c0_59, %c0_60] : memref<1x32xf32, #tpu.memory_space<vmem>>, vector<1x32xf32>
    %72 = vector.broadcast %71 : vector<1x32xf32> to vector<8x32xf32>
    %73 = arith.addf %70, %72 : vector<8x32xf32>
    %c0_61 = arith.constant 0 : index
    %c0_62 = arith.constant 0 : index
    %74 = vector.load %arg13[%c0_61, %c0_62] : memref<16x32xbf16, #tpu.memory_space<vmem>>, vector<16x32xbf16>
    %75 = arith.truncf %67 : vector<4x16xf32> to vector<4x16xbf16>
    %cst_63 = arith.constant dense<0.000000e+00> : vector<4x32xf32>
    %76 = tpu.matmul %75, %74, %cst_63 {dimension_numbers = #tpu.dot_dimension_numbers<[1], [0], [0], [1], [0, 0, 1, 1], [], []>} : vector<4x16xbf16>, vector<16x32xbf16>, vector<4x32xf32> -> vector<4x32xf32>
    %c0_64 = arith.constant 0 : index
    %c0_65 = arith.constant 0 : index
    %77 = vector.load %arg14[%c0_64, %c0_65] : memref<1x32xf32, #tpu.memory_space<vmem>>, vector<1x32xf32>
    %78 = vector.broadcast %77 : vector<1x32xf32> to vector<4x32xf32>
    %79 = arith.addf %76, %78 : vector<4x32xf32>
    %80 = tpu.concatenate %15, %73, %79 in 0 : vector<16x32xf32>, vector<8x32xf32>, vector<4x32xf32> -> vector<28x32xf32>
    %c0_66 = arith.constant 0 : index
    %c0_67 = arith.constant 0 : index
    %81 = vector.load %arg15[%c0_66, %c0_67] : memref<1x32xf32, #tpu.memory_space<vmem>>, vector<1x32xf32>
    %c0_68 = arith.constant 0 : index
    %c0_69 = arith.constant 0 : index
    %82 = vector.load %arg16[%c0_68, %c0_69] : memref<1x32xf32, #tpu.memory_space<vmem>>, vector<1x32xf32>
    %cst_70 = arith.constant dense<0.000000e+00> : vector<28xf32>
    %83 = vector.multi_reduction <add>, %80, %cst_70 [1] : vector<28x32xf32> to vector<28xf32>
    %84 = vector.shape_cast %83 : vector<28xf32> to vector<28x1xf32>
    %cst_71 = arith.constant 3.200000e+01 : f32
    %85 = vector.broadcast %cst_71 : f32 to vector<28x1xf32>
    %86 = arith.divf %84, %85 : vector<28x1xf32>
    %87 = vector.broadcast %86 : vector<28x1xf32> to vector<28x32xf32>
    %88 = arith.subf %80, %87 : vector<28x32xf32>
    %89 = arith.mulf %88, %88 : vector<28x32xf32>
    %cst_72 = arith.constant dense<0.000000e+00> : vector<28xf32>
    %90 = vector.multi_reduction <add>, %89, %cst_72 [1] : vector<28x32xf32> to vector<28xf32>
    %91 = vector.shape_cast %90 : vector<28xf32> to vector<28x1xf32>
    %cst_73 = arith.constant 3.200000e+01 : f32
    %92 = vector.broadcast %cst_73 : f32 to vector<28x1xf32>
    %93 = arith.divf %91, %92 : vector<28x1xf32>
    %94 = vector.broadcast %86 : vector<28x1xf32> to vector<28x32xf32>
    %95 = arith.subf %80, %94 : vector<28x32xf32>
    %cst_74 = arith.constant 9.99999974E-6 : f32
    %96 = vector.broadcast %cst_74 : f32 to vector<28x1xf32>
    %97 = arith.addf %93, %96 : vector<28x1xf32>
    %98 = math.rsqrt %97 : vector<28x1xf32>
    %99 = vector.broadcast %98 : vector<28x1xf32> to vector<28x32xf32>
    %100 = arith.mulf %95, %99 : vector<28x32xf32>
    %101 = vector.broadcast %81 : vector<1x32xf32> to vector<28x32xf32>
    %102 = arith.mulf %100, %101 : vector<28x32xf32>
    %103 = vector.broadcast %82 : vector<1x32xf32> to vector<28x32xf32>
    %104 = arith.addf %102, %103 : vector<28x32xf32>
    %c0_75 = arith.constant 0 : index
    %c0_76 = arith.constant 0 : index
    %105 = vector.load %arg17[%c0_75, %c0_76] : memref<28x28xf32, #tpu.memory_space<vmem>>, vector<28x28xf32>
    %c0_77 = arith.constant 0 : index
    %c0_78 = arith.constant 0 : index
    %c0_79 = arith.constant 0 : index
    %106 = vector.load %arg18[%c0_77, %c0_78, %c0_79] : memref<2x32x96xbf16, #tpu.memory_space<vmem>>, vector<1x32x96xbf16>
    %107 = vector.shape_cast %106 : vector<1x32x96xbf16> to vector<32x96xbf16>
    %108 = arith.truncf %104 : vector<28x32xf32> to vector<28x32xbf16>
    %cst_80 = arith.constant dense<0.000000e+00> : vector<28x96xf32>
    %109 = tpu.matmul %108, %107, %cst_80 {dimension_numbers = #tpu.dot_dimension_numbers<[1], [0], [0], [1], [0, 0, 1, 1], [], []>} : vector<28x32xbf16>, vector<32x96xbf16>, vector<28x96xf32> -> vector<28x96xf32>
    %110 = vector.extract_strided_slice %109 {offsets = [0, 0], sizes = [28, 16], strides = [1, 1]} : vector<28x96xf32> to vector<28x16xf32>
    %111 = vector.extract_strided_slice %109 {offsets = [0, 32], sizes = [28, 16], strides = [1, 1]} : vector<28x96xf32> to vector<28x16xf32>
    %112 = vector.extract_strided_slice %109 {offsets = [0, 64], sizes = [28, 16], strides = [1, 1]} : vector<28x96xf32> to vector<28x16xf32>
    %113 = arith.truncf %110 : vector<28x16xf32> to vector<28x16xbf16>
    %114 = arith.truncf %111 : vector<28x16xf32> to vector<28x16xbf16>
    %cst_81 = arith.constant dense<0.000000e+00> : vector<28x28xf32>
    %115 = tpu.matmul %113, %114, %cst_81 {dimension_numbers = #tpu.dot_dimension_numbers<[1], [1], [0], [0], [0, 0, 1, 0], [], []>} : vector<28x16xbf16>, vector<28x16xbf16>, vector<28x28xf32> -> vector<28x28xf32>
    %116 = arith.addf %115, %105 : vector<28x28xf32>
    %cst_82 = arith.constant dense<0xFF800000> : vector<28xf32>
    %117 = vector.multi_reduction <maximumf>, %116, %cst_82 [1] : vector<28x28xf32> to vector<28xf32>
    %118 = vector.shape_cast %117 : vector<28xf32> to vector<28x1xf32>
    %119 = vector.broadcast %118 : vector<28x1xf32> to vector<28x28xf32>
    %120 = arith.subf %116, %119 : vector<28x28xf32>
    %121 = math.exp %120 : vector<28x28xf32>
    %cst_83 = arith.constant dense<0.000000e+00> : vector<28xf32>
    %122 = vector.multi_reduction <add>, %121, %cst_83 [1] : vector<28x28xf32> to vector<28xf32>
    %123 = vector.shape_cast %122 : vector<28xf32> to vector<28x1xf32>
    %124 = tpu.reciprocal %123 {approx = true} : vector<28x1xf32> -> vector<28x1xf32>
    %125 = vector.broadcast %124 : vector<28x1xf32> to vector<28x28xf32>
    %126 = arith.mulf %121, %125 : vector<28x28xf32>
    %127 = arith.truncf %126 : vector<28x28xf32> to vector<28x28xbf16>
    %128 = arith.truncf %112 : vector<28x16xf32> to vector<28x16xbf16>
    %cst_84 = arith.constant dense<0.000000e+00> : vector<28x16xf32>
    %129 = tpu.matmul %127, %128, %cst_84 {dimension_numbers = #tpu.dot_dimension_numbers<[1], [0], [0], [1], [0, 0, 1, 1], [], []>} : vector<28x28xbf16>, vector<28x16xbf16>, vector<28x16xf32> -> vector<28x16xf32>
    %130 = vector.extract_strided_slice %109 {offsets = [0, 16], sizes = [28, 16], strides = [1, 1]} : vector<28x96xf32> to vector<28x16xf32>
    %131 = vector.extract_strided_slice %109 {offsets = [0, 48], sizes = [28, 16], strides = [1, 1]} : vector<28x96xf32> to vector<28x16xf32>
    %132 = vector.extract_strided_slice %109 {offsets = [0, 80], sizes = [28, 16], strides = [1, 1]} : vector<28x96xf32> to vector<28x16xf32>
    %133 = arith.truncf %130 : vector<28x16xf32> to vector<28x16xbf16>
    %134 = arith.truncf %131 : vector<28x16xf32> to vector<28x16xbf16>
    %cst_85 = arith.constant dense<0.000000e+00> : vector<28x28xf32>
    %135 = tpu.matmul %133, %134, %cst_85 {dimension_numbers = #tpu.dot_dimension_numbers<[1], [1], [0], [0], [0, 0, 1, 0], [], []>} : vector<28x16xbf16>, vector<28x16xbf16>, vector<28x28xf32> -> vector<28x28xf32>
    %136 = arith.addf %135, %105 : vector<28x28xf32>
    %cst_86 = arith.constant dense<0xFF800000> : vector<28xf32>
    %137 = vector.multi_reduction <maximumf>, %136, %cst_86 [1] : vector<28x28xf32> to vector<28xf32>
    %138 = vector.shape_cast %137 : vector<28xf32> to vector<28x1xf32>
    %139 = vector.broadcast %138 : vector<28x1xf32> to vector<28x28xf32>
    %140 = arith.subf %136, %139 : vector<28x28xf32>
    %141 = math.exp %140 : vector<28x28xf32>
    %cst_87 = arith.constant dense<0.000000e+00> : vector<28xf32>
    %142 = vector.multi_reduction <add>, %141, %cst_87 [1] : vector<28x28xf32> to vector<28xf32>
    %143 = vector.shape_cast %142 : vector<28xf32> to vector<28x1xf32>
    %144 = tpu.reciprocal %143 {approx = true} : vector<28x1xf32> -> vector<28x1xf32>
    %145 = vector.broadcast %144 : vector<28x1xf32> to vector<28x28xf32>
    %146 = arith.mulf %141, %145 : vector<28x28xf32>
    %147 = arith.truncf %146 : vector<28x28xf32> to vector<28x28xbf16>
    %148 = arith.truncf %132 : vector<28x16xf32> to vector<28x16xbf16>
    %cst_88 = arith.constant dense<0.000000e+00> : vector<28x16xf32>
    %149 = tpu.matmul %147, %148, %cst_88 {dimension_numbers = #tpu.dot_dimension_numbers<[1], [0], [0], [1], [0, 0, 1, 1], [], []>} : vector<28x28xbf16>, vector<28x16xbf16>, vector<28x16xf32> -> vector<28x16xf32>
    %150 = tpu.concatenate %129, %149 in 1 : vector<28x16xf32>, vector<28x16xf32> -> vector<28x32xf32>
    %c0_89 = arith.constant 0 : index
    %c0_90 = arith.constant 0 : index
    %c0_91 = arith.constant 0 : index
    %151 = vector.load %arg19[%c0_89, %c0_90, %c0_91] : memref<2x32x32xbf16, #tpu.memory_space<vmem>>, vector<1x32x32xbf16>
    %152 = vector.shape_cast %151 : vector<1x32x32xbf16> to vector<32x32xbf16>
    %153 = arith.truncf %150 : vector<28x32xf32> to vector<28x32xbf16>
    %cst_92 = arith.constant dense<0.000000e+00> : vector<28x32xf32>
    %154 = tpu.matmul %153, %152, %cst_92 {dimension_numbers = #tpu.dot_dimension_numbers<[1], [0], [0], [1], [0, 0, 1, 1], [], []>} : vector<28x32xbf16>, vector<32x32xbf16>, vector<28x32xf32> -> vector<28x32xf32>
    %c0_93 = arith.constant 0 : index
    %c0_94 = arith.constant 0 : index
    %c0_95 = arith.constant 0 : index
    %155 = vector.load %arg20[%c0_93, %c0_94, %c0_95] : memref<2x1x32xf32, #tpu.memory_space<vmem>>, vector<1x1x32xf32>
    %156 = vector.shape_cast %155 : vector<1x1x32xf32> to vector<1x32xf32>
    %157 = vector.broadcast %156 : vector<1x32xf32> to vector<28x32xf32>
    %158 = arith.addf %154, %157 : vector<28x32xf32>
    %159 = arith.addf %158, %104 : vector<28x32xf32>
    %c0_96 = arith.constant 0 : index
    %c0_97 = arith.constant 0 : index
    %c0_98 = arith.constant 0 : index
    %160 = vector.load %arg21[%c0_96, %c0_97, %c0_98] : memref<2x1x32xf32, #tpu.memory_space<vmem>>, vector<1x1x32xf32>
    %161 = vector.shape_cast %160 : vector<1x1x32xf32> to vector<1x32xf32>
    %c0_99 = arith.constant 0 : index
    %c0_100 = arith.constant 0 : index
    %c0_101 = arith.constant 0 : index
    %162 = vector.load %arg22[%c0_99, %c0_100, %c0_101] : memref<2x1x32xf32, #tpu.memory_space<vmem>>, vector<1x1x32xf32>
    %163 = vector.shape_cast %162 : vector<1x1x32xf32> to vector<1x32xf32>
    %cst_102 = arith.constant dense<0.000000e+00> : vector<28xf32>
    %164 = vector.multi_reduction <add>, %159, %cst_102 [1] : vector<28x32xf32> to vector<28xf32>
    %165 = vector.shape_cast %164 : vector<28xf32> to vector<28x1xf32>
    %cst_103 = arith.constant 3.200000e+01 : f32
    %166 = vector.broadcast %cst_103 : f32 to vector<28x1xf32>
    %167 = arith.divf %165, %166 : vector<28x1xf32>
    %168 = vector.broadcast %167 : vector<28x1xf32> to vector<28x32xf32>
    %169 = arith.subf %159, %168 : vector<28x32xf32>
    %170 = arith.mulf %169, %169 : vector<28x32xf32>
    %cst_104 = arith.constant dense<0.000000e+00> : vector<28xf32>
    %171 = vector.multi_reduction <add>, %170, %cst_104 [1] : vector<28x32xf32> to vector<28xf32>
    %172 = vector.shape_cast %171 : vector<28xf32> to vector<28x1xf32>
    %cst_105 = arith.constant 3.200000e+01 : f32
    %173 = vector.broadcast %cst_105 : f32 to vector<28x1xf32>
    %174 = arith.divf %172, %173 : vector<28x1xf32>
    %175 = vector.broadcast %167 : vector<28x1xf32> to vector<28x32xf32>
    %176 = arith.subf %159, %175 : vector<28x32xf32>
    %cst_106 = arith.constant 9.99999997E-7 : f32
    %177 = vector.broadcast %cst_106 : f32 to vector<28x1xf32>
    %178 = arith.addf %174, %177 : vector<28x1xf32>
    %179 = math.rsqrt %178 : vector<28x1xf32>
    %180 = vector.broadcast %179 : vector<28x1xf32> to vector<28x32xf32>
    %181 = arith.mulf %176, %180 : vector<28x32xf32>
    %182 = vector.broadcast %161 : vector<1x32xf32> to vector<28x32xf32>
    %183 = arith.mulf %181, %182 : vector<28x32xf32>
    %184 = vector.broadcast %163 : vector<1x32xf32> to vector<28x32xf32>
    %185 = arith.addf %183, %184 : vector<28x32xf32>
    %c0_107 = arith.constant 0 : index
    %c0_108 = arith.constant 0 : index
    %c0_109 = arith.constant 0 : index
    %186 = vector.load %arg23[%c0_107, %c0_108, %c0_109] : memref<2x32x64xbf16, #tpu.memory_space<vmem>>, vector<1x32x64xbf16>
    %187 = vector.shape_cast %186 : vector<1x32x64xbf16> to vector<32x64xbf16>
    %188 = arith.truncf %185 : vector<28x32xf32> to vector<28x32xbf16>
    %cst_110 = arith.constant dense<0.000000e+00> : vector<28x64xf32>
    %189 = tpu.matmul %188, %187, %cst_110 {dimension_numbers = #tpu.dot_dimension_numbers<[1], [0], [0], [1], [0, 0, 1, 1], [], []>} : vector<28x32xbf16>, vector<32x64xbf16>, vector<28x64xf32> -> vector<28x64xf32>
    %c0_111 = arith.constant 0 : index
    %c0_112 = arith.constant 0 : index
    %c0_113 = arith.constant 0 : index
    %190 = vector.load %arg24[%c0_111, %c0_112, %c0_113] : memref<2x1x64xf32, #tpu.memory_space<vmem>>, vector<1x1x64xf32>
    %191 = vector.shape_cast %190 : vector<1x1x64xf32> to vector<1x64xf32>
    %192 = vector.broadcast %191 : vector<1x64xf32> to vector<28x64xf32>
    %193 = arith.addf %189, %192 : vector<28x64xf32>
    %cst_114 = arith.constant 5.000000e-01 : f32
    %194 = vector.broadcast %cst_114 : f32 to vector<28x64xf32>
    %195 = arith.mulf %194, %193 : vector<28x64xf32>
    %cst_115 = arith.constant 4.471500e-02 : f32
    %196 = vector.broadcast %cst_115 : f32 to vector<28x64xf32>
    %197 = arith.mulf %196, %193 : vector<28x64xf32>
    %198 = arith.mulf %197, %193 : vector<28x64xf32>
    %199 = arith.mulf %198, %193 : vector<28x64xf32>
    %200 = arith.addf %193, %199 : vector<28x64xf32>
    %cst_116 = arith.constant 0.797884583 : f32
    %201 = vector.broadcast %cst_116 : f32 to vector<28x64xf32>
    %202 = arith.mulf %201, %200 : vector<28x64xf32>
    %203 = math.tanh %202 : vector<28x64xf32>
    %cst_117 = arith.constant 1.000000e+00 : f32
    %204 = vector.broadcast %cst_117 : f32 to vector<28x64xf32>
    %205 = arith.addf %204, %203 : vector<28x64xf32>
    %206 = arith.mulf %195, %205 : vector<28x64xf32>
    %c0_118 = arith.constant 0 : index
    %c0_119 = arith.constant 0 : index
    %c0_120 = arith.constant 0 : index
    %207 = vector.load %arg25[%c0_118, %c0_119, %c0_120] : memref<2x64x32xbf16, #tpu.memory_space<vmem>>, vector<1x64x32xbf16>
    %208 = vector.shape_cast %207 : vector<1x64x32xbf16> to vector<64x32xbf16>
    %209 = arith.truncf %206 : vector<28x64xf32> to vector<28x64xbf16>
    %cst_121 = arith.constant dense<0.000000e+00> : vector<28x32xf32>
    %210 = tpu.matmul %209, %208, %cst_121 {dimension_numbers = #tpu.dot_dimension_numbers<[1], [0], [0], [1], [0, 0, 1, 1], [], []>} : vector<28x64xbf16>, vector<64x32xbf16>, vector<28x32xf32> -> vector<28x32xf32>
    %c0_122 = arith.constant 0 : index
    %c0_123 = arith.constant 0 : index
    %c0_124 = arith.constant 0 : index
    %211 = vector.load %arg26[%c0_122, %c0_123, %c0_124] : memref<2x1x32xf32, #tpu.memory_space<vmem>>, vector<1x1x32xf32>
    %212 = vector.shape_cast %211 : vector<1x1x32xf32> to vector<1x32xf32>
    %213 = vector.broadcast %212 : vector<1x32xf32> to vector<28x32xf32>
    %214 = arith.addf %210, %213 : vector<28x32xf32>
    %215 = arith.addf %214, %185 : vector<28x32xf32>
    %c0_125 = arith.constant 0 : index
    %c0_126 = arith.constant 0 : index
    %c0_127 = arith.constant 0 : index
    %216 = vector.load %arg27[%c0_125, %c0_126, %c0_127] : memref<2x1x32xf32, #tpu.memory_space<vmem>>, vector<1x1x32xf32>
    %217 = vector.shape_cast %216 : vector<1x1x32xf32> to vector<1x32xf32>
    %c0_128 = arith.constant 0 : index
    %c0_129 = arith.constant 0 : index
    %c0_130 = arith.constant 0 : index
    %218 = vector.load %arg28[%c0_128, %c0_129, %c0_130] : memref<2x1x32xf32, #tpu.memory_space<vmem>>, vector<1x1x32xf32>
    %219 = vector.shape_cast %218 : vector<1x1x32xf32> to vector<1x32xf32>
    %cst_131 = arith.constant dense<0.000000e+00> : vector<28xf32>
    %220 = vector.multi_reduction <add>, %215, %cst_131 [1] : vector<28x32xf32> to vector<28xf32>
    %221 = vector.shape_cast %220 : vector<28xf32> to vector<28x1xf32>
    %cst_132 = arith.constant 3.200000e+01 : f32
    %222 = vector.broadcast %cst_132 : f32 to vector<28x1xf32>
    %223 = arith.divf %221, %222 : vector<28x1xf32>
    %224 = vector.broadcast %223 : vector<28x1xf32> to vector<28x32xf32>
    %225 = arith.subf %215, %224 : vector<28x32xf32>
    %226 = arith.mulf %225, %225 : vector<28x32xf32>
    %cst_133 = arith.constant dense<0.000000e+00> : vector<28xf32>
    %227 = vector.multi_reduction <add>, %226, %cst_133 [1] : vector<28x32xf32> to vector<28xf32>
    %228 = vector.shape_cast %227 : vector<28xf32> to vector<28x1xf32>
    %cst_134 = arith.constant 3.200000e+01 : f32
    %229 = vector.broadcast %cst_134 : f32 to vector<28x1xf32>
    %230 = arith.divf %228, %229 : vector<28x1xf32>
    %231 = vector.broadcast %223 : vector<28x1xf32> to vector<28x32xf32>
    %232 = arith.subf %215, %231 : vector<28x32xf32>
    %cst_135 = arith.constant 9.99999997E-7 : f32
    %233 = vector.broadcast %cst_135 : f32 to vector<28x1xf32>
    %234 = arith.addf %230, %233 : vector<28x1xf32>
    %235 = math.rsqrt %234 : vector<28x1xf32>
    %236 = vector.broadcast %235 : vector<28x1xf32> to vector<28x32xf32>
    %237 = arith.mulf %232, %236 : vector<28x32xf32>
    %238 = vector.broadcast %217 : vector<1x32xf32> to vector<28x32xf32>
    %239 = arith.mulf %237, %238 : vector<28x32xf32>
    %240 = vector.broadcast %219 : vector<1x32xf32> to vector<28x32xf32>
    %241 = arith.addf %239, %240 : vector<28x32xf32>
    %c1_136 = arith.constant 1 : index
    %c0_137 = arith.constant 0 : index
    %c0_138 = arith.constant 0 : index
    %242 = vector.load %arg18[%c1_136, %c0_137, %c0_138] : memref<2x32x96xbf16, #tpu.memory_space<vmem>>, vector<1x32x96xbf16>
    %243 = vector.shape_cast %242 : vector<1x32x96xbf16> to vector<32x96xbf16>
    %244 = arith.truncf %241 : vector<28x32xf32> to vector<28x32xbf16>
    %cst_139 = arith.constant dense<0.000000e+00> : vector<28x96xf32>
    %245 = tpu.matmul %244, %243, %cst_139 {dimension_numbers = #tpu.dot_dimension_numbers<[1], [0], [0], [1], [0, 0, 1, 1], [], []>} : vector<28x32xbf16>, vector<32x96xbf16>, vector<28x96xf32> -> vector<28x96xf32>
    %246 = vector.extract_strided_slice %245 {offsets = [0, 0], sizes = [28, 16], strides = [1, 1]} : vector<28x96xf32> to vector<28x16xf32>
    %247 = vector.extract_strided_slice %245 {offsets = [0, 32], sizes = [28, 16], strides = [1, 1]} : vector<28x96xf32> to vector<28x16xf32>
    %248 = vector.extract_strided_slice %245 {offsets = [0, 64], sizes = [28, 16], strides = [1, 1]} : vector<28x96xf32> to vector<28x16xf32>
    %249 = arith.truncf %246 : vector<28x16xf32> to vector<28x16xbf16>
    %250 = arith.truncf %247 : vector<28x16xf32> to vector<28x16xbf16>
    %cst_140 = arith.constant dense<0.000000e+00> : vector<28x28xf32>
    %251 = tpu.matmul %249, %250, %cst_140 {dimension_numbers = #tpu.dot_dimension_numbers<[1], [1], [0], [0], [0, 0, 1, 0], [], []>} : vector<28x16xbf16>, vector<28x16xbf16>, vector<28x28xf32> -> vector<28x28xf32>
    %252 = arith.addf %251, %105 : vector<28x28xf32>
    %cst_141 = arith.constant dense<0xFF800000> : vector<28xf32>
    %253 = vector.multi_reduction <maximumf>, %252, %cst_141 [1] : vector<28x28xf32> to vector<28xf32>
    %254 = vector.shape_cast %253 : vector<28xf32> to vector<28x1xf32>
    %255 = vector.broadcast %254 : vector<28x1xf32> to vector<28x28xf32>
    %256 = arith.subf %252, %255 : vector<28x28xf32>
    %257 = math.exp %256 : vector<28x28xf32>
    %cst_142 = arith.constant dense<0.000000e+00> : vector<28xf32>
    %258 = vector.multi_reduction <add>, %257, %cst_142 [1] : vector<28x28xf32> to vector<28xf32>
    %259 = vector.shape_cast %258 : vector<28xf32> to vector<28x1xf32>
    %260 = tpu.reciprocal %259 {approx = true} : vector<28x1xf32> -> vector<28x1xf32>
    %261 = vector.broadcast %260 : vector<28x1xf32> to vector<28x28xf32>
    %262 = arith.mulf %257, %261 : vector<28x28xf32>
    %263 = arith.truncf %262 : vector<28x28xf32> to vector<28x28xbf16>
    %264 = arith.truncf %248 : vector<28x16xf32> to vector<28x16xbf16>
    %cst_143 = arith.constant dense<0.000000e+00> : vector<28x16xf32>
    %265 = tpu.matmul %263, %264, %cst_143 {dimension_numbers = #tpu.dot_dimension_numbers<[1], [0], [0], [1], [0, 0, 1, 1], [], []>} : vector<28x28xbf16>, vector<28x16xbf16>, vector<28x16xf32> -> vector<28x16xf32>
    %266 = vector.extract_strided_slice %245 {offsets = [0, 16], sizes = [28, 16], strides = [1, 1]} : vector<28x96xf32> to vector<28x16xf32>
    %267 = vector.extract_strided_slice %245 {offsets = [0, 48], sizes = [28, 16], strides = [1, 1]} : vector<28x96xf32> to vector<28x16xf32>
    %268 = vector.extract_strided_slice %245 {offsets = [0, 80], sizes = [28, 16], strides = [1, 1]} : vector<28x96xf32> to vector<28x16xf32>
    %269 = arith.truncf %266 : vector<28x16xf32> to vector<28x16xbf16>
    %270 = arith.truncf %267 : vector<28x16xf32> to vector<28x16xbf16>
    %cst_144 = arith.constant dense<0.000000e+00> : vector<28x28xf32>
    %271 = tpu.matmul %269, %270, %cst_144 {dimension_numbers = #tpu.dot_dimension_numbers<[1], [1], [0], [0], [0, 0, 1, 0], [], []>} : vector<28x16xbf16>, vector<28x16xbf16>, vector<28x28xf32> -> vector<28x28xf32>
    %272 = arith.addf %271, %105 : vector<28x28xf32>
    %cst_145 = arith.constant dense<0xFF800000> : vector<28xf32>
    %273 = vector.multi_reduction <maximumf>, %272, %cst_145 [1] : vector<28x28xf32> to vector<28xf32>
    %274 = vector.shape_cast %273 : vector<28xf32> to vector<28x1xf32>
    %275 = vector.broadcast %274 : vector<28x1xf32> to vector<28x28xf32>
    %276 = arith.subf %272, %275 : vector<28x28xf32>
    %277 = math.exp %276 : vector<28x28xf32>
    %cst_146 = arith.constant dense<0.000000e+00> : vector<28xf32>
    %278 = vector.multi_reduction <add>, %277, %cst_146 [1] : vector<28x28xf32> to vector<28xf32>
    %279 = vector.shape_cast %278 : vector<28xf32> to vector<28x1xf32>
    %280 = tpu.reciprocal %279 {approx = true} : vector<28x1xf32> -> vector<28x1xf32>
    %281 = vector.broadcast %280 : vector<28x1xf32> to vector<28x28xf32>
    %282 = arith.mulf %277, %281 : vector<28x28xf32>
    %283 = arith.truncf %282 : vector<28x28xf32> to vector<28x28xbf16>
    %284 = arith.truncf %268 : vector<28x16xf32> to vector<28x16xbf16>
    %cst_147 = arith.constant dense<0.000000e+00> : vector<28x16xf32>
    %285 = tpu.matmul %283, %284, %cst_147 {dimension_numbers = #tpu.dot_dimension_numbers<[1], [0], [0], [1], [0, 0, 1, 1], [], []>} : vector<28x28xbf16>, vector<28x16xbf16>, vector<28x16xf32> -> vector<28x16xf32>
    %286 = tpu.concatenate %265, %285 in 1 : vector<28x16xf32>, vector<28x16xf32> -> vector<28x32xf32>
    %c1_148 = arith.constant 1 : index
    %c0_149 = arith.constant 0 : index
    %c0_150 = arith.constant 0 : index
    %287 = vector.load %arg19[%c1_148, %c0_149, %c0_150] : memref<2x32x32xbf16, #tpu.memory_space<vmem>>, vector<1x32x32xbf16>
    %288 = vector.shape_cast %287 : vector<1x32x32xbf16> to vector<32x32xbf16>
    %289 = arith.truncf %286 : vector<28x32xf32> to vector<28x32xbf16>
    %cst_151 = arith.constant dense<0.000000e+00> : vector<28x32xf32>
    %290 = tpu.matmul %289, %288, %cst_151 {dimension_numbers = #tpu.dot_dimension_numbers<[1], [0], [0], [1], [0, 0, 1, 1], [], []>} : vector<28x32xbf16>, vector<32x32xbf16>, vector<28x32xf32> -> vector<28x32xf32>
    %c1_152 = arith.constant 1 : index
    %c0_153 = arith.constant 0 : index
    %c0_154 = arith.constant 0 : index
    %291 = vector.load %arg20[%c1_152, %c0_153, %c0_154] : memref<2x1x32xf32, #tpu.memory_space<vmem>>, vector<1x1x32xf32>
    %292 = vector.shape_cast %291 : vector<1x1x32xf32> to vector<1x32xf32>
    %293 = vector.broadcast %292 : vector<1x32xf32> to vector<28x32xf32>
    %294 = arith.addf %290, %293 : vector<28x32xf32>
    %295 = arith.addf %294, %241 : vector<28x32xf32>
    %c1_155 = arith.constant 1 : index
    %c0_156 = arith.constant 0 : index
    %c0_157 = arith.constant 0 : index
    %296 = vector.load %arg21[%c1_155, %c0_156, %c0_157] : memref<2x1x32xf32, #tpu.memory_space<vmem>>, vector<1x1x32xf32>
    %297 = vector.shape_cast %296 : vector<1x1x32xf32> to vector<1x32xf32>
    %c1_158 = arith.constant 1 : index
    %c0_159 = arith.constant 0 : index
    %c0_160 = arith.constant 0 : index
    %298 = vector.load %arg22[%c1_158, %c0_159, %c0_160] : memref<2x1x32xf32, #tpu.memory_space<vmem>>, vector<1x1x32xf32>
    %299 = vector.shape_cast %298 : vector<1x1x32xf32> to vector<1x32xf32>
    %cst_161 = arith.constant dense<0.000000e+00> : vector<28xf32>
    %300 = vector.multi_reduction <add>, %295, %cst_161 [1] : vector<28x32xf32> to vector<28xf32>
    %301 = vector.shape_cast %300 : vector<28xf32> to vector<28x1xf32>
    %cst_162 = arith.constant 3.200000e+01 : f32
    %302 = vector.broadcast %cst_162 : f32 to vector<28x1xf32>
    %303 = arith.divf %301, %302 : vector<28x1xf32>
    %304 = vector.broadcast %303 : vector<28x1xf32> to vector<28x32xf32>
    %305 = arith.subf %295, %304 : vector<28x32xf32>
    %306 = arith.mulf %305, %305 : vector<28x32xf32>
    %cst_163 = arith.constant dense<0.000000e+00> : vector<28xf32>
    %307 = vector.multi_reduction <add>, %306, %cst_163 [1] : vector<28x32xf32> to vector<28xf32>
    %308 = vector.shape_cast %307 : vector<28xf32> to vector<28x1xf32>
    %cst_164 = arith.constant 3.200000e+01 : f32
    %309 = vector.broadcast %cst_164 : f32 to vector<28x1xf32>
    %310 = arith.divf %308, %309 : vector<28x1xf32>
    %311 = vector.broadcast %303 : vector<28x1xf32> to vector<28x32xf32>
    %312 = arith.subf %295, %311 : vector<28x32xf32>
    %cst_165 = arith.constant 9.99999997E-7 : f32
    %313 = vector.broadcast %cst_165 : f32 to vector<28x1xf32>
    %314 = arith.addf %310, %313 : vector<28x1xf32>
    %315 = math.rsqrt %314 : vector<28x1xf32>
    %316 = vector.broadcast %315 : vector<28x1xf32> to vector<28x32xf32>
    %317 = arith.mulf %312, %316 : vector<28x32xf32>
    %318 = vector.broadcast %297 : vector<1x32xf32> to vector<28x32xf32>
    %319 = arith.mulf %317, %318 : vector<28x32xf32>
    %320 = vector.broadcast %299 : vector<1x32xf32> to vector<28x32xf32>
    %321 = arith.addf %319, %320 : vector<28x32xf32>
    %c1_166 = arith.constant 1 : index
    %c0_167 = arith.constant 0 : index
    %c0_168 = arith.constant 0 : index
    %322 = vector.load %arg23[%c1_166, %c0_167, %c0_168] : memref<2x32x64xbf16, #tpu.memory_space<vmem>>, vector<1x32x64xbf16>
    %323 = vector.shape_cast %322 : vector<1x32x64xbf16> to vector<32x64xbf16>
    %324 = arith.truncf %321 : vector<28x32xf32> to vector<28x32xbf16>
    %cst_169 = arith.constant dense<0.000000e+00> : vector<28x64xf32>
    %325 = tpu.matmul %324, %323, %cst_169 {dimension_numbers = #tpu.dot_dimension_numbers<[1], [0], [0], [1], [0, 0, 1, 1], [], []>} : vector<28x32xbf16>, vector<32x64xbf16>, vector<28x64xf32> -> vector<28x64xf32>
    %c1_170 = arith.constant 1 : index
    %c0_171 = arith.constant 0 : index
    %c0_172 = arith.constant 0 : index
    %326 = vector.load %arg24[%c1_170, %c0_171, %c0_172] : memref<2x1x64xf32, #tpu.memory_space<vmem>>, vector<1x1x64xf32>
    %327 = vector.shape_cast %326 : vector<1x1x64xf32> to vector<1x64xf32>
    %328 = vector.broadcast %327 : vector<1x64xf32> to vector<28x64xf32>
    %329 = arith.addf %325, %328 : vector<28x64xf32>
    %cst_173 = arith.constant 5.000000e-01 : f32
    %330 = vector.broadcast %cst_173 : f32 to vector<28x64xf32>
    %331 = arith.mulf %330, %329 : vector<28x64xf32>
    %cst_174 = arith.constant 4.471500e-02 : f32
    %332 = vector.broadcast %cst_174 : f32 to vector<28x64xf32>
    %333 = arith.mulf %332, %329 : vector<28x64xf32>
    %334 = arith.mulf %333, %329 : vector<28x64xf32>
    %335 = arith.mulf %334, %329 : vector<28x64xf32>
    %336 = arith.addf %329, %335 : vector<28x64xf32>
    %cst_175 = arith.constant 0.797884583 : f32
    %337 = vector.broadcast %cst_175 : f32 to vector<28x64xf32>
    %338 = arith.mulf %337, %336 : vector<28x64xf32>
    %339 = math.tanh %338 : vector<28x64xf32>
    %cst_176 = arith.constant 1.000000e+00 : f32
    %340 = vector.broadcast %cst_176 : f32 to vector<28x64xf32>
    %341 = arith.addf %340, %339 : vector<28x64xf32>
    %342 = arith.mulf %331, %341 : vector<28x64xf32>
    %c1_177 = arith.constant 1 : index
    %c0_178 = arith.constant 0 : index
    %c0_179 = arith.constant 0 : index
    %343 = vector.load %arg25[%c1_177, %c0_178, %c0_179] : memref<2x64x32xbf16, #tpu.memory_space<vmem>>, vector<1x64x32xbf16>
    %344 = vector.shape_cast %343 : vector<1x64x32xbf16> to vector<64x32xbf16>
    %345 = arith.truncf %342 : vector<28x64xf32> to vector<28x64xbf16>
    %cst_180 = arith.constant dense<0.000000e+00> : vector<28x32xf32>
    %346 = tpu.matmul %345, %344, %cst_180 {dimension_numbers = #tpu.dot_dimension_numbers<[1], [0], [0], [1], [0, 0, 1, 1], [], []>} : vector<28x64xbf16>, vector<64x32xbf16>, vector<28x32xf32> -> vector<28x32xf32>
    %c1_181 = arith.constant 1 : index
    %c0_182 = arith.constant 0 : index
    %c0_183 = arith.constant 0 : index
    %347 = vector.load %arg26[%c1_181, %c0_182, %c0_183] : memref<2x1x32xf32, #tpu.memory_space<vmem>>, vector<1x1x32xf32>
    %348 = vector.shape_cast %347 : vector<1x1x32xf32> to vector<1x32xf32>
    %349 = vector.broadcast %348 : vector<1x32xf32> to vector<28x32xf32>
    %350 = arith.addf %346, %349 : vector<28x32xf32>
    %351 = arith.addf %350, %321 : vector<28x32xf32>
    %c1_184 = arith.constant 1 : index
    %c0_185 = arith.constant 0 : index
    %c0_186 = arith.constant 0 : index
    %352 = vector.load %arg27[%c1_184, %c0_185, %c0_186] : memref<2x1x32xf32, #tpu.memory_space<vmem>>, vector<1x1x32xf32>
    %353 = vector.shape_cast %352 : vector<1x1x32xf32> to vector<1x32xf32>
    %c1_187 = arith.constant 1 : index
    %c0_188 = arith.constant 0 : index
    %c0_189 = arith.constant 0 : index
    %354 = vector.load %arg28[%c1_187, %c0_188, %c0_189] : memref<2x1x32xf32, #tpu.memory_space<vmem>>, vector<1x1x32xf32>
    %355 = vector.shape_cast %354 : vector<1x1x32xf32> to vector<1x32xf32>
    %cst_190 = arith.constant dense<0.000000e+00> : vector<28xf32>
    %356 = vector.multi_reduction <add>, %351, %cst_190 [1] : vector<28x32xf32> to vector<28xf32>
    %357 = vector.shape_cast %356 : vector<28xf32> to vector<28x1xf32>
    %cst_191 = arith.constant 3.200000e+01 : f32
    %358 = vector.broadcast %cst_191 : f32 to vector<28x1xf32>
    %359 = arith.divf %357, %358 : vector<28x1xf32>
    %360 = vector.broadcast %359 : vector<28x1xf32> to vector<28x32xf32>
    %361 = arith.subf %351, %360 : vector<28x32xf32>
    %362 = arith.mulf %361, %361 : vector<28x32xf32>
    %cst_192 = arith.constant dense<0.000000e+00> : vector<28xf32>
    %363 = vector.multi_reduction <add>, %362, %cst_192 [1] : vector<28x32xf32> to vector<28xf32>
    %364 = vector.shape_cast %363 : vector<28xf32> to vector<28x1xf32>
    %cst_193 = arith.constant 3.200000e+01 : f32
    %365 = vector.broadcast %cst_193 : f32 to vector<28x1xf32>
    %366 = arith.divf %364, %365 : vector<28x1xf32>
    %367 = vector.broadcast %359 : vector<28x1xf32> to vector<28x32xf32>
    %368 = arith.subf %351, %367 : vector<28x32xf32>
    %cst_194 = arith.constant 9.99999997E-7 : f32
    %369 = vector.broadcast %cst_194 : f32 to vector<28x1xf32>
    %370 = arith.addf %366, %369 : vector<28x1xf32>
    %371 = math.rsqrt %370 : vector<28x1xf32>
    %372 = vector.broadcast %371 : vector<28x1xf32> to vector<28x32xf32>
    %373 = arith.mulf %368, %372 : vector<28x32xf32>
    %374 = vector.broadcast %353 : vector<1x32xf32> to vector<28x32xf32>
    %375 = arith.mulf %373, %374 : vector<28x32xf32>
    %376 = vector.broadcast %355 : vector<1x32xf32> to vector<28x32xf32>
    %377 = arith.addf %375, %376 : vector<28x32xf32>
    %378 = vector.extract_strided_slice %377 {offsets = [0, 0], sizes = [16, 32], strides = [1, 1]} : vector<28x32xf32> to vector<16x32xf32>
    %c0_195 = arith.constant 0 : index
    %c0_196 = arith.constant 0 : index
    %c0_197 = arith.constant 0 : index
    %379 = vector.load %arg29[%c0_195, %c0_196, %c0_197] : memref<1x16x32xf32, #tpu.memory_space<vmem>>, vector<1x16x32xf32>
    %380 = vector.shape_cast %379 : vector<1x16x32xf32> to vector<16x32xf32>
    %381 = vector.shape_cast %378 : vector<16x32xf32> to vector<1x16x32xf32>
    tpu.vector_store %arg29[%c0_195, %c0_196, %c0_197], %381 {strides = array<i32>} : memref<1x16x32xf32, #tpu.memory_space<vmem>>, vector<1x16x32xf32>,
    return
  }
  func.func @transform_0(%arg0: i32) -> (i32, i32, i32) {
    %c0_i32 = arith.constant 0 : i32
    %c0_i32_0 = arith.constant 0 : i32
    %c0_i32_1 = arith.constant 0 : i32
    return %arg0, %c0_i32, %c0_i32_0 : i32, i32, i32
  }
  func.func @transform_1(%arg0: i32) -> (i32, i32, i32) {
    %c0_i32 = arith.constant 0 : i32
    %c0_i32_0 = arith.constant 0 : i32
    %c0_i32_1 = arith.constant 0 : i32
    return %arg0, %c0_i32, %c0_i32_0 : i32, i32, i32
  }
  func.func @transform_2(%arg0: i32) -> (i32, i32) {
    %c0_i32 = arith.constant 0 : i32
    %c0_i32_0 = arith.constant 0 : i32
    %c0_i32_1 = arith.constant 0 : i32
    return %c0_i32, %c0_i32_0 : i32, i32
  }
  func.func @transform_3(%arg0: i32) -> (i32, i32) {
    %c0_i32 = arith.constant 0 : i32
    %c0_i32_0 = arith.constant 0 : i32
    %c0_i32_1 = arith.constant 0 : i32
    return %c0_i32, %c0_i32_0 : i32, i32
  }
  func.func @transform_4(%arg0: i32) -> (i32, i32) {
    %c0_i32 = arith.constant 0 : i32
    %c0_i32_0 = arith.constant 0 : i32
    %c0_i32_1 = arith.constant 0 : i32
    return %c0_i32, %c0_i32_0 : i32, i32
  }
  func.func @transform_5(%arg0: i32) -> (i32, i32) {
    %c0_i32 = arith.constant 0 : i32
    %c0_i32_0 = arith.constant 0 : i32
    %c0_i32_1 = arith.constant 0 : i32
    return %c0_i32, %c0_i32_0 : i32, i32
  }
  func.func @transform_6(%arg0: i32) -> (i32, i32) {
    %c0_i32 = arith.constant 0 : i32
    %c0_i32_0 = arith.constant 0 : i32
    %c0_i32_1 = arith.constant 0 : i32
    return %c0_i32, %c0_i32_0 : i32, i32
  }
  func.func @transform_7(%arg0: i32) -> (i32, i32) {
    %c0_i32 = arith.constant 0 : i32
    %c0_i32_0 = arith.constant 0 : i32
    %c0_i32_1 = arith.constant 0 : i32
    return %c0_i32, %c0_i32_0 : i32, i32
  }
  func.func @transform_8(%arg0: i32) -> (i32, i32, i32) {
    %c0_i32 = arith.constant 0 : i32
    %c0_i32_0 = arith.constant 0 : i32
    %c0_i32_1 = arith.constant 0 : i32
    %c0_i32_2 = arith.constant 0 : i32
    return %c0_i32, %c0_i32_0, %c0_i32_1 : i32, i32, i32
  }
  func.func @transform_9(%arg0: i32) -> (i32, i32) {
    %c0_i32 = arith.constant 0 : i32
    %c0_i32_0 = arith.constant 0 : i32
    %c0_i32_1 = arith.constant 0 : i32
    return %c0_i32, %c0_i32_0 : i32, i32
  }
  func.func @transform_10(%arg0: i32) -> (i32, i32, i32) {
    %c0_i32 = arith.constant 0 : i32
    %c0_i32_0 = arith.constant 0 : i32
    %c0_i32_1 = arith.constant 0 : i32
    %c0_i32_2 = arith.constant 0 : i32
    return %c0_i32, %c0_i32_0, %c0_i32_1 : i32, i32, i32
  }
  func.func @transform_11(%arg0: i32) -> (i32, i32) {
    %c0_i32 = arith.constant 0 : i32
    %c0_i32_0 = arith.constant 0 : i32
    %c0_i32_1 = arith.constant 0 : i32
    return %c0_i32, %c0_i32_0 : i32, i32
  }
  func.func @transform_12(%arg0: i32) -> (i32, i32) {
    %c0_i32 = arith.constant 0 : i32
    %c0_i32_0 = arith.constant 0 : i32
    %c0_i32_1 = arith.constant 0 : i32
    return %c0_i32, %c0_i32_0 : i32, i32
  }
  func.func @transform_13(%arg0: i32) -> (i32, i32) {
    %c0_i32 = arith.constant 0 : i32
    %c0_i32_0 = arith.constant 0 : i32
    %c0_i32_1 = arith.constant 0 : i32
    return %c0_i32, %c0_i32_0 : i32, i32
  }
  func.func @transform_14(%arg0: i32) -> (i32, i32) {
    %c0_i32 = arith.constant 0 : i32
    %c0_i32_0 = arith.constant 0 : i32
    %c0_i32_1 = arith.constant 0 : i32
    return %c0_i32, %c0_i32_0 : i32, i32
  }
  func.func @transform_15(%arg0: i32) -> (i32, i32) {
    %c0_i32 = arith.constant 0 : i32
    %c0_i32_0 = arith.constant 0 : i32
    %c0_i32_1 = arith.constant 0 : i32
    return %c0_i32, %c0_i32_0 : i32, i32
  }
  func.func @transform_16(%arg0: i32) -> (i32, i32) {
    %c0_i32 = arith.constant 0 : i32
    %c0_i32_0 = arith.constant 0 : i32
    %c0_i32_1 = arith.constant 0 : i32
    return %c0_i32, %c0_i32_0 : i32, i32
  }
  func.func @transform_17(%arg0: i32) -> (i32, i32, i32) {
    %c0_i32 = arith.constant 0 : i32
    %c0_i32_0 = arith.constant 0 : i32
    %c0_i32_1 = arith.constant 0 : i32
    %c0_i32_2 = arith.constant 0 : i32
    return %c0_i32, %c0_i32_0, %c0_i32_1 : i32, i32, i32
  }
  func.func @transform_18(%arg0: i32) -> (i32, i32, i32) {
    %c0_i32 = arith.constant 0 : i32
    %c0_i32_0 = arith.constant 0 : i32
    %c0_i32_1 = arith.constant 0 : i32
    %c0_i32_2 = arith.constant 0 : i32
    return %c0_i32, %c0_i32_0, %c0_i32_1 : i32, i32, i32
  }
  func.func @transform_19(%arg0: i32) -> (i32, i32, i32) {
    %c0_i32 = arith.constant 0 : i32
    %c0_i32_0 = arith.constant 0 : i32
    %c0_i32_1 = arith.constant 0 : i32
    %c0_i32_2 = arith.constant 0 : i32
    return %c0_i32, %c0_i32_0, %c0_i32_1 : i32, i32, i32
  }
  func.func @transform_20(%arg0: i32) -> (i32, i32, i32) {
    %c0_i32 = arith.constant 0 : i32
    %c0_i32_0 = arith.constant 0 : i32
    %c0_i32_1 = arith.constant 0 : i32
    %c0_i32_2 = arith.constant 0 : i32
    return %c0_i32, %c0_i32_0, %c0_i32_1 : i32, i32, i32
  }
  func.func @transform_21(%arg0: i32) -> (i32, i32, i32) {
    %c0_i32 = arith.constant 0 : i32
    %c0_i32_0 = arith.constant 0 : i32
    %c0_i32_1 = arith.constant 0 : i32
    %c0_i32_2 = arith.constant 0 : i32
    return %c0_i32, %c0_i32_0, %c0_i32_1 : i32, i32, i32
  }
  func.func @transform_22(%arg0: i32) -> (i32, i32, i32) {
    %c0_i32 = arith.constant 0 : i32
    %c0_i32_0 = arith.constant 0 : i32
    %c0_i32_1 = arith.constant 0 : i32
    %c0_i32_2 = arith.constant 0 : i32
    return %c0_i32, %c0_i32_0, %c0_i32_1 : i32, i32, i32
  }
  func.func @transform_23(%arg0: i32) -> (i32, i32, i32) {
    %c0_i32 = arith.constant 0 : i32
    %c0_i32_0 = arith.constant 0 : i32
    %c0_i32_1 = arith.constant 0 : i32
    %c0_i32_2 = arith.constant 0 : i32
    return %c0_i32, %c0_i32_0, %c0_i32_1 : i32, i32, i32
  }
  func.func @transform_24(%arg0: i32) -> (i32, i32, i32) {
    %c0_i32 = arith.constant 0 : i32
    %c0_i32_0 = arith.constant 0 : i32
    %c0_i32_1 = arith.constant 0 : i32
    %c0_i32_2 = arith.constant 0 : i32
    return %c0_i32, %c0_i32_0, %c0_i32_1 : i32, i32, i32
  }
  func.func @transform_25(%arg0: i32) -> (i32, i32, i32) {
    %c0_i32 = arith.constant 0 : i32
    %c0_i32_0 = arith.constant 0 : i32
    %c0_i32_1 = arith.constant 0 : i32
    %c0_i32_2 = arith.constant 0 : i32
    return %c0_i32, %c0_i32_0, %c0_i32_1 : i32, i32, i32
  }
  func.func @transform_26(%arg0: i32) -> (i32, i32, i32) {
    %c0_i32 = arith.constant 0 : i32
    %c0_i32_0 = arith.constant 0 : i32
    %c0_i32_1 = arith.constant 0 : i32
    %c0_i32_2 = arith.constant 0 : i32
    return %c0_i32, %c0_i32_0, %c0_i32_1 : i32, i32, i32
  }
  func.func @transform_27(%arg0: i32) -> (i32, i32, i32) {
    %c0_i32 = arith.constant 0 : i32
    %c0_i32_0 = arith.constant 0 : i32
    %c0_i32_1 = arith.constant 0 : i32
    %c0_i32_2 = arith.constant 0 : i32
    return %c0_i32, %c0_i32_0, %c0_i32_1 : i32, i32, i32
  }
  func.func @transform_28(%arg0: i32) -> (i32, i32, i32) {
    %c0_i32 = arith.constant 0 : i32
    %c0_i32_0 = arith.constant 0 : i32
    %c0_i32_1 = arith.constant 0 : i32
    return %arg0, %c0_i32, %c0_i32_0 : i32, i32, i32
  }
}

</mosaic_0001>

<bundles_post_ra>
// kernel: encoder_forward.1
= control target key start
LH: loop header
LB: loop body
LE: loop exit
PB: predicated region body
PF: predicated region fallthrough
CT: control target
= control target key end

     0   :  { %s4851_s0 = inlined_call_operand.vmem [shape: f32[2,16,9], index: 0, kind: input, shape index: {}]   ;;  %s4852_s1 = inlined_call_operand.vmem [shape: f32[2,16,2], index: 1, kind: input, shape index: {}]   ;;  %s4853_s2 = inlined_call_operand.vmem [shape: bf16[9,32], index: 2, kind: input, shape index: {}]   ;;  %s4854_s3 = inlined_call_operand.vmem [shape: bf16[2,32], index: 3, kind: input, shape index: {}]   ;;  %s4855_s4 = inlined_call_operand.vmem [shape: f32[1,32], index: 4, kind: input, shape index: {}]   ;;  %s4856_s5 = inlined_call_operand.vmem [shape: f32[16,32], index: 5, kind: input, shape index: {}]   ;;  %s4857_s6 = inlined_call_operand.vmem [shape: bf16[32,16], index: 6, kind: input, shape index: {}]   ;;  %s4858_s7 = inlined_call_operand.vmem [shape: f32[1,16], index: 7, kind: input, shape index: {}]   ;;  %s4859_s8 = inlined_call_operand.vmem [shape: bf16[2,16,16], index: 8, kind: input, shape index: {}]   ;;  %s4860_s9 = inlined_call_operand.vmem [shape: f32[1,16], index: 9, kind: input, shape index: {}]   ;;  %s4861_s10 = inlined_call_operand.vmem [shape: bf16[2,16,16], index: 10, kind: input, shape index: {}]   ;;  %s4862_s11 = inlined_call_operand.vmem [shape: f32[1,16], index: 11, kind: input, shape index: {}]   ;;  %s4863_s12 = inlined_call_operand.vmem [shape: bf16[16,32], index: 12, kind: input, shape index: {}]   ;;  %s4864_s13 = inlined_call_operand.vmem [shape: f32[1,32], index: 13, kind: input, shape index: {}]   ;;  %s4865_s14 = inlined_call_operand.vmem [shape: f32[1,32], index: 14, kind: input, shape index: {}]   ;;  %s4866_s15 = inlined_call_operand.vmem [shape: f32[1,32], index: 15, kind: input, shape index: {}]   ;;  %s4867_s16 = inlined_call_operand.vmem [shape: f32[28,28], index: 16, kind: input, shape index: {}]   ;;  %s4868_s17 = inlined_call_operand.vmem [shape: bf16[2,32,96], index: 17, kind: input, shape index: {}]   ;;  %s4869_s18 = inlined_call_operand.vmem [shape: bf16[2,32,32], index: 18, kind: input, shape index: {}]   ;;  %s4870_s19 = inlined_call_operand.vmem [shape: f32[2,1,32], index: 19, kind: input, shape index: {}]   ;;  %s4871_s20 = inlined_call_operand.vmem [shape: f32[2,1,32], index: 20, kind: input, shape index: {}]   ;;  %s4872_s21 = inlined_call_operand.vmem [shape: f32[2,1,32], index: 21, kind: input, shape index: {}]   ;;  %s4873_s22 = inlined_call_operand.vmem [shape: bf16[2,32,64], index: 22, kind: input, shape index: {}]   ;;  %s4874_s23 = inlined_call_operand.vmem [shape: f32[2,1,64], index: 23, kind: input, shape index: {}]   ;;  %s4875_s24 = inlined_call_operand.vmem [shape: bf16[2,64,32], index: 24, kind: input, shape index: {}]   ;;  %s4876_s25 = inlined_call_operand.vmem [shape: f32[2,1,32], index: 25, kind: input, shape index: {}]   ;;  %s4877_s26 = inlined_call_operand.vmem [shape: f32[2,1,32], index: 26, kind: input, shape index: {}]   ;;  %s4878_s27 = inlined_call_operand.vmem [shape: f32[2,1,32], index: 27, kind: input, shape index: {}]   ;;  %s4879_s28 = inlined_call_operand.hbm [shape: f32[2,16,32], index: 28, kind: output, shape index: {}]  }
   0x1   :  { %4903 = sst [smem:[#allocation11_spill]] %s4851_s0 }
   0x2   :  { %4904 = sst [smem:[#allocation12_spill]] %s4852_s1 }
   0x3   :  { %4905 = sst [smem:[#allocation13_spill]] %s4853_s2 }
   0x4   :  { %4906 = sst [smem:[#allocation14_spill]] %s4854_s3 }
   0x5   :  { %4907 = sst [smem:[#allocation15_spill]] %s4855_s4 }
   0x6   :  { %4908 = sst [smem:[#allocation16_spill]] %s4856_s5 }
   0x7   :  { %4909 = sst [smem:[#allocation17_spill]] %s4857_s6 }
   0x8   :  { %4910 = sst [smem:[#allocation18_spill]] %s4858_s7 }
   0x9   :  { %4911 = sst [smem:[#allocation19_spill]] %s4859_s8 }
   0xa   :  { %4912 = sst [smem:[#allocation20_spill]] %s4860_s9 }
   0xb   :  { %4913 = sst [smem:[#allocation21_spill]] %s4861_s10 }
   0xc   :  { %4914 = sst [smem:[#allocation22_spill]] %s4862_s11 }
   0xd   :  { %4915 = sst [smem:[#allocation23_spill]] %s4863_s12 }
   0xe   :  { %4916 = sst [smem:[#allocation24_spill]] %s4864_s13 }
   0xf   :  { %4917 = sst [smem:[#allocation25_spill]] %s4865_s14 }
  0x10   :  { %33 = vsyncpa [#allocation5], 0 }
  0x11   :  { %35 = vsyncpa [#allocation5 + $0x1], 0  ;;  %s4228_s8 = smov 0   ;;  %s4230_s5 = smov 0  }
  0x12   :  { %s4232_s9 = smov 0   ;;  %s4234_s30 = smov 0  }
  0x13 LB: > { %4918 = sst [smem:[#allocation7_spill]] %s4065_s9  ;;  %s4249_s3 = sadd.s32 4294967295, %s4069_s30   ;;  %s4069_s30 = sphi %s4234_s30, %s4947_s30   ;;  %s4065_s9 = sphi %s4232_s9, %s4949_s9   ;;  %s4061_s5 = sphi %s4230_s5, %s4951_s5   ;;  %s4057_s8 = sphi %s4228_s8, %s4950_s8  }
  0x14   : > { %s3356_s6 = sadd.s32 4294967294, %s4069_s30   ;;  %s4253_s10 = sadd.s32 1, %s4069_s30  }
  0x15   : > { %4919 = sst [smem:[#allocation8_spill]] %s4253_s10  ;;  %s646_s0 = sadd.s32 1, %s4065_s9 }
  0x16   : > { %s643_s11 = ssub.s32 %s4069_s30, %s4253_s10  ;;  %p656_p0 = scmp.ne.s32.totalorder %s4065_s9, %s4061_s5 }
  0x17   : > { %p644_p1 = scmp.eq.s32.totalorder %s643_s11, 0  ;;  %p657_p2 = scmp.eq.s32.totalorder %s4249_s3, 1 }
  0x18   : > { %p662_p3 = scmp.ne.s32.totalorder %s4061_s5, %s4057_s8  ;;  %p663_p4 = scmp.eq.s32.totalorder %s3356_s6, 1 }
  0x19   : > { %s4264_s29 = scalar_select %p644_p1, %s4065_s9, %s646_s0  }
  0x1a   : > { %p4266_p5 = por %p657_p2, %p656_p0  ;;  %p4270_p6 = por %p663_p4, %p662_p3 }
  0x1b   : > { %4920 = sst [smem:[#allocation9_spill]] %s4264_s29  ;;  %p3359_p7 = scmp.ge.s32.totalorder %s4069_s30, 1 }
  0x1c   : > { %s4922_s7 = scalar_select %p4270_p6, 1, 0 }
  0x1d   : > { %p775_p8 = scmp.lt.s32.totalorder %s4069_s30, 3 }
  0x1e   : > { %4923 = sst [smem:[#allocation10_spill]] %s4922_s7 }
  0x1f   : > { %p776_p9 = pnand %p3359_p7, %p775_p8 }
  0x20   : > { %s4924_s4 = sld [smem:[#allocation14_spill]] (!%p776_p9)  ;;  %p854_p10 = scmp.lt.s32.totalorder (!%p776_p9), %s4249_s3, 1 }
  0x21   : > { %779 = sbr.rel (%p776_p9) target bundleno = 7391 (0x1cdf), region = 132  ;;  %s4925_s11 = sld [smem:[#allocation13_spill]] (!%p776_p9) }
  0x22   : > { %s4926_s0 = sld [smem:[#allocation12_spill]] (!%p776_p9) }
  0x23   : > { %s4927_s10 = sld [smem:[#allocation11_spill]] (!%p776_p9) }
  0x24   : > { %s4928_s29 = sld [smem:[#allocation17_spill]] (!%p776_p9) }
  0x25   : > { %s4929_s6 = sld [smem:[#allocation15_spill]] (!%p776_p9) }
  0x26   : > { %v872_v0 = vld [vmem:[%s4924_s4] sm:$0x1]  ;;  %vm885_vm0 = vcmask 1040384   ;;  %v4071_v1 = vmov 0.0   ;;  %vm939_vm1 = vcmask 1043456   ;;  %vm940_vm2 = vcmask 1044480  }
  0x27   : > { %3583 = vmatprep.subr.bf16.mxu0 %v4071_v1  ;;  %3589 = vmatprep.subr.bf16.mxu1 %v4071_v1  ;;  %v887_v2 = vsel %vm885_vm0, %v872_v0, 0  ;;  %v3857_v3 = vld [vmem:[%s4925_s11] sm:$0x1f]   ;;  %v4072_v4 = vmov 65535   ;;  %vm4073_vm3 = vmmov 0   ;;  %s855_s12 = scalar_select %p854_p10, %s4249_s3, 1 }
  0x28   : > { %3584 = vmatpush3.bf16.msra.mxu0 %v887_v2  ;;  %v941_v5 = vsel %vm939_vm1, 4294967295, %v4072_v4  ;;  %3585 = vmatprep.mubr.msk.bf16.mxu0 %vm4073_vm3, %v4071_v1  ;;  %vm881_vm4 = vcmask 15360   ;;  %vm935_vm5 = vcmask 72704   ;;  %s4930_s9 = sld [smem:[#allocation16_spill]]  ;;  %vm1015_vm6 = vcmask 261120   ;;  %s4889_s4 = smov 48  }
  0x29   : > { %3591 = vmatprep.mubr.msk.bf16.mxu1 %vm4073_vm3, %v4071_v1  ;;  %v942_v6 = vsel %vm940_vm2, %v941_v5, 0  ;;  %3595 = vmatprep.subr.bf16.mxu0 %v4071_v1  ;;  %s3493_s1 = sshll.u32 %s855_s12, 4  ;;  %vm1060_vm7 = vcmask 130048   ;;  %s4937_s12 = sld [smem:[#allocation22_spill]]  ;;  %vm1422_vm10 = vcmask 257024   ;;  %vm1633_vm11 = vcmask 228352  }
  0x2a   : > { %v944_v7 = vand.u32 %v3857_v3, %v942_v6  ;;  %s863_s11 = scalar_lea.vmem %s4926_s0, %s3493_s1  ;;  %s858_s7 = scalar_lea.vmem %s4927_s10, %s3493_s1  ;;  %v3858_v14 = vld [vmem:[%s4928_s29 + $0x8] sm:$0xff]   ;;  %v3859_v15 = vld [vmem:[%s4928_s29] sm:$0xff]   ;;  %vm1643_vm12 = vcmask 224256   ;;  %vm1692_vm13 = vcmask 1045504   ;;  %vm2258_vm14 = vcmask 523264  }
  0x2b   : > { %v870_v8 = vld [vmem:[%s863_s11] sm:$0xff]  ;;  %v871_v9 = vld [vmem:[%s863_s11 + $0x8] sm:$0xff]  ;;  %s4933_s1 = sld [smem:[#allocation18_spill]]  ;;  %s4944_s11 = smov 48  }
  0x2c   : > { %3590 = vmatpush3.bf16.msra.mxu1 %v944_v7  ;;  %v865_v10 = vld [vmem:[%s858_s7] sm:$0xff]  ;;  %v873_v11 = vpack.c.bf16 %v871_v9, %v870_v8  ;;  %v866_v12 = vld [vmem:[%s858_s7 + $0x8] sm:$0xff]  ;;  %s4934_s0 = sld [smem:[#allocation21_spill]]  ;;  %s4891_s7 = smov 112  }
  0x2d   : > { %3603 = vmatprep.subr.bf16.mxu1 %v4071_v1  ;;  %v869_v13 = vpack.c.bf16 %v866_v12, %v865_v10  ;;  %v3365_v16 = vld [vmem:[%s4929_s6] ss:$0 sm:$0xff]  ;;  %s4932_s6 = sld [smem:[#allocation19_spill]] }
  0x2e   : > { %3586 = vmatmul.mubr.msk.bf16.vlgmr.msra.gmra.mxu0 %vm881_vm4, %v873_v11  ;;  %s4931_s10 = smov %s4930_s9  ;;  %v987_v20 = vld [vmem:[%s4930_s9] sm:$0xff]  ;;  %s4938_s13 = sld [smem:[#allocation24_spill]] }
  0x2f   : > { %3592 = vmatmul.mubr.msk.bf16.vlgmr.msra.gmra.mxu1 %vm935_vm5, %v869_v13  ;;  %3599 = vmatprep.mubr.msk.bf16.mxu0 %vm4073_vm3, %v4071_v1  ;;  %v988_v28 = vld [vmem:[%s4931_s10 + $0x8] sm:$0xff]  ;;  %s4939_s14 = sld [smem:[#allocation25_spill]] }
  0x30   : > { %3605 = vmatprep.mubr.msk.bf16.mxu1 %vm4073_vm3, %v4071_v1  ;;  %3596 = vmatpush3.bf16.msra.mxu0 %v3858_v14 }
  0x31   : > { %3597 = vmatprep.subr.bf16.mxu0 %v4071_v1  ;;  %v3369_v43 = vld [vmem:[%s4933_s1] ss:$0 sm:$0xff]  ;;  %s4893_s1 = smov 80  }
  0x32   : > { %v3862_v54 = vld [vmem:[%s4934_s0 + $0x8] sm:$0xff]   ;;  %v3863_v55 = vld [vmem:[%s4934_s0] sm:$0xff]   ;;  %s3495_s0 = sshll.u32 %s4249_s3, 8 }
  0x33   : > { %v3860_v36 = vld [vmem:[%s4932_s6 + $0x8] sm:$0xff]   ;;  %v3861_v37 = vld [vmem:[%s4932_s6] sm:$0xff]   ;;  %s4935_s6 = sld [smem:[#allocation20_spill]] }
  0x34   : > { %3598 = vmatpush3.bf16.msra.mxu0 %v3859_v15  ;;  %3604 = vmatpush3.bf16.msra.mxu1 %v3860_v36 }
  0x35   : > { %3609 = vmatprep.subr.bf16.mxu0 %v4071_v1  ;;  %3615 = vmatprep.subr.bf16.mxu1 %v4071_v1 }
  0x39   : > { %v3379_v58 = vld [vmem:[%s4935_s6] ss:$0 sm:$0xff]  ;;  %s4936_s6 = sld [smem:[#allocation23_spill]] }
  0x3f   : > { %v3864_v9 = vld [vmem:[%s4936_s6] sm:$0xff]   ;;  %s4899_s6 = smov 96  }
  0xee   : > { %v923_v17 = vpop.f32.mrf.mxu0 }
  0xef   : > { %v924_v18 = vadd.f32 %v3365_v16, %v923_v17  ;;  %v980_v19 = vpop.f32.mrf.mxu1  ;;  %v3387_v17 = vld [vmem:[%s4937_s12] ss:$0 sm:$0xff]  ;;  %s4897_s12 = smov 64  }
  0xf0   : > { %v3587_v21 = vpop.f32.mrf.mxu0 }
  0xf1   : > { %v981_v22 = vadd.f32 %v980_v19, %v924_v18  ;;  %v3593_v23 = vpop.f32.mrf.mxu1 }
  0xf2   : > { %v926_v24 = vpop.f32.mrf.mxu0 }
  0xf3   : > { %v989_v25 = vadd.f32 %v987_v20, %v981_v22  ;;  %v927_v26 = vadd.f32 %v3365_v16, %v926_v24  ;;  %v983_v27 = vpop.f32.mrf.mxu1 }
  0xf4   : > { %v3588_v29 = vpop.f32.mrf.mxu0 }
  0xf5   : > { %v984_v30 = vadd.f32 %v983_v27, %v927_v26  ;;  %v3594_v31 = vpop.f32.mrf.mxu1  ;;  %v1413_v32 = vsel %vm1015_vm6, %v989_v25, 0.0 }
  0xf6   : > { %1414 = vadd.xlane.f32.xlu0 %v1413_v32 }
  0xf7   : > { %v4320_v33 = vadd.f32 %v988_v28, %v984_v30 }
  0xf9   : > { %v995_v34 = vpack.c.bf16 %v4320_v33, %v989_v25  ;;  %v1416_v35 = vsel %vm1015_vm6, %v4320_v33, 0.0 }
  0xfa   : > { %1417 = vadd.xlane.f32.xlu0 %v1416_v35 }
  0xfb   : > { %3600 = vmatmul.mubr.msk.bf16.vlgmr.msra.gmra.mxu0 %vm1015_vm6, %v995_v34 }
  0xfc   : > { %3611 = vmatprep.mubr.msk.bf16.mxu0 %vm4073_vm3, %v4071_v1  ;;  %3610 = vmatpush3.bf16.msra.mxu0 %v3861_v37 }
  0xfd   : > { %3621 = vmatprep.subr.bf16.mxu0 %v4071_v1 }
 0x17f   : > { %v1415_v38 = vpop.xlane.xlu0 %1414 }
 0x180   : > { %v1427_v39 = vmul.f32 0.03125, %v1415_v38 }
 0x182   : > { %v4336_v40 = vsub.f32 %v989_v25, %v1427_v39 }
 0x184   : > { %v1435_v41 = vmul.f32 %v4336_v40, %v4336_v40 }
 0x186   : > { %v1439_v42 = vsel %vm1015_vm6, %v1435_v41, 0.0 }
 0x187   : > { %1440 = vadd.xlane.f32.xlu0 %v1439_v42 }
 0x1bb   : > { %v1053_v44 = vpop.f32.mrf.mxu0 }
 0x1bc   : > { %v1054_v45 = vadd.f32 %v3369_v43, %v1053_v44 }
 0x1bd   : > { %v3601_v46 = vpop.f32.mrf.mxu0 }
 0x1be   : > { %1061 = vst.msk [vmem:[#allocation2] sm:$0xff] %vm1060_vm7, %v1054_v45  ;;  %v1418_v45 = vpop.xlane.xlu0 %1417 }
 0x1bf   : > { %v1056_v47 = vpop.f32.mrf.mxu0  ;;  %v1428_v46 = vmul.f32 0.03125, %v1418_v45 }
 0x1c0   : > { %v1057_v48 = vadd.f32 %v3369_v43, %v1056_v47 }
 0x1c1   : > { %v3602_v49 = vpop.f32.mrf.mxu0  ;;  %v1432_v47 = vsub.f32 %v4320_v33, %v1428_v46 }
 0x1c2   : > { %1062 = vst.msk [vmem:[#allocation2 + $0x8] sm:$0xff] %vm1060_vm7, %v1057_v48 }
 0x1c9   : > { %v1068_v50 = vld [vmem:[#allocation2 + $0x1] ss:$2 sm:$0xff]  ;;  %v1063_v51 = vld [vmem:[#allocation2] ss:$2 sm:$0xff] }
 0x1ca   : > { %v1072_v52 = vpack.c.bf16 %v1068_v50, %v1068_v50  ;;  %v1066_v53 = vpack.c.bf16 %v1063_v51, %v1063_v51 }
 0x1cc   : > { %3606 = vmatmul.mubr.msk.bf16.vlgmr.msra.gmra.mxu1 %vm1060_vm7, %v1072_v52  ;;  %3612 = vmatmul.mubr.msk.bf16.vlgmr.msra.gmra.mxu0 %vm1060_vm7, %v1066_v53  ;;  %v1436_v52 = vmul.f32 %v1432_v47, %v1432_v47 }
 0x1cd   : > { %3617 = vmatprep.mubr.msk.bf16.mxu1 %vm4073_vm3, %v4071_v1  ;;  %3623 = vmatprep.mubr.msk.bf16.mxu0 %vm4073_vm3, %v4071_v1 }
 0x1ce   : > { %3616 = vmatpush3.bf16.msra.mxu1 %v3862_v54  ;;  %3622 = vmatpush3.bf16.msra.mxu0 %v3863_v55  ;;  %v1442_v55 = vsel %vm1015_vm6, %v1436_v52, 0.0 }
 0x1cf   : > { %3627 = vmatprep.subr.bf16.mxu1 %v4071_v1  ;;  %3633 = vmatprep.subr.bf16.mxu0 %v4071_v1 }
 0x28c   : > { %v1116_v56 = vpop.f32.mrf.mxu1  ;;  %v1165_v57 = vpop.f32.mrf.mxu0 }
 0x28d   : > { %v1166_v59 = vadd.f32 %v1165_v57, %v1116_v56  ;;  %v1441_v56 = vpop.xlane.xlu0 %1440 }
 0x28e   : > { %v3607_v60 = vpop.f32.mrf.mxu1  ;;  %v3613_v61 = vpop.f32.mrf.mxu0  ;;  %v1451_v57 = vmul.f32 0.03125, %v1441_v56 }
 0x28f   : > { %v1178_v62 = vadd.f32 %v3379_v58, %v1166_v59 }
 0x290   : > { %v1119_v63 = vpop.f32.mrf.mxu1  ;;  %v1168_v0 = vpop.f32.mrf.mxu0  ;;  %v1455_v58 = vadd.f32 1e-05, %v1451_v57 }
 0x291   : > { %v1180_v2 = vmin.f32 %v1178_v62, 0.0  ;;  %vm1179_vm8 = vcmp.gt.f32.partialorder %v1178_v62, 0.0 }
 0x292   : > { %v3608_v3 = vpop.f32.mrf.mxu1  ;;  %v3614_v4 = vpop.f32.mrf.mxu0 }
 0x293   : > { %v1181_v5 = vmul.f32 1.442695, %v1180_v2 }
 0x295   : > { %3885 = vpow2.f32 %v1181_v5  ;;  %v3393_v5 = vld [vmem:[%s4939_s14] ss:$0 sm:$0xff] }
 0x2a2   : > { %v3886_v6 = vpop.eup %3885 }
 0x2a3   : > { %v3380_v7 = vadd.f32 -1.0, %v3886_v6 }
 0x2a5   : > { %v1184_v8 = vsel %vm1179_vm8, %v1178_v62, %v3380_v7 }
 0x2a6   : > { %1185 = vst.msk [vmem:[#allocation3] sm:$0xff] %vm1060_vm7, %v1184_v8  ;;  %v1310_v14 = vpack.c.bf16 %v1184_v8, %v1184_v8 }
 0x2ad   : > { %v1191_v10 = vld [vmem:[#allocation3 + $0x1] ss:$2 sm:$0xf]  ;;  %v1186_v11 = vld [vmem:[#allocation3] ss:$2 sm:$0xf] }
 0x2ae   : > { %v1195_v12 = vpack.c.bf16 %v1191_v10, %v1191_v10  ;;  %v1189_v13 = vpack.c.bf16 %v1186_v11, %v1186_v11 }
 0x2b0   : > { %3618 = vmatmul.mubr.msk.bf16.vlgmr.msra.gmra.mxu1 %vm1060_vm7, %v1195_v12  ;;  %3624 = vmatmul.mubr.msk.bf16.vlgmr.msra.gmra.mxu0 %vm1060_vm7, %v1189_v13 }
 0x2b1   : > { %3628 = vmatpush3.bf16.msra.mxu1 %v3864_v9  ;;  %3629 = vmatprep.mubr.msk.bf16.mxu1 %vm4073_vm3, %v4071_v1 }
 0x2b2   : > { %3634 = vmatpush3.bf16.msra.mxu0 %v3864_v9  ;;  %3635 = vmatprep.mubr.msk.bf16.mxu0 %vm4073_vm3, %v4071_v1  ;;  %v3389_v1 = vld [vmem:[%s4938_s13] ss:$0 sm:$0xff] }
 0x2b3   : > { %v3394_v9 = vld [vmem:[%s4866_s15] ss:$0 sm:$0xff] }
 0x2b8   : > { %3630 = vmatmul.mubr.msk.bf16.vlgmr.msra.gmra.mxu1 %vm1060_vm7, %v1310_v14  ;;  %v3866_v14 = vld [vmem:[%s4868_s17] sm:$0xff]  }
 0x370   : > { %v1239_v15 = vpop.f32.mrf.mxu1  ;;  %v1288_v16 = vpop.f32.mrf.mxu0 }
 0x371   : > { %v1289_v18 = vadd.f32 %v1288_v16, %v1239_v15 }
 0x372   : > { %v3619_v19 = vpop.f32.mrf.mxu1  ;;  %v3625_v20 = vpop.f32.mrf.mxu0 }
 0x373   : > { %v1301_v21 = vadd.f32 %v3387_v17, %v1289_v18 }
 0x374   : > { %v1242_v22 = vpop.f32.mrf.mxu1  ;;  %v1291_v23 = vpop.f32.mrf.mxu0 }
 0x375   : > { %v1303_v24 = vmin.f32 %v1301_v21, 0.0  ;;  %vm1302_vm9 = vcmp.gt.f32.partialorder %v1301_v21, 0.0 }
 0x376   : > { %v3620_v25 = vpop.f32.mrf.mxu1  ;;  %v3626_v26 = vpop.f32.mrf.mxu0 }
 0x377   : > { %v1304_v27 = vmul.f32 1.442695, %v1303_v24 }
 0x378   : > { %v1361_v28 = vpop.f32.mrf.mxu1 }
 0x379   : > { %3887 = vpow2.f32 %v1304_v27  ;;  %v1362_v29 = vadd.f32 %v3389_v1, %v1361_v28 }
 0x37a   : > { %v3631_v30 = vpop.f32.mrf.mxu1  ;;  %3889 = vrsqrt.f32 %v1455_v58 }
 0x37b   : > { %v1419_v31 = vsel %vm1015_vm6, %v1362_v29, 0.0 }
 0x37c   : > { %1420 = vadd.xlane.f32.xlu1 %v1419_v31  ;;  %v1364_v32 = vpop.f32.mrf.mxu1 }
 0x37e   : > { %v3632_v34 = vpop.f32.mrf.mxu1 }
 0x386   : > { %v3888_v35 = vpop.eup %3887 }
 0x387   : > { %v3388_v36 = vadd.f32 -1.0, %v3888_v35  ;;  %v3890_v3 = vpop.eup %3889 }
 0x388   : > { %v1463_v4 = vmul.f32 %v3890_v3, %v4336_v40  ;;  %v3865_v40 = vld [vmem:[%s4868_s17 + $0x8] sm:$0xff]  }
 0x389   : > { %v1307_v37 = vsel %vm1302_vm9, %v1301_v21, %v3388_v36  ;;  %3639 = vmatprep.subr.bf16.mxu1 %v3865_v40 }
 0x38a   : > { %v1367_v38 = vpack.c.bf16 %v1307_v37, %v1307_v37  ;;  %v1473_v8 = vmul.f32 %v3393_v5, %v1463_v4  ;;  %3640 = vmatpush3.bf16.msra.mxu1 %v3865_v40 }
 0x38b   : > { %3641 = vmatprep.subr.bf16.mxu1 %v3866_v14 }
 0x38c   : > { %3636 = vmatmul.mubr.msk.bf16.vlgmr.msra.gmra.mxu0 %vm1060_vm7, %v1367_v38  ;;  %v4394_v11 = vadd.f32 %v3394_v9, %v1473_v8 }
 0x38e   : > { %3642 = vmatpush3.bf16.msra.mxu1 %v3866_v14 }
 0x405   : > { %v1421_v39 = vpop.xlane.xlu1 %1420 }
 0x406   : > { %v1429_v41 = vmul.f32 0.03125, %v1421_v39 }
 0x408   : > { %v1433_v42 = vsub.f32 %v1362_v29, %v1429_v41 }
 0x40a   : > { %v1437_v43 = vmul.f32 %v1433_v42, %v1433_v42 }
 0x40c   : > { %v1445_v44 = vsel %vm1015_vm6, %v1437_v43, 0.0 }
 0x40d   : > { %1446 = vadd.xlane.f32.xlu0 %v1445_v44  ;;  %v4438_v44 = vld [vmem:[%s4867_s16 + $0x18] sm:$0xf] }
 0x44c   : > { %v1405_v48 = vpop.f32.mrf.mxu0 }
 0x44d   : > { %v1406_v49 = vadd.f32 %v3389_v1, %v1405_v48 }
 0x44e   : > { %v3637_v50 = vpop.f32.mrf.mxu0 }
 0x44f   : > { %v1423_v51 = vsel %vm1422_vm10, %v1406_v49, 0.0  ;;  %v4451_v50 = vld [vmem:[%s4867_s16 + $0x10] sm:$0xff] }
 0x450   : > { %v1408_v53 = vpop.f32.mrf.mxu0  ;;  %1424 = vadd.xlane.f32.xlu1 %v1423_v51 }
 0x452   : > { %v3638_v54 = vpop.f32.mrf.mxu0 }
 0x454   : > { %1443 = vadd.xlane.f32.xlu1 %v1442_v55 }
 0x496   : > { %v1447_v15 = vpop.xlane.xlu0 %1446 }
 0x497   : > { %v1453_v16 = vmul.f32 0.03125, %v1447_v15 }
 0x499   : > { %v1457_v17 = vadd.f32 1e-05, %v1453_v16 }
 0x4d9   : > { %v1425_v59 = vpop.xlane.xlu1 %1424 }
 0x4da   : > { %v1430_v60 = vmul.f32 0.03125, %v1425_v59 }
 0x4dc   : > { %v1434_v33 = vsub.f32 %v1406_v49, %v1430_v60 }
 0x4dd   : > { %v1444_v61 = vpop.xlane.xlu1 %1443 }
 0x4de   : > { %v1452_v62 = vmul.f32 0.03125, %v1444_v61  ;;  %v1438_v63 = vmul.f32 %v1434_v33, %v1434_v33 }
 0x4e0   : > { %v1456_v0 = vadd.f32 1e-05, %v1452_v62  ;;  %v1448_v2 = vsel %vm1422_vm10, %v1438_v63, 0.0 }
 0x4e1   : > { %1449 = vadd.xlane.f32.xlu1 %v1448_v2 }
 0x4e2   : > { %3891 = vrsqrt.f32 %v1456_v0 }
 0x4e3   : > { %3893 = vrsqrt.f32 %v1457_v17 }
 0x4ef   : > { %v3892_v6 = vpop.eup %3891 }
 0x4f0   : > { %v1464_v7 = vmul.f32 %v3892_v6, %v1432_v47  ;;  %v3894_v21 = vpop.eup %3893  ;;  %v4444_v47 = vld [vmem:[%s4867_s16 + $0x8] sm:$0xff] }
 0x4f1   : > { %v1465_v22 = vmul.f32 %v3894_v21, %v1433_v42  ;;  %v4433_v42 = vld [vmem:[%s4867_s16] sm:$0xff] }
 0x4f2   : > { %v1474_v10 = vmul.f32 %v3393_v5, %v1464_v7 }
 0x4f3   : > { %v1475_v25 = vmul.f32 %v3393_v5, %v1465_v22 }
 0x4f4   : > { %v4396_v12 = vadd.f32 %v3394_v9, %v1474_v10 }
 0x4f5   : > { %v4407_v1 = vadd.f32 %v3394_v9, %v1475_v25 }
 0x4f6   : > { %v1495_v13 = vpack.c.bf16 %v4396_v12, %v4394_v11 }
 0x4f8   : > { %3643 = vmatprep.mubr.msk.bf16.mxu1 %vm1015_vm6, %v1495_v13 }
 0x56a   : > { %v1450_v18 = vpop.xlane.xlu1 %1449 }
 0x56b   : > { %v1454_v19 = vmul.f32 0.03125, %v1450_v18 }
 0x56d   : > { %v1458_v20 = vadd.f32 1e-05, %v1454_v19 }
 0x56f   : > { %3895 = vrsqrt.f32 %v1458_v20 }
 0x57c   : > { %v3896_v23 = vpop.eup %3895 }
 0x57d   : > { %v1466_v24 = vmul.f32 %v3896_v23, %v1434_v33 }
 0x57f   : > { %v1476_v26 = vmul.f32 %v3393_v5, %v1466_v24 }
 0x581   : > { %v4409_v27 = vadd.f32 %v3394_v9, %v1476_v26 }
 0x583   : > { %v1496_v28 = vpack.c.bf16 %v4409_v27, %v4407_v1 }
 0x585   : > { %3644 = vmatmul.mubr.msk.bf16.vlgmr.msra.gmra.mxu1 %vm1015_vm6, %v1496_v28 }
 0x645   : > { %v3645_v29 = vpop.f32.mrf.mxu1 }
 0x647   : > { %v1549_v30 = vpop.f32.mrf.mxu1 }
 0x649   : > { %v3646_v31 = vpop.f32.mrf.mxu1 }
 0x64a   : > { %v4414_v32 = vpack.c.bf16 %v3646_v31, %v3645_v29 }
 0x64b   : > { %v1552_v34 = vpop.f32.mrf.mxu1 }
 0x64c   : > { %v4416_v35 = vpack.c.bf16 %v1552_v34, %v1549_v30  ;;  %1570 = vrot.lane.b32.xlu0 %v4414_v32, %s4899_s6 }
 0x64e   : > { %1568 = vrot.lane.b32.xlu1 %v4416_v35, %s4899_s6  ;;  %3651 = vmatprep.mubr.msk.bf16.mxu0 %vm1060_vm7, %v4416_v35 }
 0x6be   : > { %v1571_v36 = vpop.permute.xlu0 %1570 }
 0x6bf   : > { %v1582_v37 = vsel %vm1060_vm7, %v1571_v36, 0  ;;  %3775 = vmatprep.subr.msk.bf16.mxu0 %vm1060_vm7, %v1571_v36 }
 0x6c0   : > { %3648 = vmatpush3.bf16.xpose.msra.mxu0 %v1582_v37  ;;  %v1569_v38 = vpop.permute.xlu1 %1568 }
 0x6c1   : > { %3776 = vmatprep.subr.msk.bf16.mxu0 %vm1060_vm7, %v1569_v38  ;;  %v1579_v39 = vsel %vm1060_vm7, %v1569_v38, 0 }
 0x6c8   : > { %3650 = vmatpush3.bf16.xpose.msra.mxu0 %v1579_v39 }
 0x6cf   : > { %3652 = vmatmul.mubr.msk.bf16.vlgmr.msra.gmra.mxu0 %vm1060_vm7, %v4414_v32 }
 0x78f   : > { %v3653_v41 = vpop.f32.mrf.mxu0 }
 0x790   : > { %v1627_v53 = vadd.f32 %v3653_v41, %v4451_v50 }
 0x791   : > { %v1618_v43 = vpop.f32.mrf.mxu0 }
 0x792   : > { %v1619_v45 = vadd.f32 %v1618_v43, %v4433_v42  ;;  %v1640_v56 = vsel %vm1633_vm11, %v1627_v53, -inf }
 0x793   : > { %v3654_v46 = vpop.f32.mrf.mxu0 }
 0x794   : > { %v1630_v48 = vadd.f32 %v3654_v46, %v4438_v44  ;;  %v1634_v49 = vsel %vm1633_vm11, %v1619_v45, -inf }
 0x795   : > { %v1621_v51 = vpop.f32.mrf.mxu0  ;;  %1635 = vmax.xlane.f32.xlu1 %v1634_v49 }
 0x796   : > { %v1622_v52 = vadd.f32 %v1621_v51, %v4444_v47  ;;  %v1644_v55 = vsel %vm1643_vm12, %v1630_v48, -inf }
 0x798   : > { %v1637_v54 = vsel %vm1633_vm11, %v1622_v52, -inf }
 0x799   : > { %1638 = vmax.xlane.f32.xlu0 %v1637_v54  ;;  %1645 = vmax.xlane.f32.xlu1 %v1644_v55 }
 0x79d   : > { %1641 = vmax.xlane.f32.xlu0 %v1640_v56 }
 0x7aa   : > { %1681 = vrot.lane.b32.xlu1 %v4416_v35, %s4897_s12 }
 0x81e   : > { %v1636_v57 = vpop.xlane.xlu1 %1635 }
 0x81f   : > { %v1647_v61 = vsub.f32 %v1619_v45, %v1636_v57 }
 0x821   : > { %v1651_v3 = vmul.f32 1.442695, %v1647_v61 }
 0x822   : > { %v1639_v58 = vpop.xlane.xlu0 %1638  ;;  %v1646_v59 = vpop.xlane.xlu1 %1645 }
 0x823   : > { %v1648_v60 = vsub.f32 %v1622_v52, %v1639_v58  ;;  %v1650_v33 = vsub.f32 %v1630_v48, %v1646_v59 }
 0x825   : > { %v1657_v62 = vmul.f32 1.442695, %v1650_v33  ;;  %v1653_v63 = vmul.f32 1.442695, %v1648_v60 }
 0x826   : > { %v1642_v0 = vpop.xlane.xlu0 %1641  ;;  %v1682_v14 = vpop.permute.xlu1 %1681 }
 0x827   : > { %v1649_v2 = vsub.f32 %v1627_v53, %v1642_v0  ;;  %3897 = vpow2.f32 %v1657_v62 }
 0x828   : > { %3899 = vpow2.f32 %v1653_v63 }
 0x829   : > { %v1655_v4 = vmul.f32 1.442695, %v1649_v2 }
 0x82b   : > { %3901 = vpow2.f32 %v1655_v4 }
 0x82c   : > { %3903 = vpow2.f32 %v1651_v3 }
 0x834   : > { %v3898_v5 = vpop.eup %3897 }
 0x835   : > { %v1668_v6 = vsel %vm1643_vm12, %v3898_v5, 0.0  ;;  %v3900_v7 = vpop.eup %3899 }
 0x836   : > { %1669 = vadd.xlane.f32.xlu1 %v1668_v6  ;;  %v1662_v13 = vsel %vm1633_vm11, %v3900_v7, 0.0 }
 0x838   : > { %v3902_v8 = vpop.eup %3901 }
 0x839   : > { %v1665_v9 = vsel %vm1633_vm11, %v3902_v8, 0.0  ;;  %v3904_v10 = vpop.eup %3903 }
 0x83a   : > { %1666 = vadd.xlane.f32.xlu0 %v1665_v9  ;;  %1663 = vadd.xlane.f32.xlu1 %v1662_v13  ;;  %v1659_v40 = vsel %vm1633_vm11, %v3904_v10, 0.0 }
 0x83e   : > { %1660 = vadd.xlane.f32.xlu0 %v1659_v40 }
 0x84b   : > { %1751 = vrot.lane.b32.xlu1 %v4414_v32, %s4893_s1 }
 0x84f   : > { %1749 = vrot.lane.b32.xlu1 %v4416_v35, %s4893_s1  ;;  %s4895_s1 = smov 16  }
 0x853   : > { %1747 = vrot.lane.b32.xlu1 %v4414_v32, %s4891_s7 }
 0x854   : > { %1683 = vrot.lane.b32.xlu0 %v4414_v32, %s4897_s12  ;;  %s4940_s12 = smov 96  }
 0x858   : > { %1745 = vrot.lane.b32.xlu0 %v4416_v35, %s4891_s7  ;;  %s4942_s7 = smov 80  }
 0x8bf   : > { %v1670_v15 = vpop.xlane.xlu1 %1669 }
 0x8c3   : > { %v1667_v16 = vpop.xlane.xlu0 %1666  ;;  %v1664_v17 = vpop.xlane.xlu1 %1663 }
 0x8c4   : > { %3905 = vrcp.f32 %v1667_v16 }
 0x8c5   : > { %3907 = vrcp.f32 %v1664_v17 }
 0x8c6   : > { %3909 = vrcp.f32 %v1670_v15 }
 0x8c7   : > { %v1661_v18 = vpop.xlane.xlu0 %1660  ;;  %v1752_v21 = vpop.permute.xlu1 %1751 }
 0x8c8   : > { %3911 = vrcp.f32 %v1661_v18  ;;  %v1763_v36 = vsel %vm1060_vm7, %v1752_v21, 0 }
 0x8cb   : > { %v1684_v19 = vpop.permute.xlu0 %1683  ;;  %v1750_v38 = vpop.permute.xlu1 %1749 }
 0x8cc   : > { %v1694_v20 = vsel %vm1692_vm13, %v1684_v19, 0  ;;  %3777 = vmatprep.subr.msk.bf16.mxu1 %vm1692_vm13, %v1684_v19  ;;  %v1760_v39 = vsel %vm1060_vm7, %v1750_v38, 0 }
 0x8cd   : > { %3656 = vmatpush3.bf16.msra.mxu1 %v1694_v20 }
 0x8ce   : > { %3657 = vmatprep.subr.bf16.mxu1 %v1682_v14 }
 0x8cf   : > { %v1746_v37 = vpop.permute.xlu0 %1745  ;;  %v1748_v41 = vpop.permute.xlu1 %1747 }
 0x8d1   : > { %3658 = vmatpush3.bf16.msra.mxu1 %v1682_v14  ;;  %v3906_v22 = vpop.eup %3905 }
 0x8d2   : > { %3778 = vmatprep.subr.msk.bf16.mxu1 %vm1060_vm7, %v1752_v21  ;;  %v3908_v23 = vpop.eup %3907  ;;  %v1677_v26 = vmul.f32 %v3906_v22, %v3902_v8 }
 0x8d3   : > { %v3910_v24 = vpop.eup %3909  ;;  %v1676_v29 = vmul.f32 %v3908_v23, %v3900_v7 }
 0x8d4   : > { %v1678_v30 = vmul.f32 %v3910_v24, %v3898_v5 }
 0x8d5   : > { %v3912_v25 = vpop.eup %3911 }
 0x8d6   : > { %v1675_v28 = vmul.f32 %v3912_v25, %v3904_v10  ;;  %v1680_v34 = vpack.c.bf16 %v1678_v30, %v1677_v26 }
 0x8d8   : > { %v1679_v31 = vpack.c.bf16 %v1676_v29, %v1675_v28 }
 0x8da   : > { %3659 = vmatprep.mubr.msk.bf16.mxu1 %vm1633_vm11, %v1679_v31 }
 0x8db   : > { %3660 = vmatmul.mubr.msk.bf16.vlgmr.msra.gmra.mxu1 %vm1633_vm11, %v1680_v34 }
 0x8dc   : > { %3664 = vmatpush3.bf16.xpose.msra.mxu1 %v1763_v36  ;;  %3667 = vmatprep.mubr.msk.bf16.mxu1 %vm1060_vm7, %v1746_v37 }
 0x8dd   : > { %3779 = vmatprep.subr.msk.bf16.mxu1 %vm1060_vm7, %v1750_v38  ;;  %v3867_v38 = vld [vmem:[%s4869_s18 + $0x8] sm:$0xff]  }
 0x8e4   : > { %3666 = vmatpush3.bf16.xpose.msra.mxu1 %v1760_v39 }
 0x8eb   : > { %3668 = vmatmul.mubr.msk.bf16.vlgmr.msra.gmra.mxu1 %vm1060_vm7, %v1748_v41  ;;  %v3868_v41 = vld [vmem:[%s4869_s18] sm:$0xff]  }
 0x99b   : > { %v4484_v43 = vpop.f32.mrf.mxu1 }
 0x99d   : > { %v4486_v45 = vpop.f32.mrf.mxu1 }
 0x99f   : > { %v4488_v46 = vpop.f32.mrf.mxu1 }
 0x9a1   : > { %v4490_v48 = vpop.f32.mrf.mxu1 }
 0x9ab   : > { %v3669_v49 = vpop.f32.mrf.mxu1 }
 0x9ac   : > { %v1808_v54 = vadd.f32 %v3669_v49, %v4451_v50 }
 0x9ad   : > { %v1799_v51 = vpop.f32.mrf.mxu1 }
 0x9ae   : > { %v1800_v52 = vadd.f32 %v1799_v51, %v4433_v42  ;;  %v1820_v60 = vsel %vm1633_vm11, %v1808_v54, -inf }
 0x9af   : > { %v3670_v53 = vpop.f32.mrf.mxu1 }
 0x9b0   : > { %v1814_v55 = vsel %vm1633_vm11, %v1800_v52, -inf  ;;  %v1811_v58 = vadd.f32 %v3670_v53, %v4438_v44 }
 0x9b1   : > { %v1802_v56 = vpop.f32.mrf.mxu1  ;;  %1815 = vmax.xlane.f32.xlu0 %v1814_v55 }
 0x9b2   : > { %v1803_v57 = vadd.f32 %v1802_v56, %v4444_v47  ;;  %v1823_v33 = vsel %vm1643_vm12, %v1811_v58, -inf }
 0x9b4   : > { %v1817_v59 = vsel %vm1633_vm11, %v1803_v57, -inf }
 0x9b5   : > { %1818 = vmax.xlane.f32.xlu1 %v1817_v59  ;;  %1821 = vmax.xlane.f32.xlu0 %v1820_v60 }
 0x9b9   : > { %1824 = vmax.xlane.f32.xlu0 %v1823_v33 }
 0xa3a   : > { %v1816_v61 = vpop.xlane.xlu0 %1815 }
 0xa3b   : > { %v1826_v62 = vsub.f32 %v1800_v52, %v1816_v61 }
 0xa3d   : > { %v1830_v5 = vmul.f32 1.442695, %v1826_v62 }
 0xa3e   : > { %v1819_v63 = vpop.xlane.xlu1 %1818  ;;  %v1822_v0 = vpop.xlane.xlu0 %1821 }
 0xa3f   : > { %v1828_v2 = vsub.f32 %v1808_v54, %v1822_v0  ;;  %v1827_v3 = vsub.f32 %v1803_v57, %v1819_v63 }
 0xa41   : > { %v1834_v4 = vmul.f32 1.442695, %v1828_v2  ;;  %v1832_v8 = vmul.f32 1.442695, %v1827_v3 }
 0xa42   : > { %v1825_v6 = vpop.xlane.xlu0 %1824 }
 0xa43   : > { %v1829_v7 = vsub.f32 %v1811_v58, %v1825_v6  ;;  %3913 = vpow2.f32 %v1834_v4 }
 0xa44   : > { %3915 = vpow2.f32 %v1830_v5 }
 0xa45   : > { %v1836_v9 = vmul.f32 1.442695, %v1829_v7 }
 0xa47   : > { %3917 = vpow2.f32 %v1836_v9 }
 0xa48   : > { %3919 = vpow2.f32 %v1832_v8 }
 0xa50   : > { %v3914_v10 = vpop.eup %3913 }
 0xa51   : > { %v1844_v13 = vsel %vm1633_vm11, %v3914_v10, 0.0  ;;  %v3916_v40 = vpop.eup %3915 }
 0xa52   : > { %1845 = vadd.xlane.f32.xlu0 %v1844_v13  ;;  %v1838_v17 = vsel %vm1633_vm11, %v3916_v40, 0.0 }
 0xa54   : > { %v3918_v14 = vpop.eup %3917 }
 0xa55   : > { %v1847_v15 = vsel %vm1643_vm12, %v3918_v14, 0.0  ;;  %v3920_v16 = vpop.eup %3919 }
 0xa56   : > { %1848 = vadd.xlane.f32.xlu1 %v1847_v15  ;;  %1839 = vadd.xlane.f32.xlu0 %v1838_v17  ;;  %v1841_v18 = vsel %vm1633_vm11, %v3920_v16, 0.0 }
 0xa5a   : > { %1842 = vadd.xlane.f32.xlu1 %v1841_v18 }
 0xa6b   : > { %1860 = vrot.lane.b32.xlu1 %v4416_v35, %s4889_s4 }
 0xa6c   : > { %1862 = vrot.lane.b32.xlu0 %v4414_v32, %s4889_s4  ;;  %s4943_s4 = smov 112  }
 0xadb   : > { %v1846_v19 = vpop.xlane.xlu0 %1845 }
 0xadf   : > { %v1849_v20 = vpop.xlane.xlu1 %1848  ;;  %v1840_v21 = vpop.xlane.xlu0 %1839 }
 0xae0   : > { %3921 = vrcp.f32 %v1849_v20 }
 0xae1   : > { %3923 = vrcp.f32 %v1840_v21 }
 0xae2   : > { %3925 = vrcp.f32 %v1846_v19 }
 0xae3   : > { %v1843_v22 = vpop.xlane.xlu1 %1842  ;;  %v1863_v23 = vpop.permute.xlu0 %1862 }
 0xae4   : > { %3927 = vrcp.f32 %v1843_v22  ;;  %v1872_v24 = vsel %vm1692_vm13, %v1863_v23, 0  ;;  %3780 = vmatprep.subr.msk.bf16.mxu0 %vm1692_vm13, %v1863_v23 }
 0xae5   : > { %3672 = vmatpush3.bf16.msra.mxu0 %v1872_v24 }
 0xae7   : > { %v1861_v25 = vpop.permute.xlu1 %1860 }
 0xae8   : > { %3673 = vmatprep.subr.bf16.mxu0 %v1861_v25 }
 0xae9   : > { %3674 = vmatpush3.bf16.msra.mxu0 %v1861_v25 }
 0xaea   : > { %3679 = vmatprep.subr.bf16.mxu0 %v3867_v38 }
 0xaed   : > { %v3922_v35 = vpop.eup %3921 }
 0xaee   : > { %v3924_v26 = vpop.eup %3923  ;;  %v1857_v29 = vmul.f32 %v3922_v35, %v3918_v14 }
 0xaef   : > { %v3926_v32 = vpop.eup %3925  ;;  %v1854_v30 = vmul.f32 %v3924_v26, %v3916_v40 }
 0xaf0   : > { %v1856_v34 = vmul.f32 %v3926_v32, %v3914_v10 }
 0xaf1   : > { %v3928_v28 = vpop.eup %3927 }
 0xaf2   : > { %v1855_v31 = vmul.f32 %v3928_v28, %v3920_v16  ;;  %v1859_v37 = vpack.c.bf16 %v1857_v29, %v1856_v34  ;;  %v3869_v34 = vld [vmem:[%s4873_s22 + $0x8] sm:$0xff]  }
 0xaf3   : > { %3687 = vmatprep.subr.bf16.mxu1 %v3869_v34 }
 0xaf4   : > { %v1858_v36 = vpack.c.bf16 %v1855_v31, %v1854_v30  ;;  %3688 = vmatpush3.bf16.msra.mxu1 %v3869_v34 }
 0xaf6   : > { %3675 = vmatprep.mubr.msk.bf16.mxu0 %vm1633_vm11, %v1858_v36  ;;  %v3870_v36 = vld [vmem:[%s4873_s22] sm:$0xff]  }
 0xaf7   : > { %3676 = vmatmul.mubr.msk.bf16.vlgmr.msra.gmra.mxu0 %vm1633_vm11, %v1859_v37  ;;  %3689 = vmatprep.subr.bf16.mxu1 %v3870_v36 }
 0xaf8   : > { %3680 = vmatpush3.bf16.msra.mxu0 %v3867_v38  ;;  %3690 = vmatpush3.bf16.msra.mxu1 %v3870_v36 }
 0xaf9   : > { %3681 = vmatprep.subr.bf16.mxu0 %v3868_v41 }
 0xafc   : > { %3682 = vmatpush3.bf16.msra.mxu0 %v3868_v41 }
 0xbb7   : > { %v3677_v39 = vpop.f32.mrf.mxu0 }
 0xbb9   : > { %v1908_v49 = vpop.f32.mrf.mxu0 }
 0xbbb   : > { %v3678_v51 = vpop.f32.mrf.mxu0 }
 0xbbc   : > { %v3842_v54 = vpack.i.bf16 %v3678_v51, %v3677_v39 }
 0xbbd   : > { %v1911_v52 = vpop.f32.mrf.mxu0 }
 0xbbe   : > { %v3837_v53 = vpack.i.bf16 %v1911_v52, %v1908_v49 }
 0xbc0   : > { %3838 = vrot.lane.b32.xlu1 %v3837_v53, %s4895_s1 }
 0xbc4   : > { %3843 = vrot.lane.b32.xlu1 %v3842_v54, %s4895_s1  ;;  %s4941_s1 = smov 64  }
 0xc32   : > { %v3839_v55 = vpop.permute.xlu1 %3838 }
 0xc33   : > { %v3841_v56 = vunpack.i.h.bf16 %v3839_v55  ;;  %v3840_v57 = vunpack.i.l.bf16 %v3839_v55 }
 0xc35   : > { %v1940_v58 = vsel %vm1060_vm7, %v4490_v48, %v3841_v56  ;;  %v1939_v59 = vsel %vm1060_vm7, %v4486_v45, %v3840_v57  ;;  %v3407_v45 = vld [vmem:[%s4870_s19] ss:$0 sm:$0xff] }
 0xc36   : > { %v1947_v60 = vpack.c.bf16 %v1940_v58, %v1939_v59  ;;  %v3844_v33 = vpop.permute.xlu1 %3843 }
 0xc37   : > { %v3846_v61 = vunpack.i.h.bf16 %v3844_v33  ;;  %v3845_v62 = vunpack.i.l.bf16 %v3844_v33 }
 0xc38   : > { %3683 = vmatprep.mubr.msk.bf16.mxu0 %vm1015_vm6, %v1947_v60  ;;  %v3412_v60 = vld [vmem:[%s4871_s20] ss:$0 sm:$0xff] }
 0xc39   : > { %v1942_v63 = vsel %vm1060_vm7, %v4488_v46, %v3846_v61  ;;  %v1941_v0 = vsel %vm1060_vm7, %v4484_v43, %v3845_v62 }
 0xc3a   : > { %v1948_v2 = vpack.c.bf16 %v1942_v63, %v1941_v0 }
 0xc3c   : > { %3684 = vmatmul.mubr.msk.bf16.vlgmr.msra.gmra.mxu0 %vm1015_vm6, %v1948_v2  ;;  %v3413_v2 = vld [vmem:[%s4872_s21] ss:$0 sm:$0xff] }
 0xcfc   : > { %v3685_v3 = vpop.f32.mrf.mxu0 }
 0xcfd   : > { %v2017_v4 = vadd.f32 %v3685_v3, %v3407_v45 }
 0xcfe   : > { %v2008_v48 = vpop.f32.mrf.mxu0 }
 0xcff   : > { %v2009_v5 = vadd.f32 %v3407_v45, %v2008_v48  ;;  %v2025_v43 = vadd.f32 %v2017_v4, %v4407_v1 }
 0xd00   : > { %v3686_v6 = vpop.f32.mrf.mxu0 }
 0xd01   : > { %v2023_v7 = vadd.f32 %v2009_v5, %v4394_v11  ;;  %v2020_v9 = vadd.f32 %v3686_v6, %v3407_v45  ;;  %v2035_v14 = vsel %vm1015_vm6, %v2025_v43, 0.0 }
 0xd02   : > { %v2011_v8 = vpop.f32.mrf.mxu0 }
 0xd03   : > { %v2012_v46 = vadd.f32 %v3407_v45, %v2011_v8  ;;  %v2029_v10 = vsel %vm1015_vm6, %v2023_v7, 0.0  ;;  %v2026_v15 = vadd.f32 %v2020_v9, %v4409_v27 }
 0xd04   : > { %2030 = vadd.xlane.f32.xlu0 %v2029_v10 }
 0xd05   : > { %v2024_v13 = vadd.f32 %v2012_v46, %v4396_v12  ;;  %v2038_v11 = vsel %vm1422_vm10, %v2026_v15, 0.0 }
 0xd07   : > { %v2032_v40 = vsel %vm1015_vm6, %v2024_v13, 0.0 }
 0xd08   : > { %2033 = vadd.xlane.f32.xlu1 %v2032_v40  ;;  %2036 = vadd.xlane.f32.xlu0 %v2035_v14  ;;  %v3873_v40 = vld [vmem:[%s4875_s24 + $0x8] sm:$0xff]   ;;  %v3874_v14 = vld [vmem:[%s4875_s24] sm:$0xff]  }
 0xd0c   : > { %2039 = vadd.xlane.f32.xlu0 %v2038_v11 }
 0xd8d   : > { %v2031_v16 = vpop.xlane.xlu0 %2030 }
 0xd8e   : > { %v2041_v17 = vmul.f32 0.03125, %v2031_v16 }
 0xd90   : > { %v2045_v18 = vsub.f32 %v2023_v7, %v2041_v17 }
 0xd91   : > { %v2034_v19 = vpop.xlane.xlu1 %2033  ;;  %v2037_v20 = vpop.xlane.xlu0 %2036 }
 0xd92   : > { %v2042_v1 = vmul.f32 0.03125, %v2034_v19  ;;  %v2043_v21 = vmul.f32 0.03125, %v2037_v20  ;;  %v2049_v22 = vmul.f32 %v2045_v18, %v2045_v18 }
 0xd94   : > { %v2046_v12 = vsub.f32 %v2024_v13, %v2042_v1  ;;  %v2047_v23 = vsub.f32 %v2025_v43, %v2043_v21  ;;  %v2053_v24 = vsel %vm1015_vm6, %v2049_v22, 0.0  ;;  %v3871_v43 = vld [vmem:[%s4875_s24 + $0x18] sm:$0xff]   ;;  %v3872_v13 = vld [vmem:[%s4875_s24 + $0x10] sm:$0xff]  }
 0xd95   : > { %2054 = vadd.xlane.f32.xlu0 %v2053_v24  ;;  %v2040_v25 = vpop.xlane.xlu0 %2039  ;;  %3695 = vmatprep.subr.bf16.mxu0 %v3871_v43 }
 0xd96   : > { %v2044_v27 = vmul.f32 0.03125, %v2040_v25  ;;  %v2050_v35 = vmul.f32 %v2046_v12, %v2046_v12  ;;  %v2051_v26 = vmul.f32 %v2047_v23, %v2047_v23  ;;  %3696 = vmatpush3.bf16.msra.mxu0 %v3871_v43 }
 0xd97   : > { %3697 = vmatprep.subr.bf16.mxu0 %v3872_v13 }
 0xd98   : > { %v2048_v32 = vsub.f32 %v2026_v15, %v2044_v27  ;;  %v2056_v28 = vsel %vm1015_vm6, %v2050_v35, 0.0  ;;  %v2059_v29 = vsel %vm1015_vm6, %v2051_v26, 0.0  ;;  %v3414_v15 = vld [vmem:[%s4874_s23] ss:$0 sm:$0xff] }
 0xd99   : > { %2057 = vadd.xlane.f32.xlu1 %v2056_v28  ;;  %2060 = vadd.xlane.f32.xlu0 %v2059_v29 }
 0xd9a   : > { %v2052_v30 = vmul.f32 %v2048_v32, %v2048_v32  ;;  %3698 = vmatpush3.bf16.msra.mxu0 %v3872_v13 }
 0xd9b   : > { %3699 = vmatprep.subr.bf16.mxu0 %v3873_v40 }
 0xd9c   : > { %v2062_v31 = vsel %vm1422_vm10, %v2052_v30, 0.0 }
 0xd9d   : > { %2063 = vadd.xlane.f32.xlu1 %v2062_v31 }
 0xd9e   : > { %3700 = vmatpush3.bf16.msra.mxu0 %v3873_v40 }
 0xd9f   : > { %3701 = vmatprep.subr.bf16.mxu0 %v3874_v14 }
 0xda2   : > { %3702 = vmatpush3.bf16.msra.mxu0 %v3874_v14 }
 0xe1e   : > { %v2055_v37 = vpop.xlane.xlu0 %2054 }
 0xe1f   : > { %v2065_v38 = vmul.f32 0.03125, %v2055_v37 }
 0xe21   : > { %v2069_v39 = vadd.f32 1e-06, %v2065_v38 }
 0xe22   : > { %v2058_v41 = vpop.xlane.xlu1 %2057  ;;  %v2061_v49 = vpop.xlane.xlu0 %2060 }
 0xe23   : > { %3929 = vrsqrt.f32 %v2069_v39  ;;  %v2066_v51 = vmul.f32 0.03125, %v2058_v41  ;;  %v2067_v52 = vmul.f32 0.03125, %v2061_v49 }
 0xe25   : > { %v2070_v53 = vadd.f32 1e-06, %v2066_v51  ;;  %v2071_v54 = vadd.f32 1e-06, %v2067_v52 }
 0xe26   : > { %v2064_v55 = vpop.xlane.xlu1 %2063 }
 0xe27   : > { %3931 = vrsqrt.f32 %v2070_v53  ;;  %v2068_v56 = vmul.f32 0.03125, %v2064_v55 }
 0xe28   : > { %3933 = vrsqrt.f32 %v2071_v54 }
 0xe29   : > { %v2072_v57 = vadd.f32 1e-06, %v2068_v56 }
 0xe2b   : > { %3935 = vrsqrt.f32 %v2072_v57 }
 0xe30   : > { %v3930_v58 = vpop.eup %3929 }
 0xe31   : > { %v2077_v59 = vmul.f32 %v3930_v58, %v2045_v18 }
 0xe33   : > { %v2087_v63 = vmul.f32 %v3412_v60, %v2077_v59 }
 0xe34   : > { %v3932_v33 = vpop.eup %3931 }
 0xe35   : > { %v3934_v61 = vpop.eup %3933  ;;  %v2078_v62 = vmul.f32 %v3932_v33, %v2046_v12  ;;  %v4557_v4 = vadd.f32 %v3413_v2, %v2087_v63 }
 0xe36   : > { %v2079_v0 = vmul.f32 %v3934_v61, %v2047_v23 }
 0xe37   : > { %v2088_v3 = vmul.f32 %v3412_v60, %v2078_v62 }
 0xe38   : > { %v3936_v45 = vpop.eup %3935  ;;  %v2089_v6 = vmul.f32 %v3412_v60, %v2079_v0 }
 0xe39   : > { %v2080_v48 = vmul.f32 %v3936_v45, %v2048_v32  ;;  %v4559_v5 = vadd.f32 %v3413_v2, %v2088_v3 }
 0xe3a   : > { %v4564_v9 = vadd.f32 %v3413_v2, %v2089_v6  ;;  %v3419_v6 = vld [vmem:[%s4876_s25] ss:$0 sm:$0xff] }
 0xe3b   : > { %v2105_v7 = vpack.c.bf16 %v4559_v5, %v4557_v4  ;;  %v2090_v8 = vmul.f32 %v3412_v60, %v2080_v48 }
 0xe3d   : > { %3691 = vmatprep.mubr.msk.bf16.mxu1 %vm1015_vm6, %v2105_v7  ;;  %v4566_v46 = vadd.f32 %v3413_v2, %v2090_v8 }
 0xe3f   : > { %v2106_v10 = vpack.c.bf16 %v4566_v46, %v4564_v9 }
 0xe41   : > { %3692 = vmatmul.mubr.msk.bf16.vlgmr.msra.gmra.mxu1 %vm1015_vm6, %v2106_v10 }
 0xf01   : > { %v3693_v11 = vpop.f32.mrf.mxu1 }
 0xf02   : > { %v2175_v16 = vadd.f32 %v3693_v11, %v3414_v15 }
 0xf03   : > { %v2166_v17 = vpop.f32.mrf.mxu1 }
 0xf04   : > { %v2187_v18 = vmul.f32 0.044715, %v2175_v16  ;;  %v2167_v19 = vadd.f32 %v3414_v15, %v2166_v17  ;;  %v2183_v61 = vmul.f32 0.5, %v2175_v16 }
 0xf05   : > { %v3694_v20 = vpop.f32.mrf.mxu1 }
 0xf06   : > { %v2191_v1 = vmul.f32 %v2187_v18, %v2175_v16  ;;  %v2185_v21 = vmul.f32 0.044715, %v2167_v19  ;;  %v2178_v22 = vadd.f32 %v3694_v20, %v3414_v15  ;;  %v2181_v59 = vmul.f32 0.5, %v2167_v19 }
 0xf07   : > { %v2169_v12 = vpop.f32.mrf.mxu1 }
 0xf08   : > { %v2195_v23 = vmul.f32 %v2191_v1, %v2175_v16  ;;  %v2189_v24 = vmul.f32 %v2185_v21, %v2167_v19  ;;  %v2188_v25 = vmul.f32 0.044715, %v2178_v22  ;;  %v2170_v27 = vadd.f32 %v3414_v15, %v2169_v12 }
 0xf09   : > { %v2184_v57 = vmul.f32 0.5, %v2178_v22 }
 0xf0a   : > { %v2199_v35 = vadd.f32 %v2195_v23, %v2175_v16  ;;  %v2193_v26 = vmul.f32 %v2189_v24, %v2167_v19  ;;  %v2192_v32 = vmul.f32 %v2188_v25, %v2178_v22  ;;  %v2186_v28 = vmul.f32 0.044715, %v2170_v27 }
 0xf0b   : > { %v2182_v60 = vmul.f32 0.5, %v2170_v27 }
 0xf0c   : > { %v2203_v29 = vmul.f32 0.7978846, %v2199_v35  ;;  %v2197_v30 = vadd.f32 %v2193_v26, %v2167_v19  ;;  %v2196_v31 = vmul.f32 %v2192_v32, %v2178_v22  ;;  %v2190_v34 = vmul.f32 %v2186_v28, %v2170_v27 }
 0xf0e   : > { %v2201_v36 = vmul.f32 0.7978846, %v2197_v30  ;;  %v2200_v37 = vadd.f32 %v2196_v31, %v2178_v22  ;;  %v2194_v38 = vmul.f32 %v2190_v34, %v2170_v27  ;;  %3937 = vtanh.f32 %v2203_v29 }
 0xf10   : > { %v2204_v39 = vmul.f32 0.7978846, %v2200_v37  ;;  %3939 = vtanh.f32 %v2201_v36  ;;  %v2198_v41 = vadd.f32 %v2194_v38, %v2170_v27  ;;  %v3875_v37 = vld [vmem:[%s4868_s17 + $0x18] sm:$0xff]   ;;  %v3876_v38 = vld [vmem:[%s4868_s17 + $0x10] sm:$0xff]  }
 0xf11   : > { %3707 = vmatprep.subr.bf16.mxu1 %v3875_v37 }
 0xf12   : > { %3941 = vtanh.f32 %v2204_v39  ;;  %v2202_v49 = vmul.f32 0.7978846, %v2198_v41  ;;  %3708 = vmatpush3.bf16.msra.mxu1 %v3875_v37 }
 0xf13   : > { %3709 = vmatprep.subr.bf16.mxu1 %v3876_v38 }
 0xf14   : > { %3943 = vtanh.f32 %v2202_v49 }
 0xf16   : > { %3710 = vmatpush3.bf16.msra.mxu1 %v3876_v38 }
 0xf1b   : > { %v3938_v51 = vpop.eup %3937 }
 0xf1c   : > { %v2211_v58 = vadd.f32 1.0, %v3938_v51 }
 0xf1d   : > { %v3940_v52 = vpop.eup %3939 }
 0xf1e   : > { %v2209_v55 = vadd.f32 1.0, %v3940_v52  ;;  %v2215_v2 = vmul.f32 %v2211_v58, %v2183_v61  ;;  %v3426_v61 = vld [vmem:[%s4877_s26] ss:$0 sm:$0xff] }
 0xf1f   : > { %v3942_v53 = vpop.eup %3941 }
 0xf20   : > { %v2212_v54 = vadd.f32 1.0, %v3942_v53  ;;  %v2213_v63 = vmul.f32 %v2209_v55, %v2181_v59 }
 0xf21   : > { %v3944_v56 = vpop.eup %3943 }
 0xf22   : > { %v2210_v33 = vadd.f32 1.0, %v3944_v56  ;;  %v2216_v62 = vmul.f32 %v2212_v54, %v2184_v57 }
 0xf24   : > { %v2214_v0 = vmul.f32 %v2210_v33, %v2182_v60  ;;  %v2226_v45 = vpack.c.bf16 %v2216_v62, %v2215_v2 }
 0xf26   : > { %v2225_v3 = vpack.c.bf16 %v2214_v0, %v2213_v63 }
 0xf28   : > { %3703 = vmatprep.mubr.msk.bf16.mxu0 %vm2258_vm14, %v2225_v3 }
 0xf29   : > { %3704 = vmatmul.mubr.msk.bf16.vlgmr.msra.gmra.mxu0 %vm2258_vm14, %v2226_v45  ;;  %v3427_v45 = vld [vmem:[%s4878_s27] ss:$0 sm:$0xff] }
 0xfe9   : > { %v3705_v48 = vpop.f32.mrf.mxu0 }
 0xfea   : > { %v2308_v8 = vadd.f32 %v3705_v48, %v3419_v6 }
 0xfeb   : > { %v2299_v7 = vpop.f32.mrf.mxu0 }
 0xfec   : > { %v2300_v10 = vadd.f32 %v3419_v6, %v2299_v7  ;;  %v2316_v16 = vadd.f32 %v2308_v8, %v4564_v9 }
 0xfed   : > { %v3706_v43 = vpop.f32.mrf.mxu0 }
 0xfee   : > { %v2314_v13 = vadd.f32 %v2300_v10, %v4557_v4  ;;  %v2311_v14 = vadd.f32 %v3706_v43, %v3419_v6  ;;  %v2326_v19 = vsel %vm1015_vm6, %v2316_v16, 0.0 }
 0xfef   : > { %v2302_v40 = vpop.f32.mrf.mxu0 }
 0xff0   : > { %v2303_v15 = vadd.f32 %v3419_v6, %v2302_v40  ;;  %v2320_v11 = vsel %vm1015_vm6, %v2314_v13, 0.0  ;;  %v2317_v20 = vadd.f32 %v2311_v14, %v4566_v46 }
 0xff1   : > { %2321 = vadd.xlane.f32.xlu0 %v2320_v11 }
 0xff2   : > { %v2315_v17 = vadd.f32 %v2303_v15, %v4559_v5  ;;  %v2329_v4 = vsel %vm1422_vm10, %v2317_v20, 0.0 }
 0xff4   : > { %v2323_v18 = vsel %vm1015_vm6, %v2315_v17, 0.0 }
 0xff5   : > { %2324 = vadd.xlane.f32.xlu1 %v2323_v18  ;;  %2327 = vadd.xlane.f32.xlu0 %v2326_v19 }
 0xff9   : > { %2330 = vadd.xlane.f32.xlu1 %v2329_v4 }
0x107a   : > { %v2322_v1 = vpop.xlane.xlu0 %2321 }
0x107b   : > { %v2332_v21 = vmul.f32 0.03125, %v2322_v1 }
0x107d   : > { %v2336_v22 = vsub.f32 %v2314_v13, %v2332_v21 }
0x107e   : > { %v2325_v12 = vpop.xlane.xlu1 %2324  ;;  %v2328_v23 = vpop.xlane.xlu0 %2327 }
0x107f   : > { %v2333_v9 = vmul.f32 0.03125, %v2325_v12  ;;  %v2334_v24 = vmul.f32 0.03125, %v2328_v23  ;;  %v2340_v25 = vmul.f32 %v2336_v22, %v2336_v22 }
0x1081   : > { %v2337_v5 = vsub.f32 %v2315_v17, %v2333_v9  ;;  %v2338_v27 = vsub.f32 %v2316_v16, %v2334_v24  ;;  %v2344_v35 = vsel %vm1015_vm6, %v2340_v25, 0.0 }
0x1082   : > { %v2331_v26 = vpop.xlane.xlu1 %2330  ;;  %2345 = vadd.xlane.f32.xlu0 %v2344_v35 }
0x1083   : > { %v2335_v46 = vmul.f32 0.03125, %v2331_v26  ;;  %v2341_v32 = vmul.f32 %v2337_v5, %v2337_v5  ;;  %v2342_v28 = vmul.f32 %v2338_v27, %v2338_v27 }
0x1085   : > { %v2339_v29 = vsub.f32 %v2317_v20, %v2335_v46  ;;  %v2347_v30 = vsel %vm1015_vm6, %v2341_v32, 0.0  ;;  %v2350_v31 = vsel %vm1015_vm6, %v2342_v28, 0.0 }
0x1086   : > { %2348 = vadd.xlane.f32.xlu1 %v2347_v30  ;;  %2351 = vadd.xlane.f32.xlu0 %v2350_v31 }
0x1087   : > { %v2343_v34 = vmul.f32 %v2339_v29, %v2339_v29 }
0x1089   : > { %v2353_v36 = vsel %vm1422_vm10, %v2343_v34, 0.0 }
0x108a   : > { %2354 = vadd.xlane.f32.xlu1 %v2353_v36 }
0x110b   : > { %v2346_v39 = vpop.xlane.xlu0 %2345 }
0x110c   : > { %v2356_v41 = vmul.f32 0.03125, %v2346_v39 }
0x110e   : > { %v2360_v49 = vadd.f32 1e-06, %v2356_v41 }
0x110f   : > { %v2349_v51 = vpop.xlane.xlu1 %2348  ;;  %v2352_v52 = vpop.xlane.xlu0 %2351 }
0x1110   : > { %3945 = vrsqrt.f32 %v2360_v49  ;;  %v2357_v53 = vmul.f32 0.03125, %v2349_v51  ;;  %v2358_v54 = vmul.f32 0.03125, %v2352_v52 }
0x1112   : > { %v2361_v55 = vadd.f32 1e-06, %v2357_v53  ;;  %v2362_v56 = vadd.f32 1e-06, %v2358_v54 }
0x1113   : > { %v2355_v57 = vpop.xlane.xlu1 %2354 }
0x1114   : > { %3947 = vrsqrt.f32 %v2361_v55  ;;  %v2359_v58 = vmul.f32 0.03125, %v2355_v57 }
0x1115   : > { %3949 = vrsqrt.f32 %v2362_v56 }
0x1116   : > { %v2363_v59 = vadd.f32 1e-06, %v2359_v58 }
0x1118   : > { %3951 = vrsqrt.f32 %v2363_v59 }
0x111d   : > { %v3946_v60 = vpop.eup %3945 }
0x111e   : > { %v2368_v33 = vmul.f32 %v3946_v60, %v2336_v22 }
0x1120   : > { %v2378_v2 = vmul.f32 %v3426_v61, %v2368_v33 }
0x1121   : > { %v3948_v62 = vpop.eup %3947 }
0x1122   : > { %v3950_v63 = vpop.eup %3949  ;;  %v2369_v0 = vmul.f32 %v3948_v62, %v2337_v5  ;;  %v4615_v8 = vadd.f32 %v3427_v45, %v2378_v2 }
0x1123   : > { %v2370_v3 = vmul.f32 %v3950_v63, %v2338_v27 }
0x1124   : > { %v2379_v48 = vmul.f32 %v3426_v61, %v2369_v0 }
0x1125   : > { %v3952_v6 = vpop.eup %3951  ;;  %v2380_v43 = vmul.f32 %v3426_v61, %v2370_v3 }
0x1126   : > { %v2371_v7 = vmul.f32 %v3952_v6, %v2339_v29  ;;  %v4617_v10 = vadd.f32 %v3427_v45, %v2379_v48 }
0x1127   : > { %v4622_v14 = vadd.f32 %v3427_v45, %v2380_v43 }
0x1128   : > { %v2397_v13 = vpack.c.bf16 %v4617_v10, %v4615_v8  ;;  %v2381_v40 = vmul.f32 %v3426_v61, %v2371_v7 }
0x112a   : > { %3711 = vmatprep.mubr.msk.bf16.mxu1 %vm1015_vm6, %v2397_v13  ;;  %v4624_v15 = vadd.f32 %v3427_v45, %v2381_v40 }
0x112c   : > { %v2398_v11 = vpack.c.bf16 %v4624_v15, %v4622_v14 }
0x112e   : > { %3712 = vmatmul.mubr.msk.bf16.vlgmr.msra.gmra.mxu1 %vm1015_vm6, %v2398_v11 }
0x11ee   : > { %v3713_v16 = vpop.f32.mrf.mxu1 }
0x11f0   : > { %v2451_v17 = vpop.f32.mrf.mxu1 }
0x11f2   : > { %v3714_v18 = vpop.f32.mrf.mxu1 }
0x11f3   : > { %v4629_v19 = vpack.c.bf16 %v3714_v18, %v3713_v16 }
0x11f4   : > { %v2454_v20 = vpop.f32.mrf.mxu1 }
0x11f5   : > { %v4631_v4 = vpack.c.bf16 %v2454_v20, %v2451_v17  ;;  %2472 = vrot.lane.b32.xlu0 %v4629_v19, %s4940_s12 }
0x11f7   : > { %2470 = vrot.lane.b32.xlu1 %v4631_v4, %s4940_s12  ;;  %3719 = vmatprep.mubr.msk.bf16.mxu1 %vm1060_vm7, %v4631_v4  ;;  %s851_s12 = sand.u32 1, %s4061_s5  }
0x1267   : > { %v2473_v1 = vpop.permute.xlu0 %2472 }
0x1268   : > { %v2484_v21 = vsel %vm1060_vm7, %v2473_v1, 0  ;;  %3781 = vmatprep.subr.msk.bf16.mxu1 %vm1060_vm7, %v2473_v1 }
0x1269   : > { %3716 = vmatpush3.bf16.xpose.msra.mxu1 %v2484_v21  ;;  %v2471_v22 = vpop.permute.xlu1 %2470 }
0x126a   : > { %3782 = vmatprep.subr.msk.bf16.mxu1 %vm1060_vm7, %v2471_v22  ;;  %v2481_v12 = vsel %vm1060_vm7, %v2471_v22, 0 }
0x1271   : > { %3718 = vmatpush3.bf16.xpose.msra.mxu1 %v2481_v12 }
0x1278   : > { %3720 = vmatmul.mubr.msk.bf16.vlgmr.msra.gmra.mxu1 %vm1060_vm7, %v4629_v19 }
0x1338   : > { %v3721_v23 = vpop.f32.mrf.mxu1 }
0x1339   : > { %v2529_v46 = vadd.f32 %v3721_v23, %v4451_v50 }
0x133a   : > { %v2520_v9 = vpop.f32.mrf.mxu1 }
0x133b   : > { %v2521_v24 = vadd.f32 %v2520_v9, %v4433_v42  ;;  %v2541_v29 = vsel %vm1633_vm11, %v2529_v46, -inf }
0x133c   : > { %v3722_v25 = vpop.f32.mrf.mxu1 }
0x133d   : > { %v2532_v5 = vadd.f32 %v3722_v25, %v4438_v44  ;;  %v2535_v27 = vsel %vm1633_vm11, %v2521_v24, -inf  ;;  %v4005_v25 = vld [vmem:[%s4867_s16] sm:$0xff] }
0x133e   : > { %v2523_v35 = vpop.f32.mrf.mxu1  ;;  %2536 = vmax.xlane.f32.xlu1 %v2535_v27 }
0x133f   : > { %v2524_v26 = vadd.f32 %v2523_v35, %v4444_v47  ;;  %v2544_v28 = vsel %vm1643_vm12, %v2532_v5, -inf  ;;  %v4006_v35 = vld [vmem:[%s4867_s16 + $0x10] sm:$0xff] }
0x1341   : > { %v2538_v32 = vsel %vm1633_vm11, %v2524_v26, -inf }
0x1342   : > { %2539 = vmax.xlane.f32.xlu0 %v2538_v32  ;;  %2545 = vmax.xlane.f32.xlu1 %v2544_v28  ;;  %v4007_v28 = vld [vmem:[%s4867_s16 + $0x8] sm:$0xff] }
0x1346   : > { %2542 = vmax.xlane.f32.xlu0 %v2541_v29 }
0x1353   : > { %2581 = vrot.lane.b32.xlu1 %v4631_v4, %s4941_s1 }
0x13c7   : > { %v2537_v42 = vpop.xlane.xlu1 %2536 }
0x13c8   : > { %v2547_v47 = vsub.f32 %v2521_v24, %v2537_v42  ;;  %v4008_v42 = vld [vmem:[%s4867_s16 + $0x18] sm:$0xf] }
0x13ca   : > { %v2551_v39 = vmul.f32 1.442695, %v2547_v47 }
0x13cb   : > { %v2540_v44 = vpop.xlane.xlu0 %2539  ;;  %v2546_v30 = vpop.xlane.xlu1 %2545 }
0x13cc   : > { %v2548_v31 = vsub.f32 %v2524_v26, %v2540_v44  ;;  %v2550_v34 = vsub.f32 %v2532_v5, %v2546_v30 }
0x13ce   : > { %v2557_v36 = vmul.f32 1.442695, %v2550_v34  ;;  %v2553_v50 = vmul.f32 1.442695, %v2548_v31 }
0x13cf   : > { %v2543_v37 = vpop.xlane.xlu0 %2542  ;;  %v2582_v58 = vpop.permute.xlu1 %2581 }
0x13d0   : > { %v2549_v38 = vsub.f32 %v2529_v46, %v2543_v37  ;;  %3953 = vpow2.f32 %v2557_v36 }
0x13d1   : > { %3955 = vpow2.f32 %v2553_v50 }
0x13d2   : > { %v2555_v41 = vmul.f32 1.442695, %v2549_v38 }
0x13d4   : > { %3957 = vpow2.f32 %v2555_v41 }
0x13d5   : > { %3959 = vpow2.f32 %v2551_v39 }
0x13dd   : > { %v3954_v49 = vpop.eup %3953 }
0x13de   : > { %v2568_v51 = vsel %vm1643_vm12, %v3954_v49, 0.0  ;;  %v3956_v52 = vpop.eup %3955 }
0x13df   : > { %2569 = vadd.xlane.f32.xlu1 %v2568_v51  ;;  %v2562_v56 = vsel %vm1633_vm11, %v3956_v52, 0.0 }
0x13e1   : > { %v3958_v53 = vpop.eup %3957 }
0x13e2   : > { %v2565_v54 = vsel %vm1633_vm11, %v3958_v53, 0.0  ;;  %v3960_v55 = vpop.eup %3959 }
0x13e3   : > { %2566 = vadd.xlane.f32.xlu0 %v2565_v54  ;;  %2563 = vadd.xlane.f32.xlu1 %v2562_v56  ;;  %v2559_v57 = vsel %vm1633_vm11, %v3960_v55, 0.0 }
0x13e7   : > { %2560 = vadd.xlane.f32.xlu0 %v2559_v57 }
0x13f4   : > { %2650 = vrot.lane.b32.xlu1 %v4629_v19, %s4942_s7 }
0x13f8   : > { %2648 = vrot.lane.b32.xlu1 %v4631_v4, %s4942_s7  ;;  %s4806_s7 = scalar_lea.hbm %s4879_s28, %s3495_s0 }
0x13fc   : > { %2646 = vrot.lane.b32.xlu1 %v4629_v19, %s4943_s4 }
0x13fd   : > { %2583 = vrot.lane.b32.xlu0 %v4629_v19, %s4941_s1  ;;  %s4945_s1 = smov 16  }
0x1401   : > { %2644 = vrot.lane.b32.xlu0 %v4631_v4, %s4943_s4  ;;  %s3360_s4 = sshll.u32 %s851_s12, 4 }
0x1402   : > { %s853_s6 = scalar_lea.vmem [#allocation4], %s3360_s4  ;;  %s4080_s4 = smov [#allocation4]  }
0x1403   : > { %s3282_s10 = sshll.u32 %s853_s6, 4  ;;  %s4013_s9 = sshll.u32 %s4080_s4, 4  ;;  %s4808_s10 = int_to_ptr.vmem [resolvable:$true] %s3282_s10  ;;  %s4014_s9 = int_to_ptr.vmem [resolvable:$false] %s4013_s9 }
0x1404   : > { %s4009_s3 = scalar_lea.vmem %s4808_s10, 256  ;;  %s4015_s13 = scalar_lea.vmem %s4014_s9, 512 }
0x1405   : > { %p4010_p11 = scmp.ne.s32.totalorder %s4808_s10, %s4009_s3  ;;  %p4016_p0 = scmp.lt.s32.totalorder %s4808_s10, %s4014_s9 }
0x1406   : > { %p4017_p1 = scmp.lt.s32.totalorder %s4015_s13, %s4009_s3 }
0x1407   : > { %p4011_p12 = pnand %p4010_p11, %p4266_p5 }
0x1408   : > { %p4018_p2 = por %p4017_p1, %p4016_p0 }
0x1409   : > { %p4012_p13 = pneg %p4011_p12 }
0x140b   : > { %p4019_p3 = pnand %p4018_p2, %p4012_p13 }
0x1468   : > { %v2570_v59 = vpop.xlane.xlu1 %2569 }
0x146c   : > { %v2567_v60 = vpop.xlane.xlu0 %2566  ;;  %v2564_v33 = vpop.xlane.xlu1 %2563 }
0x146d   : > { %3961 = vrcp.f32 %v2567_v60 }
0x146e   : > { %3963 = vrcp.f32 %v2564_v33 }
0x146f   : > { %3965 = vrcp.f32 %v2570_v59 }
0x1470   : > { %v2561_v61 = vpop.xlane.xlu0 %2560  ;;  %v2651_v0 = vpop.permute.xlu1 %2650 }
0x1471   : > { %3967 = vrcp.f32 %v2561_v61  ;;  %v2662_v16 = vsel %vm1060_vm7, %v2651_v0, 0 }
0x1474   : > { %v2584_v62 = vpop.permute.xlu0 %2583  ;;  %v2649_v18 = vpop.permute.xlu1 %2648 }
0x1475   : > { %v2593_v63 = vsel %vm1692_vm13, %v2584_v62, 0  ;;  %3783 = vmatprep.subr.msk.bf16.mxu0 %vm1692_vm13, %v2584_v62  ;;  %v2659_v20 = vsel %vm1060_vm7, %v2649_v18, 0 }
0x1476   : > { %3724 = vmatpush3.bf16.msra.mxu0 %v2593_v63 }
0x1477   : > { %3725 = vmatprep.subr.bf16.mxu0 %v2582_v58 }
0x1478   : > { %v2645_v17 = vpop.permute.xlu0 %2644  ;;  %v2647_v1 = vpop.permute.xlu1 %2646 }
0x147a   : > { %3726 = vmatpush3.bf16.msra.mxu0 %v2582_v58  ;;  %v3962_v2 = vpop.eup %3961 }
0x147b   : > { %3784 = vmatprep.subr.msk.bf16.mxu0 %vm1060_vm7, %v2651_v0  ;;  %v3964_v3 = vpop.eup %3963  ;;  %v2577_v6 = vmul.f32 %v3962_v2, %v3958_v53 }
0x147c   : > { %v3966_v45 = vpop.eup %3965  ;;  %v2576_v43 = vmul.f32 %v3964_v3, %v3956_v52 }
0x147d   : > { %v2578_v13 = vmul.f32 %v3966_v45, %v3954_v49 }
0x147e   : > { %v3968_v48 = vpop.eup %3967 }
0x147f   : > { %v2575_v7 = vmul.f32 %v3968_v48, %v3960_v55  ;;  %v2580_v11 = vpack.c.bf16 %v2578_v13, %v2577_v6 }
0x1481   : > { %v2579_v40 = vpack.c.bf16 %v2576_v43, %v2575_v7 }
0x1483   : > { %3727 = vmatprep.mubr.msk.bf16.mxu0 %vm1633_vm11, %v2579_v40 }
0x1484   : > { %3728 = vmatmul.mubr.msk.bf16.vlgmr.msra.gmra.mxu0 %vm1633_vm11, %v2580_v11 }
0x1485   : > { %3732 = vmatpush3.bf16.xpose.msra.mxu0 %v2662_v16  ;;  %3735 = vmatprep.mubr.msk.bf16.mxu0 %vm1060_vm7, %v2645_v17 }
0x1486   : > { %3785 = vmatprep.subr.msk.bf16.mxu0 %vm1060_vm7, %v2649_v18  ;;  %v3877_v18 = vld [vmem:[%s4869_s18 + $0x18] sm:$0xff]  }
0x148d   : > { %3734 = vmatpush3.bf16.xpose.msra.mxu0 %v2659_v20 }
0x1494   : > { %3736 = vmatmul.mubr.msk.bf16.vlgmr.msra.gmra.mxu0 %vm1060_vm7, %v2647_v1  ;;  %v3878_v1 = vld [vmem:[%s4869_s18 + $0x10] sm:$0xff]  }
0x1544   : > { %v4679_v21 = vpop.f32.mrf.mxu0 }
0x1546   : > { %v4681_v22 = vpop.f32.mrf.mxu0 }
0x1548   : > { %v4683_v12 = vpop.f32.mrf.mxu0 }
0x154a   : > { %v4685_v23 = vpop.f32.mrf.mxu0 }
0x1554   : > { %v3737_v9 = vpop.f32.mrf.mxu0 }
0x1555   : > { %v2707_v26 = vadd.f32 %v4006_v35, %v3737_v9 }
0x1556   : > { %v2698_v24 = vpop.f32.mrf.mxu0 }
0x1557   : > { %v2699_v5 = vadd.f32 %v4005_v25, %v2698_v24  ;;  %v2719_v31 = vsel %vm1633_vm11, %v2707_v26, -inf }
0x1558   : > { %v3738_v27 = vpop.f32.mrf.mxu0 }
0x1559   : > { %v2713_v46 = vsel %vm1633_vm11, %v2699_v5, -inf  ;;  %v2710_v44 = vadd.f32 %v4008_v42, %v3738_v27 }
0x155a   : > { %v2701_v32 = vpop.f32.mrf.mxu0  ;;  %2714 = vmax.xlane.f32.xlu0 %v2713_v46 }
0x155b   : > { %v2702_v29 = vadd.f32 %v4007_v28, %v2701_v32  ;;  %v2722_v34 = vsel %vm1643_vm12, %v2710_v44, -inf }
0x155d   : > { %v2716_v30 = vsel %vm1633_vm11, %v2702_v29, -inf }
0x155e   : > { %2717 = vmax.xlane.f32.xlu1 %v2716_v30  ;;  %2720 = vmax.xlane.f32.xlu0 %v2719_v31 }
0x1562   : > { %2723 = vmax.xlane.f32.xlu0 %v2722_v34 }
0x15e3   : > { %v2715_v47 = vpop.xlane.xlu0 %2714 }
0x15e4   : > { %v2725_v36 = vsub.f32 %v2699_v5, %v2715_v47 }
0x15e6   : > { %v2729_v49 = vmul.f32 1.442695, %v2725_v36 }
0x15e7   : > { %v2718_v50 = vpop.xlane.xlu1 %2717  ;;  %v2721_v37 = vpop.xlane.xlu0 %2720 }
0x15e8   : > { %v2727_v38 = vsub.f32 %v2707_v26, %v2721_v37  ;;  %v2726_v39 = vsub.f32 %v2702_v29, %v2718_v50 }
0x15ea   : > { %v2733_v41 = vmul.f32 1.442695, %v2727_v38  ;;  %v2731_v53 = vmul.f32 1.442695, %v2726_v39 }
0x15eb   : > { %v2724_v51 = vpop.xlane.xlu0 %2723 }
0x15ec   : > { %v2728_v52 = vsub.f32 %v2710_v44, %v2724_v51  ;;  %3969 = vpow2.f32 %v2733_v41 }
0x15ed   : > { %3971 = vpow2.f32 %v2729_v49 }
0x15ee   : > { %v2735_v54 = vmul.f32 1.442695, %v2728_v52 }
0x15f0   : > { %3973 = vpow2.f32 %v2735_v54 }
0x15f1   : > { %3975 = vpow2.f32 %v2731_v53 }
0x15f9   : > { %v3970_v55 = vpop.eup %3969 }
0x15fa   : > { %v2743_v56 = vsel %vm1633_vm11, %v3970_v55, 0.0  ;;  %v3972_v57 = vpop.eup %3971 }
0x15fb   : > { %2744 = vadd.xlane.f32.xlu0 %v2743_v56  ;;  %v2737_v33 = vsel %vm1633_vm11, %v3972_v57, 0.0 }
0x15fd   : > { %v3974_v58 = vpop.eup %3973 }
0x15fe   : > { %v2746_v59 = vsel %vm1643_vm12, %v3974_v58, 0.0  ;;  %v3976_v60 = vpop.eup %3975 }
0x15ff   : > { %2747 = vadd.xlane.f32.xlu1 %v2746_v59  ;;  %2738 = vadd.xlane.f32.xlu0 %v2737_v33  ;;  %v2740_v61 = vsel %vm1633_vm11, %v3976_v60, 0.0 }
0x1603   : > { %2741 = vadd.xlane.f32.xlu1 %v2740_v61 }
0x1614   : > { %2759 = vrot.lane.b32.xlu1 %v4631_v4, %s4944_s11 }
0x1615   : > { %2761 = vrot.lane.b32.xlu0 %v4629_v19, %s4944_s11  ;;  %s4811_s11 = scalar_lea.sflag [#allocation5], %s851_s12 }
0x1684   : > { %v2745_v62 = vpop.xlane.xlu0 %2744 }
0x1688   : > { %v2748_v63 = vpop.xlane.xlu1 %2747  ;;  %v2739_v0 = vpop.xlane.xlu0 %2738 }
0x1689   : > { %3977 = vrcp.f32 %v2748_v63 }
0x168a   : > { %3979 = vrcp.f32 %v2739_v0 }
0x168b   : > { %3981 = vrcp.f32 %v2745_v62 }
0x168c   : > { %v2742_v2 = vpop.xlane.xlu1 %2741  ;;  %v2762_v3 = vpop.permute.xlu0 %2761 }
0x168d   : > { %3983 = vrcp.f32 %v2742_v2  ;;  %v2771_v45 = vsel %vm1692_vm13, %v2762_v3, 0  ;;  %3786 = vmatprep.subr.msk.bf16.mxu1 %vm1692_vm13, %v2762_v3 }
0x168e   : > { %3740 = vmatpush3.bf16.msra.mxu1 %v2771_v45 }
0x1690   : > { %v2760_v48 = vpop.permute.xlu1 %2759 }
0x1691   : > { %3741 = vmatprep.subr.bf16.mxu1 %v2760_v48 }
0x1692   : > { %3742 = vmatpush3.bf16.msra.mxu1 %v2760_v48 }
0x1693   : > { %3747 = vmatprep.subr.bf16.mxu1 %v3877_v18 }
0x1696   : > { %v3978_v4 = vpop.eup %3977 }
0x1697   : > { %v3980_v6 = vpop.eup %3979  ;;  %v2756_v43 = vmul.f32 %v3978_v4, %v3974_v58 }
0x1698   : > { %v3982_v19 = vpop.eup %3981  ;;  %v2753_v13 = vmul.f32 %v3980_v6, %v3972_v57 }
0x1699   : > { %v2755_v11 = vmul.f32 %v3982_v19, %v3970_v55 }
0x169a   : > { %v3984_v7 = vpop.eup %3983 }
0x169b   : > { %v2754_v40 = vmul.f32 %v3984_v7, %v3976_v60  ;;  %v2758_v17 = vpack.c.bf16 %v2756_v43, %v2755_v11  ;;  %v3879_v7 = vld [vmem:[%s4873_s22 + $0x18] sm:$0xff]   ;;  %v3880_v43 = vld [vmem:[%s4873_s22 + $0x10] sm:$0xff]  }
0x169c   : > { %3755 = vmatprep.subr.bf16.mxu0 %v3879_v7 }
0x169d   : > { %v2757_v16 = vpack.c.bf16 %v2754_v40, %v2753_v13  ;;  %3756 = vmatpush3.bf16.msra.mxu0 %v3879_v7 }
0x169e   : > { %3757 = vmatprep.subr.bf16.mxu0 %v3880_v43 }
0x169f   : > { %3743 = vmatprep.mubr.msk.bf16.mxu1 %vm1633_vm11, %v2757_v16 }
0x16a0   : > { %3744 = vmatmul.mubr.msk.bf16.vlgmr.msra.gmra.mxu1 %vm1633_vm11, %v2758_v17 }
0x16a1   : > { %3748 = vmatpush3.bf16.msra.mxu1 %v3877_v18  ;;  %3758 = vmatpush3.bf16.msra.mxu0 %v3880_v43 }
0x16a2   : > { %3749 = vmatprep.subr.bf16.mxu1 %v3878_v1 }
0x16a5   : > { %3750 = vmatpush3.bf16.msra.mxu1 %v3878_v1 }
0x1760   : > { %v3745_v20 = vpop.f32.mrf.mxu1 }
0x1762   : > { %v2807_v9 = vpop.f32.mrf.mxu1 }
0x1764   : > { %v3746_v24 = vpop.f32.mrf.mxu1 }
0x1765   : > { %v3852_v27 = vpack.i.bf16 %v3746_v24, %v3745_v20 }
0x1766   : > { %v2810_v25 = vpop.f32.mrf.mxu1 }
0x1767   : > { %v3847_v5 = vpack.i.bf16 %v2810_v25, %v2807_v9 }
0x1769   : > { %3848 = vrot.lane.b32.xlu1 %v3847_v5, %s4945_s1 }
0x176d   : > { %3853 = vrot.lane.b32.xlu1 %v3852_v27, %s4945_s1 }
0x17db   : > { %v3849_v35 = vpop.permute.xlu1 %3848 }
0x17dc   : > { %v3851_v26 = vunpack.i.h.bf16 %v3849_v35  ;;  %v3850_v46 = vunpack.i.l.bf16 %v3849_v35 }
0x17de   : > { %v2839_v32 = vsel %vm1060_vm7, %v4685_v23, %v3851_v26  ;;  %v2838_v28 = vsel %vm1060_vm7, %v4681_v22, %v3850_v46  ;;  %v3449_v22 = vld [vmem:[%s4870_s19 + $0x1] ss:$0 sm:$0xff] }
0x17df   : > { %v2847_v29 = vpack.c.bf16 %v2839_v32, %v2838_v28  ;;  %v3854_v42 = vpop.permute.xlu1 %3853  ;;  %v3456_v26 = vld [vmem:[%s4871_s20 + $0x1] ss:$0 sm:$0xff] }
0x17e0   : > { %v3856_v44 = vunpack.i.h.bf16 %v3854_v42  ;;  %v3855_v30 = vunpack.i.l.bf16 %v3854_v42 }
0x17e1   : > { %3751 = vmatprep.mubr.msk.bf16.mxu1 %vm1015_vm6, %v2847_v29 }
0x17e2   : > { %v2841_v31 = vsel %vm1060_vm7, %v4683_v12, %v3856_v44  ;;  %v2840_v34 = vsel %vm1060_vm7, %v4679_v21, %v3855_v30  ;;  %v3457_v44 = vld [vmem:[%s4872_s21 + $0x1] ss:$0 sm:$0xff] }
0x17e3   : > { %v2848_v47 = vpack.c.bf16 %v2841_v31, %v2840_v34 }
0x17e5   : > { %3752 = vmatmul.mubr.msk.bf16.vlgmr.msra.gmra.mxu1 %vm1015_vm6, %v2848_v47 }
0x18a5   : > { %v3753_v36 = vpop.f32.mrf.mxu1 }
0x18a6   : > { %v2918_v50 = vadd.f32 %v3753_v36, %v3449_v22 }
0x18a7   : > { %v2909_v23 = vpop.f32.mrf.mxu1 }
0x18a8   : > { %v2910_v37 = vadd.f32 %v3449_v22, %v2909_v23  ;;  %v2926_v21 = vadd.f32 %v2918_v50, %v4622_v14 }
0x18a9   : > { %v3754_v38 = vpop.f32.mrf.mxu1 }
0x18aa   : > { %v2924_v39 = vadd.f32 %v2910_v37, %v4615_v8  ;;  %v2921_v49 = vadd.f32 %v3754_v38, %v3449_v22  ;;  %v2938_v54 = vsel %vm1015_vm6, %v2926_v21, 0.0 }
0x18ab   : > { %v2912_v41 = vpop.f32.mrf.mxu1 }
0x18ac   : > { %v2913_v12 = vadd.f32 %v3449_v22, %v2912_v41  ;;  %v2932_v51 = vsel %vm1015_vm6, %v2924_v39, 0.0  ;;  %v2927_v55 = vadd.f32 %v2921_v49, %v4624_v15  ;;  %v3881_v41 = vld [vmem:[%s4875_s24 + $0x38] sm:$0xff]   ;;  %v3882_v49 = vld [vmem:[%s4875_s24 + $0x30] sm:$0xff]  }
0x18ad   : > { %2933 = vadd.xlane.f32.xlu0 %v2932_v51  ;;  %3763 = vmatprep.subr.bf16.mxu1 %v3881_v41  ;;  %v3884_v51 = vld [vmem:[%s4875_s24 + $0x20] sm:$0xff]  }
0x18ae   : > { %v2925_v52 = vadd.f32 %v2913_v12, %v4617_v10  ;;  %v2941_v8 = vsel %vm1422_vm10, %v2927_v55, 0.0  ;;  %3764 = vmatpush3.bf16.msra.mxu1 %v3881_v41  ;;  %v3883_v12 = vld [vmem:[%s4875_s24 + $0x28] sm:$0xff]  }
0x18af   : > { %3765 = vmatprep.subr.bf16.mxu1 %v3882_v49 }
0x18b0   : > { %v2935_v53 = vsel %vm1015_vm6, %v2925_v52, 0.0 }
0x18b1   : > { %2936 = vadd.xlane.f32.xlu1 %v2935_v53  ;;  %2939 = vadd.xlane.f32.xlu0 %v2938_v54 }
0x18b2   : > { %3766 = vmatpush3.bf16.msra.mxu1 %v3882_v49 }
0x18b3   : > { %3767 = vmatprep.subr.bf16.mxu1 %v3883_v12 }
0x18b5   : > { %2942 = vadd.xlane.f32.xlu0 %v2941_v8 }
0x18b6   : > { %3768 = vmatpush3.bf16.msra.mxu1 %v3883_v12 }
0x18b7   : > { %3769 = vmatprep.subr.bf16.mxu1 %v3884_v51 }
0x18ba   : > { %3770 = vmatpush3.bf16.msra.mxu1 %v3884_v51 }
0x1936   : > { %v2934_v56 = vpop.xlane.xlu0 %2933 }
0x1937   : > { %v2944_v57 = vmul.f32 0.03125, %v2934_v56 }
0x1939   : > { %v2948_v58 = vsub.f32 %v2924_v39, %v2944_v57 }
0x193a   : > { %v2937_v59 = vpop.xlane.xlu1 %2936  ;;  %v2940_v60 = vpop.xlane.xlu0 %2939 }
0x193b   : > { %v2945_v14 = vmul.f32 0.03125, %v2937_v59  ;;  %v2946_v33 = vmul.f32 0.03125, %v2940_v60  ;;  %v2952_v61 = vmul.f32 %v2948_v58, %v2948_v58 }
0x193d   : > { %v2949_v10 = vsub.f32 %v2925_v52, %v2945_v14  ;;  %v2950_v62 = vsub.f32 %v2926_v21, %v2946_v33  ;;  %v2956_v63 = vsel %vm1015_vm6, %v2952_v61, 0.0  ;;  %v3463_v21 = vld [vmem:[%s4874_s23 + $0x1] ss:$0 sm:$0xff] }
0x193e   : > { %2957 = vadd.xlane.f32.xlu0 %v2956_v63  ;;  %v2943_v0 = vpop.xlane.xlu0 %2942 }
0x193f   : > { %v2947_v15 = vmul.f32 0.03125, %v2943_v0  ;;  %v2953_v2 = vmul.f32 %v2949_v10, %v2949_v10  ;;  %v2954_v3 = vmul.f32 %v2950_v62, %v2950_v62 }
0x1941   : > { %v2951_v45 = vsub.f32 %v2927_v55, %v2947_v15  ;;  %v2959_v48 = vsel %vm1015_vm6, %v2953_v2, 0.0  ;;  %v2962_v4 = vsel %vm1015_vm6, %v2954_v3, 0.0 }
0x1942   : > { %2960 = vadd.xlane.f32.xlu1 %v2959_v48  ;;  %2963 = vadd.xlane.f32.xlu0 %v2962_v4 }
0x1943   : > { %v2955_v6 = vmul.f32 %v2951_v45, %v2951_v45 }
0x1945   : > { %v2965_v19 = vsel %vm1422_vm10, %v2955_v6, 0.0 }
0x1946   : > { %2966 = vadd.xlane.f32.xlu1 %v2965_v19 }
0x19c7   : > { %v2958_v13 = vpop.xlane.xlu0 %2957 }
0x19c8   : > { %v2968_v40 = vmul.f32 0.03125, %v2958_v13 }
0x19ca   : > { %v2972_v11 = vadd.f32 1e-06, %v2968_v40 }
0x19cb   : > { %v2961_v16 = vpop.xlane.xlu1 %2960  ;;  %v2964_v17 = vpop.xlane.xlu0 %2963 }
0x19cc   : > { %3985 = vrsqrt.f32 %v2972_v11  ;;  %v2969_v18 = vmul.f32 0.03125, %v2961_v16  ;;  %v2970_v20 = vmul.f32 0.03125, %v2964_v17 }
0x19ce   : > { %v2973_v1 = vadd.f32 1e-06, %v2969_v18  ;;  %v2974_v9 = vadd.f32 1e-06, %v2970_v20 }
0x19cf   : > { %v2967_v24 = vpop.xlane.xlu1 %2966 }
0x19d0   : > { %3987 = vrsqrt.f32 %v2973_v1  ;;  %v2971_v25 = vmul.f32 0.03125, %v2967_v24 }
0x19d1   : > { %3989 = vrsqrt.f32 %v2974_v9 }
0x19d2   : > { %v2975_v5 = vadd.f32 1e-06, %v2971_v25 }
0x19d4   : > { %3991 = vrsqrt.f32 %v2975_v5 }
0x19d9   : > { %v3986_v27 = vpop.eup %3985 }
0x19da   : > { %v2980_v35 = vmul.f32 %v3986_v27, %v2948_v58 }
0x19dc   : > { %v2990_v29 = vmul.f32 %v3456_v26, %v2980_v35 }
0x19dd   : > { %v3988_v46 = vpop.eup %3987 }
0x19de   : > { %v3990_v32 = vpop.eup %3989  ;;  %v2981_v28 = vmul.f32 %v3988_v46, %v2949_v10  ;;  %v4760_v47 = vadd.f32 %v3457_v44, %v2990_v29 }
0x19df   : > { %v2982_v42 = vmul.f32 %v3990_v32, %v2950_v62 }
0x19e0   : > { %v2991_v30 = vmul.f32 %v3456_v26, %v2981_v28 }
0x19e1   : > { %v3992_v31 = vpop.eup %3991  ;;  %v2992_v22 = vmul.f32 %v3456_v26, %v2982_v42 }
0x19e2   : > { %v2983_v34 = vmul.f32 %v3992_v31, %v2951_v45  ;;  %v4762_v36 = vadd.f32 %v3457_v44, %v2991_v30 }
0x19e3   : > { %v3002_v37 = vadd.f32 %v3457_v44, %v2992_v22 }
0x19e4   : > { %v3009_v23 = vpack.c.bf16 %v4762_v36, %v4760_v47  ;;  %v2993_v50 = vmul.f32 %v3456_v26, %v2983_v34 }
0x19e6   : > { %3759 = vmatprep.mubr.msk.bf16.mxu0 %vm1015_vm6, %v3009_v23  ;;  %v3003_v38 = vadd.f32 %v3457_v44, %v2993_v50  ;;  %v3477_v44 = vld [vmem:[%s4876_s25 + $0x1] ss:$0 sm:$0xff] }
0x19e8   : > { %v3010_v39 = vpack.c.bf16 %v3003_v38, %v3002_v37 }
0x19ea   : > { %3760 = vmatmul.mubr.msk.bf16.vlgmr.msra.gmra.mxu0 %vm1015_vm6, %v3010_v39 }
0x1aaa   : > { %v3761_v52 = vpop.f32.mrf.mxu0 }
0x1aab   : > { %v3080_v53 = vadd.f32 %v3761_v52, %v3463_v21 }
0x1aac   : > { %v3071_v54 = vpop.f32.mrf.mxu0 }
0x1aad   : > { %v3092_v55 = vmul.f32 0.044715, %v3080_v53  ;;  %v3072_v8 = vadd.f32 %v3463_v21, %v3071_v54  ;;  %v3088_v27 = vmul.f32 0.5, %v3080_v53 }
0x1aae   : > { %v3762_v56 = vpop.f32.mrf.mxu0 }
0x1aaf   : > { %v3096_v57 = vmul.f32 %v3092_v55, %v3080_v53  ;;  %v3090_v58 = vmul.f32 0.044715, %v3072_v8  ;;  %v3083_v59 = vadd.f32 %v3762_v56, %v3463_v21  ;;  %v3086_v24 = vmul.f32 0.5, %v3072_v8 }
0x1ab0   : > { %v3074_v60 = vpop.f32.mrf.mxu0 }
0x1ab1   : > { %v3100_v14 = vmul.f32 %v3096_v57, %v3080_v53  ;;  %v3094_v33 = vmul.f32 %v3090_v58, %v3072_v8  ;;  %v3093_v61 = vmul.f32 0.044715, %v3083_v59  ;;  %v3075_v10 = vadd.f32 %v3463_v21, %v3074_v60 }
0x1ab2   : > { %v3089_v1 = vmul.f32 0.5, %v3083_v59 }
0x1ab3   : > { %v3104_v62 = vadd.f32 %v3100_v14, %v3080_v53  ;;  %v3098_v63 = vmul.f32 %v3094_v33, %v3072_v8  ;;  %v3097_v0 = vmul.f32 %v3093_v61, %v3083_v59  ;;  %v3091_v15 = vmul.f32 0.044715, %v3075_v10  ;;  %v3486_v14 = vld [vmem:[%s4877_s26 + $0x1] ss:$0 sm:$0xff] }
0x1ab4   : > { %v3087_v25 = vmul.f32 0.5, %v3075_v10  ;;  %v3487_v61 = vld [vmem:[%s4878_s27 + $0x1] ss:$0 sm:$0xff] }
0x1ab5   : > { %v3108_v2 = vmul.f32 0.7978846, %v3104_v62  ;;  %v3102_v3 = vadd.f32 %v3098_v63, %v3072_v8  ;;  %v3101_v45 = vmul.f32 %v3097_v0, %v3083_v59  ;;  %v3095_v48 = vmul.f32 %v3091_v15, %v3075_v10 }
0x1ab7   : > { %v3106_v4 = vmul.f32 0.7978846, %v3102_v3  ;;  %v3105_v6 = vadd.f32 %v3101_v45, %v3083_v59  ;;  %v3099_v19 = vmul.f32 %v3095_v48, %v3075_v10  ;;  %3993 = vtanh.f32 %v3108_v2 }
0x1ab9   : > { %v3109_v7 = vmul.f32 0.7978846, %v3105_v6  ;;  %3995 = vtanh.f32 %v3106_v4  ;;  %v3103_v43 = vadd.f32 %v3099_v19, %v3075_v10 }
0x1abb   : > { %3997 = vtanh.f32 %v3109_v7  ;;  %v3107_v13 = vmul.f32 0.7978846, %v3103_v43 }
0x1abd   : > { %3999 = vtanh.f32 %v3107_v13 }
0x1ac4   : > { %v3994_v40 = vpop.eup %3993 }
0x1ac5   : > { %v3116_v9 = vadd.f32 1.0, %v3994_v40 }
0x1ac6   : > { %v3996_v11 = vpop.eup %3995 }
0x1ac7   : > { %v3114_v18 = vadd.f32 1.0, %v3996_v11  ;;  %v3120_v32 = vmul.f32 %v3116_v9, %v3088_v27 }
0x1ac8   : > { %v3998_v16 = vpop.eup %3997 }
0x1ac9   : > { %v3117_v17 = vadd.f32 1.0, %v3998_v16  ;;  %v3118_v26 = vmul.f32 %v3114_v18, %v3086_v24 }
0x1aca   : > { %v4000_v20 = vpop.eup %3999 }
0x1acb   : > { %v3115_v5 = vadd.f32 1.0, %v4000_v20  ;;  %v3121_v35 = vmul.f32 %v3117_v17, %v3089_v1 }
0x1acd   : > { %v3119_v46 = vmul.f32 %v3115_v5, %v3087_v25  ;;  %v3132_v29 = vpack.c.bf16 %v3121_v35, %v3120_v32 }
0x1acf   : > { %v3131_v28 = vpack.c.bf16 %v3119_v46, %v3118_v26 }
0x1ad1   : > { %3771 = vmatprep.mubr.msk.bf16.mxu1 %vm2258_vm14, %v3131_v28 }
0x1ad2   : > { %3772 = vmatmul.mubr.msk.bf16.vlgmr.msra.gmra.mxu1 %vm2258_vm14, %v3132_v29 }
0x1b92   : > { %v3773_v42 = vpop.f32.mrf.mxu1 }
0x1b94   : > { %v3205_v30 = vpop.f32.mrf.mxu1 }
0x1b95   : > { %v3206_v31 = vadd.f32 %v3477_v44, %v3205_v30 }
0x1b96   : > { %v3774_v34 = vpop.f32.mrf.mxu1 }
0x1b97   : > { %v3218_v22 = vadd.f32 %v3206_v31, %v4760_v47 }
0x1b98   : > { %v3208_v23 = vpop.f32.mrf.mxu1 }
0x1b99   : > { %v3209_v50 = vadd.f32 %v3477_v44, %v3208_v23  ;;  %v3224_v37 = vsel %vm1015_vm6, %v3218_v22, 0.0 }
0x1b9a   : > { %3225 = vadd.xlane.f32.xlu0 %v3224_v37 }
0x1b9b   : > { %v3219_v38 = vadd.f32 %v3209_v50, %v4762_v36 }
0x1b9d   : > { %v3227_v39 = vsel %vm1015_vm6, %v3219_v38, 0.0 }
0x1b9e   : > { %3228 = vadd.xlane.f32.xlu1 %v3227_v39 }
0x1c23   : > { %v3226_v41 = vpop.xlane.xlu0 %3225 }
0x1c24   : > { %v3230_v49 = vmul.f32 0.03125, %v3226_v41 }
0x1c26   : > { %v3232_v12 = vsub.f32 %v3218_v22, %v3230_v49 }
0x1c27   : > { %v3229_v51 = vpop.xlane.xlu1 %3228 }
0x1c28   : > { %v3231_v21 = vmul.f32 0.03125, %v3229_v51  ;;  %v3234_v52 = vmul.f32 %v3232_v12, %v3232_v12 }
0x1c2a   : > { %v3233_v53 = vsub.f32 %v3219_v38, %v3231_v21  ;;  %v3236_v47 = vsel %vm1015_vm6, %v3234_v52, 0.0 }
0x1c2b   : > { %3237 = vadd.xlane.f32.xlu0 %v3236_v47 }
0x1c2c   : > { %v3235_v54 = vmul.f32 %v3233_v53, %v3233_v53 }
0x1c2e   : > { %v3239_v55 = vsel %vm1015_vm6, %v3235_v54, 0.0 }
0x1c2f   : > { %3240 = vadd.xlane.f32.xlu1 %v3239_v55 }
0x1cb4   : > { %v3238_v8 = vpop.xlane.xlu0 %3237 }
0x1cb5   : > { %v3242_v36 = vmul.f32 0.03125, %v3238_v8 }
0x1cb7   : > { %v3244_v56 = vadd.f32 1e-06, %v3242_v36 }
0x1cb8   : > { %v3241_v57 = vpop.xlane.xlu1 %3240 }
0x1cb9   : > { %4001 = vrsqrt.f32 %v3244_v56  ;;  %v3243_v58 = vmul.f32 0.03125, %v3241_v57 }
0x1cbb   : > { %v3245_v59 = vadd.f32 1e-06, %v3243_v58 }
0x1cbd   : > { %4003 = vrsqrt.f32 %v3245_v59 }
0x1cc6   : > { %v4002_v60 = vpop.eup %4001 }
0x1cc7   : > { %v3248_v33 = vmul.f32 %v4002_v60, %v3232_v12 }
0x1cc9   : > { %v3256_v10 = vmul.f32 %v3486_v14, %v3248_v33 }
0x1cca   : > { %v4004_v62 = vpop.eup %4003 }
0x1ccb   : > { %v3249_v63 = vmul.f32 %v4004_v62, %v3233_v53  ;;  %v3264_v0 = vadd.f32 %v3487_v61, %v3256_v10 }
0x1ccd   : > { %v3257_v15 = vmul.f32 %v3486_v14, %v3249_v63  ;;  %3266 = vst.msk [vmem:[%s853_s6] sm:$0xff] %vm1015_vm6, %v3264_v0 }
0x1ccf   : > { %v3265_v2 = vadd.f32 %v3487_v61, %v3257_v15 }
0x1cd1   : > { %3267 = vst.msk [vmem:[%s853_s6 + $0x8] sm:$0xff] %vm1015_vm6, %v3265_v2 }
0x1cd2   : > { %4022 = shalt.err (!%p4019_p3)
}
0x1cd3   : > { %s4023_s12 = scalar_lea.hbm %s4806_s7, 256  ;;  %s4027_s1 = scalar_lea.hbm %s4879_s28, 512 }
0x1cd4   : > { %p4024_p4 = scmp.ne.s32.totalorder %s4806_s7, %s4023_s12  ;;  %p4028_p9 = scmp.lt.s32.totalorder %s4806_s7, %s4879_s28 }
0x1cd5   : > { %p4029_p10 = scmp.lt.s32.totalorder %s4027_s1, %s4023_s12 }
0x1cd6   : > { %p4025_p7 = pnand %p4024_p4, %p4266_p5 }
0x1cd7   : > { %p4030_p11 = por %p4029_p10, %p4028_p9 }
0x1cd8   : > { %p4026_p8 = pneg %p4025_p7 }
0x1cda   : > { %p4031_p12 = pnand %p4030_p11, %p4026_p8 }
0x1cdc   : > { %4034 = shalt.err (!%p4031_p12)
}
0x1cdd   : > { %s4081_s3 = smov 128   ;;  %s4082_s9 = smov 8  }
0x1cde   : > { %3787 = dma.vmem_to_hbm [thread:$0]  (%p4266_p5), %s4808_s10, 256, %s4806_s7, %s4811_s11, %s4081_s3, %s4081_s3, %s4082_s9  }
0x1cdf PF: > { %p3793_p13 = scmp.ge.s32.totalorder %s4069_s30, 2  ;;  %s3297_s0 = sand.u32 1, %s4057_s8  }
0x1ce0   : > { %s3298_s14 = scalar_lea.sflag [#allocation5], %s3297_s0 }
0x1ce1   : > { %p3790_p0 = pnand %p3793_p13, %p4270_p6 }
0x1ce3   : > { %p3791_p1 = pneg %p3790_p0 }
0x1ce5   : > { %4052 = dma.done.wait (%p3791_p1), %s3298_s14, 256  }
0x1ce6   : > { %4054 = vsyncadd (%p3791_p1), %s3298_s14, 4294967040  ;;  %s4947_s30 = sld [smem:[#allocation8_spill]]  ;;  %s4950_s8 = smov %s4061_s5 }
0x1ce7   : > { %s4948_s12 = sld [smem:[#allocation7_spill]] }
0x1ce8   : > { %s4949_s9 = sld [smem:[#allocation9_spill]] }
0x1cec   : > { %p38_p2 = scmp.ge.s32.totalorder %s4947_s30, 4  }
0x1ced   : > { %s4951_s5 = smov %s4948_s12 }
0x1cee   :  { %40 = sbr.rel (!%p38_p2) target bundleno = 19 (0x13), region = 185 }
0x1cf3   :  { %3303 = vsyncpa [#allocation5], 1 }
0x1cf4   :  { %3305 = vsyncpa [#allocation5 + $0x1], 1 }

</bundles_post_ra>
